<compile_context>
chip_gen: v7x
topology: tpu7x:2x2x1
jax: 0.10.0
libtpu: 0.0.40
codegen_flags: <defaults>
</compile_context>

<pallas_src>
import functools

import jax
import jax.numpy as jnp
import numpy as np
from jax.experimental import pallas as pl
from jax.experimental.pallas import tpu as pltpu


# ---------------------------------------------------------------------------
# Kernel
# ---------------------------------------------------------------------------
def _fused_kernel(num_fused, M, xf_ref, xg_ref, w1f_ref, b1f_ref, w1g_ref,
                  b1g_ref, *rest):
    """One node tile: per-neighbor conv/bn/relu stacks (both branches fused via
    block-diagonal weights) + running elementwise max over the M neighbors."""
    out_ref = rest[-1]                       # (2*C_out, tile_p) f32
    fused = rest[:-1]                        # num_fused * (W_blockdiag, b_cat)

    # Tiny constants: read once, reused across the (unrolled) M loop.
    w1f = w1f_ref[...]                       # (C1, Cf) f32, BN scale folded in
    b1f = b1f_ref[...]                       # (C1, 1)  f32, conv bias + BN shift
    w1g = w1g_ref[...]                       # (C1, Cg) f32
    b1g = b1g_ref[...]                       # (C1, 1)  f32
    fw = [fused[2 * l][...] for l in range(num_fused)]       # (2Co, 2Ci) bf16
    fb = [fused[2 * l + 1][...] for l in range(num_fused)]   # (2Co, 1)  f32
    cf = w1f.shape[1]
    cg = w1g.shape[1]

    running = None
    for m in range(M):                       # M is small (8) -> fully unrolled
        xf_m = xf_ref[m]                     # (Cf, tile_p) f32
        xg_m = xg_ref[m]                     # (Cg, tile_p) f32

        # Layer 1 on the VPU: K is tiny (4 / 6), so channel broadcast-FMAs beat
        # near-empty MXU pushes and leave the MXU slot free for layer 2.
        hf = b1f + w1f[:, 0:1] * xf_m[0:1, :]
        for k in range(1, cf):
            hf = hf + w1f[:, k:k + 1] * xf_m[k:k + 1, :]
        hg = b1g + w1g[:, 0:1] * xg_m[0:1, :]
        for k in range(1, cg):
            hg = hg + w1g[:, k:k + 1] * xg_m[k:k + 1, :]

        # Fuse the two branches on the sublane axis (both pieces 8-aligned).
        h = jnp.maximum(jnp.concatenate([hf, hg], axis=0), 0.0)   # (2*C1, tile_p)

        # Layers >= 2: block-diagonal weights -> ONE MXU chain for both branches.
        for l in range(num_fused):
            acc = jnp.dot(fw[l], h.astype(jnp.bfloat16),
                          preferred_element_type=jnp.float32)
            h = jnp.maximum(acc + fb[l], 0.0)

        # Neighbor max: pure elementwise VPU max, no relayout.
        running = h if m == 0 else jnp.maximum(running, h)

    out_ref[...] = running                   # lane-dense full-width store


# ---------------------------------------------------------------------------
# Wrapper
# ---------------------------------------------------------------------------
def _pick_tile_p(P, max_tile=2048):
    """Largest node tile that divides P, is a multiple of 128 (lane-dense
    blocks) and -- when possible -- leaves an even grid >= 2 so both v7x
    TensorCores get work.  Falls back to the full node axis for small/odd P."""
    best = None
    for t in range(min(P, max_tile), 127, -1):
        if P % t or t % 128:
            continue
        if best is None:
            best = t                         # largest lane-dense divisor
        g = P // t
        if g >= 2 and g % 2 == 0:
            return t                         # megacore-friendly grid
    return best if best is not None else P


def grid_gcn_conv_forward(agg_feat, geo_feat, params_feat, params_geo, *,
                          tile_p=None):
    """
    agg_feat: (total_nodes, M, sizes[0]) f32 -- nodes.mailbox['agg_feat']
    geo_feat: (total_nodes, M, 6) f32        -- nodes.mailbox['geo_feat']
    params_*: ([W_i (c_out, c_in) f32, BN-folded], [shift_i (c_out, 1) f32])
    Returns 'new_feat': (2*total_nodes, sizes[-1]) f32 == torch.cat([h, h_geo], 0)
    after the per-branch conv/bn/relu stacks and the max over the neighbor axis.
    (The view(batch_size, ...) / permutes in PyTorch compose to an identity on
    the node-row ordering, so batch_size is not needed here.)
    """
    P, M, Cf = agg_feat.shape
    Pg, Mg, Cg = geo_feat.shape
    assert Pg == P and Mg == M
    wf, bf = params_feat
    wg, bg = params_geo
    L = len(wf)
    assert len(wg) == L and L >= 1
    C1 = wf[0].shape[0]
    assert wg[0].shape[0] == C1
    c_out = wf[-1].shape[0]
    assert wg[-1].shape[0] == c_out

    if tile_p is None:
        tile_p = _pick_tile_p(P)
    assert P % tile_p == 0
    assert tile_p % 128 == 0 or tile_p == P   # lane-dense (or full-extent) blocks

    # Channel-major / node-on-lanes presentation: (M, C, P).  Inputs stay f32 --
    # the bf16 cast for the MXU layers happens inside the kernel.
    xf = jnp.transpose(agg_feat, (1, 2, 0))
    xg = jnp.transpose(geo_feat, (1, 2, 0))

    # Layer 1 stays per-branch (VPU FMAs); layers >= 2 are branch-fused via
    # block-diagonal weights (bf16 MXU operands, f32 biases/shifts).
    consts = [wf[0], bf[0], wg[0], bg[0]]
    for i in range(1, L):
        co, ci = wf[i].shape
        assert wg[i].shape == (co, ci)
        wbd = jnp.zeros((2 * co, 2 * ci), jnp.float32)
        wbd = wbd.at[:co, :ci].set(wf[i]).at[co:, ci:].set(wg[i])
        consts.append(wbd.astype(jnp.bfloat16))                   # MXU operand
        consts.append(jnp.concatenate([bf[i], bg[i]], axis=0))    # (2co, 1) f32

    in_specs = [
        pl.BlockSpec((M, Cf, tile_p), lambda i: (0, 0, i)),
        pl.BlockSpec((M, Cg, tile_p), lambda i: (0, 0, i)),
    ]
    in_specs += [pl.BlockSpec(c.shape, lambda i: (0, 0)) for c in consts]

    # Advisory cost estimate so XLA can overlap this custom call.
    rows = P * M
    flops = 2 * rows * C1 * (Cf + Cg)
    for i in range(1, L):
        flops += 2 * rows * (2 * wf[i].shape[0]) * (2 * wf[i].shape[1])
    bytes_accessed = 4 * (xf.size + xg.size + 2 * c_out * P)
    bytes_accessed += sum(int(np.prod(c.shape)) * c.dtype.itemsize for c in consts)

    kernel = functools.partial(_fused_kernel, L - 1, M)
    out = pl.pallas_call(
        kernel,
        out_shape=jax.ShapeDtypeStruct((2 * c_out, P), jnp.float32),
        grid=(P // tile_p,),
        in_specs=in_specs,
        out_specs=pl.BlockSpec((2 * c_out, tile_p), lambda i: (0, i)),
        compiler_params=pltpu.CompilerParams(
            dimension_semantics=("parallel",)),
        cost_estimate=pl.CostEstimate(flops=flops, transcendentals=0,
                                      bytes_accessed=bytes_accessed),
    )(xf, xg, *consts)

    # Rows 0:c_out == feat branch, c_out:2*c_out == geo branch ->
    # (2, c_out, P) -> (2, P, c_out) -> (2P, c_out) == torch.cat([h, h_geo], 0).
    return jnp.transpose(out.reshape(2, c_out, P), (0, 2, 1)).reshape(2 * P, c_out)


# ---------------------------------------------------------------------------
# Parameter init (Conv2d 1x1 + BatchNorm2d, eval-mode BN folded into weights)
# ---------------------------------------------------------------------------
def init_branch(key, channel_sizes, eps=1e-5):
    """Deterministic Conv2d(1x1)+BN params; BN scale folded into W, shift kept.
    W_i: (c_out, c_in) f32, shift_i: (c_out, 1) f32."""
    weights, shifts = [], []
    for i in range(1, len(channel_sizes)):
        c_in, c_out = channel_sizes[i - 1], channel_sizes[i]
        key, k1, k2, k3, k4, k5, k6 = jax.random.split(key, 7)
        bound = 1.0 / (c_in ** 0.5)
        w = jax.random.uniform(k1, (c_out, c_in), jnp.float32, -bound, bound)
        b_conv = jax.random.uniform(k2, (c_out,), jnp.float32, -bound, bound)
        gamma = jax.random.uniform(k3, (c_out,), jnp.float32, 0.5, 1.5)
        beta = jax.random.uniform(k4, (c_out,), jnp.float32, -0.5, 0.5)
        mean = jax.random.uniform(k5, (c_out,), jnp.float32, -0.5, 0.5)
        var = jax.random.uniform(k6, (c_out,), jnp.float32, 0.5, 1.5)
        s = gamma / jnp.sqrt(var + eps)
        weights.append(w * s[:, None])                             # (c_out, c_in)
        shifts.append(((b_conv - mean) * s + beta).reshape(c_out, 1))
    return weights, shifts


# ---------------------------------------------------------------------------
# Pure-JAX reference (same numerics: f32 layer 1, bf16 MXU / f32 acc after)
# ---------------------------------------------------------------------------
def _reference(agg_feat, geo_feat, params_feat, params_geo):
    def branch(x, weights, shifts):
        Pn, Mn, C = x.shape
        h = x.reshape(Pn * Mn, C)
        for i, (w, b) in enumerate(zip(weights, shifts)):
            if i == 0:
                acc = h @ w.T + b.T
            else:
                acc = jnp.dot(h.astype(jnp.bfloat16), w.T.astype(jnp.bfloat16),
                              preferred_element_type=jnp.float32) + b.T
            h = jnp.maximum(acc, 0.0)
        return jnp.max(h.reshape(Pn, Mn, -1), axis=1)

    hf = branch(agg_feat, *params_feat)
    hg = branch(geo_feat, *params_geo)
    return jnp.concatenate([hf, hg], axis=0)


if __name__ == "__main__":
    key = jax.random.PRNGKey(0)
    B, N, M = 2, 256, 8           # batch, sampled nodes per batch, neighbors
    sizes = [4, 32, 32]           # Grid_GCN_Conv(sizes, batch_size=B)
    P = B * N                     # total nodes across the batch

    k_feat, k_geo, k_pf, k_pg = jax.random.split(key, 4)
    agg_feat = jax.random.normal(k_feat, (P, M, sizes[0]), jnp.float32)
    geo_feat = jax.random.normal(k_geo, (P, M, 6), jnp.float32)

    params_feat = init_branch(k_pf, sizes)             # conv / bn
    params_geo = init_branch(k_pg, [6] + sizes[1:])    # conv_geo / bn_geo (6->32)

    fwd = jax.jit(grid_gcn_conv_forward)
    out = jax.block_until_ready(fwd(agg_feat, geo_feat, params_feat, params_geo))
    assert out.shape == (2 * P, sizes[-1]) and out.dtype == jnp.float32

    ref = jax.block_until_ready(
        _reference(agg_feat, geo_feat, params_feat, params_geo))
    assert np.allclose(np.asarray(out), np.asarray(ref), rtol=2e-2, atol=2e-2)
    print("KERNEL_OK")
</pallas_src>

<mosaic_0001>
module attributes {stable_mosaic.version = 11 : i64} {
  func.func @_fused_kernel(%arg0: i32, %arg1: memref<8x4x256xf32, #tpu.memory_space<vmem>>, %arg2: memref<8x6x256xf32, #tpu.memory_space<vmem>>, %arg3: memref<32x4xf32, #tpu.memory_space<vmem>>, %arg4: memref<32x1xf32, #tpu.memory_space<vmem>>, %arg5: memref<32x6xf32, #tpu.memory_space<vmem>>, %arg6: memref<32x1xf32, #tpu.memory_space<vmem>>, %arg7: memref<64x64xbf16, #tpu.memory_space<vmem>>, %arg8: memref<64x1xf32, #tpu.memory_space<vmem>>, %arg9: memref<64x256xf32, #tpu.memory_space<vmem>>) attributes {dimension_semantics = [#tpu.dimension_semantics<parallel>], iteration_bounds = array<i64: 2>, scalar_prefetch = 0 : i64, scratch_operands = 0 : i64, tpu.core_type = #tpu.core_type<tc>, window_params = [{transform_indices = @transform_0, window_bounds = array<i64: 8, 4, 256>}, {transform_indices = @transform_1, window_bounds = array<i64: 8, 6, 256>}, {pipeline_mode = #tpu.pipeline_mode<synchronous>, transform_indices = @transform_2, window_bounds = array<i64: 32, 4>}, {pipeline_mode = #tpu.pipeline_mode<synchronous>, transform_indices = @transform_3, window_bounds = array<i64: 32, 1>}, {pipeline_mode = #tpu.pipeline_mode<synchronous>, transform_indices = @transform_4, window_bounds = array<i64: 32, 6>}, {pipeline_mode = #tpu.pipeline_mode<synchronous>, transform_indices = @transform_5, window_bounds = array<i64: 32, 1>}, {pipeline_mode = #tpu.pipeline_mode<synchronous>, transform_indices = @transform_6, window_bounds = array<i64: 64, 64>}, {pipeline_mode = #tpu.pipeline_mode<synchronous>, transform_indices = @transform_7, window_bounds = array<i64: 64, 1>}, {transform_indices = @transform_8, window_bounds = array<i64: 64, 256>}]} {
    %c0 = arith.constant 0 : index
    %c0_0 = arith.constant 0 : index
    %0 = vector.load %arg3[%c0, %c0_0] : memref<32x4xf32, #tpu.memory_space<vmem>>, vector<32x4xf32>
    %c0_1 = arith.constant 0 : index
    %c0_2 = arith.constant 0 : index
    %1 = vector.load %arg4[%c0_1, %c0_2] : memref<32x1xf32, #tpu.memory_space<vmem>>, vector<32x1xf32>
    %c0_3 = arith.constant 0 : index
    %c0_4 = arith.constant 0 : index
    %2 = vector.load %arg5[%c0_3, %c0_4] : memref<32x6xf32, #tpu.memory_space<vmem>>, vector<32x6xf32>
    %c0_5 = arith.constant 0 : index
    %c0_6 = arith.constant 0 : index
    %3 = vector.load %arg6[%c0_5, %c0_6] : memref<32x1xf32, #tpu.memory_space<vmem>>, vector<32x1xf32>
    %c0_7 = arith.constant 0 : index
    %c0_8 = arith.constant 0 : index
    %4 = vector.load %arg7[%c0_7, %c0_8] : memref<64x64xbf16, #tpu.memory_space<vmem>>, vector<64x64xbf16>
    %c0_9 = arith.constant 0 : index
    %c0_10 = arith.constant 0 : index
    %5 = vector.load %arg8[%c0_9, %c0_10] : memref<64x1xf32, #tpu.memory_space<vmem>>, vector<64x1xf32>
    %c0_11 = arith.constant 0 : index
    %c0_12 = arith.constant 0 : index
    %c0_13 = arith.constant 0 : index
    %6 = vector.load %arg1[%c0_11, %c0_12, %c0_13] : memref<8x4x256xf32, #tpu.memory_space<vmem>>, vector<1x4x256xf32>
    %7 = vector.shape_cast %6 : vector<1x4x256xf32> to vector<4x256xf32>
    %c0_14 = arith.constant 0 : index
    %c0_15 = arith.constant 0 : index
    %c0_16 = arith.constant 0 : index
    %8 = vector.load %arg2[%c0_14, %c0_15, %c0_16] : memref<8x6x256xf32, #tpu.memory_space<vmem>>, vector<1x6x256xf32>
    %9 = vector.shape_cast %8 : vector<1x6x256xf32> to vector<6x256xf32>
    %10 = vector.extract_strided_slice %0 {offsets = [0, 0], sizes = [32, 1], strides = [1, 1]} : vector<32x4xf32> to vector<32x1xf32>
    %11 = vector.extract_strided_slice %7 {offsets = [0, 0], sizes = [1, 256], strides = [1, 1]} : vector<4x256xf32> to vector<1x256xf32>
    %12 = vector.broadcast %10 : vector<32x1xf32> to vector<32x256xf32>
    %13 = vector.broadcast %11 : vector<1x256xf32> to vector<32x256xf32>
    %14 = arith.mulf %12, %13 : vector<32x256xf32>
    %15 = vector.broadcast %1 : vector<32x1xf32> to vector<32x256xf32>
    %16 = arith.addf %15, %14 : vector<32x256xf32>
    %17 = vector.extract_strided_slice %0 {offsets = [0, 1], sizes = [32, 1], strides = [1, 1]} : vector<32x4xf32> to vector<32x1xf32>
    %18 = vector.extract_strided_slice %7 {offsets = [1, 0], sizes = [1, 256], strides = [1, 1]} : vector<4x256xf32> to vector<1x256xf32>
    %19 = vector.broadcast %17 : vector<32x1xf32> to vector<32x256xf32>
    %20 = vector.broadcast %18 : vector<1x256xf32> to vector<32x256xf32>
    %21 = arith.mulf %19, %20 : vector<32x256xf32>
    %22 = arith.addf %16, %21 : vector<32x256xf32>
    %23 = vector.extract_strided_slice %0 {offsets = [0, 2], sizes = [32, 1], strides = [1, 1]} : vector<32x4xf32> to vector<32x1xf32>
    %24 = vector.extract_strided_slice %7 {offsets = [2, 0], sizes = [1, 256], strides = [1, 1]} : vector<4x256xf32> to vector<1x256xf32>
    %25 = vector.broadcast %23 : vector<32x1xf32> to vector<32x256xf32>
    %26 = vector.broadcast %24 : vector<1x256xf32> to vector<32x256xf32>
    %27 = arith.mulf %25, %26 : vector<32x256xf32>
    %28 = arith.addf %22, %27 : vector<32x256xf32>
    %29 = vector.extract_strided_slice %0 {offsets = [0, 3], sizes = [32, 1], strides = [1, 1]} : vector<32x4xf32> to vector<32x1xf32>
    %30 = vector.extract_strided_slice %7 {offsets = [3, 0], sizes = [1, 256], strides = [1, 1]} : vector<4x256xf32> to vector<1x256xf32>
    %31 = vector.broadcast %29 : vector<32x1xf32> to vector<32x256xf32>
    %32 = vector.broadcast %30 : vector<1x256xf32> to vector<32x256xf32>
    %33 = arith.mulf %31, %32 : vector<32x256xf32>
    %34 = arith.addf %28, %33 : vector<32x256xf32>
    %35 = vector.extract_strided_slice %2 {offsets = [0, 0], sizes = [32, 1], strides = [1, 1]} : vector<32x6xf32> to vector<32x1xf32>
    %36 = vector.extract_strided_slice %9 {offsets = [0, 0], sizes = [1, 256], strides = [1, 1]} : vector<6x256xf32> to vector<1x256xf32>
    %37 = vector.broadcast %35 : vector<32x1xf32> to vector<32x256xf32>
    %38 = vector.broadcast %36 : vector<1x256xf32> to vector<32x256xf32>
    %39 = arith.mulf %37, %38 : vector<32x256xf32>
    %40 = vector.broadcast %3 : vector<32x1xf32> to vector<32x256xf32>
    %41 = arith.addf %40, %39 : vector<32x256xf32>
    %42 = vector.extract_strided_slice %2 {offsets = [0, 1], sizes = [32, 1], strides = [1, 1]} : vector<32x6xf32> to vector<32x1xf32>
    %43 = vector.extract_strided_slice %9 {offsets = [1, 0], sizes = [1, 256], strides = [1, 1]} : vector<6x256xf32> to vector<1x256xf32>
    %44 = vector.broadcast %42 : vector<32x1xf32> to vector<32x256xf32>
    %45 = vector.broadcast %43 : vector<1x256xf32> to vector<32x256xf32>
    %46 = arith.mulf %44, %45 : vector<32x256xf32>
    %47 = arith.addf %41, %46 : vector<32x256xf32>
    %48 = vector.extract_strided_slice %2 {offsets = [0, 2], sizes = [32, 1], strides = [1, 1]} : vector<32x6xf32> to vector<32x1xf32>
    %49 = vector.extract_strided_slice %9 {offsets = [2, 0], sizes = [1, 256], strides = [1, 1]} : vector<6x256xf32> to vector<1x256xf32>
    %50 = vector.broadcast %48 : vector<32x1xf32> to vector<32x256xf32>
    %51 = vector.broadcast %49 : vector<1x256xf32> to vector<32x256xf32>
    %52 = arith.mulf %50, %51 : vector<32x256xf32>
    %53 = arith.addf %47, %52 : vector<32x256xf32>
    %54 = vector.extract_strided_slice %2 {offsets = [0, 3], sizes = [32, 1], strides = [1, 1]} : vector<32x6xf32> to vector<32x1xf32>
    %55 = vector.extract_strided_slice %9 {offsets = [3, 0], sizes = [1, 256], strides = [1, 1]} : vector<6x256xf32> to vector<1x256xf32>
    %56 = vector.broadcast %54 : vector<32x1xf32> to vector<32x256xf32>
    %57 = vector.broadcast %55 : vector<1x256xf32> to vector<32x256xf32>
    %58 = arith.mulf %56, %57 : vector<32x256xf32>
    %59 = arith.addf %53, %58 : vector<32x256xf32>
    %60 = vector.extract_strided_slice %2 {offsets = [0, 4], sizes = [32, 1], strides = [1, 1]} : vector<32x6xf32> to vector<32x1xf32>
    %61 = vector.extract_strided_slice %9 {offsets = [4, 0], sizes = [1, 256], strides = [1, 1]} : vector<6x256xf32> to vector<1x256xf32>
    %62 = vector.broadcast %60 : vector<32x1xf32> to vector<32x256xf32>
    %63 = vector.broadcast %61 : vector<1x256xf32> to vector<32x256xf32>
    %64 = arith.mulf %62, %63 : vector<32x256xf32>
    %65 = arith.addf %59, %64 : vector<32x256xf32>
    %66 = vector.extract_strided_slice %2 {offsets = [0, 5], sizes = [32, 1], strides = [1, 1]} : vector<32x6xf32> to vector<32x1xf32>
    %67 = vector.extract_strided_slice %9 {offsets = [5, 0], sizes = [1, 256], strides = [1, 1]} : vector<6x256xf32> to vector<1x256xf32>
    %68 = vector.broadcast %66 : vector<32x1xf32> to vector<32x256xf32>
    %69 = vector.broadcast %67 : vector<1x256xf32> to vector<32x256xf32>
    %70 = arith.mulf %68, %69 : vector<32x256xf32>
    %71 = arith.addf %65, %70 : vector<32x256xf32>
    %72 = tpu.concatenate %34, %71 in 0 : vector<32x256xf32>, vector<32x256xf32> -> vector<64x256xf32>
    %cst = arith.constant 0.000000e+00 : f32
    %73 = vector.broadcast %cst : f32 to vector<64x256xf32>
    %74 = arith.maximumf %72, %73 : vector<64x256xf32>
    %75 = arith.truncf %74 : vector<64x256xf32> to vector<64x256xbf16>
    %cst_17 = arith.constant dense<0.000000e+00> : vector<64x256xf32>
    %76 = tpu.matmul %4, %75, %cst_17 {dimension_numbers = #tpu.dot_dimension_numbers<[1], [0], [0], [1], [0, 0, 1, 1], [], []>} : vector<64x64xbf16>, vector<64x256xbf16>, vector<64x256xf32> -> vector<64x256xf32>
    %77 = vector.broadcast %5 : vector<64x1xf32> to vector<64x256xf32>
    %78 = arith.addf %76, %77 : vector<64x256xf32>
    %cst_18 = arith.constant 0.000000e+00 : f32
    %79 = vector.broadcast %cst_18 : f32 to vector<64x256xf32>
    %80 = arith.maximumf %78, %79 : vector<64x256xf32>
    %c1 = arith.constant 1 : index
    %c0_19 = arith.constant 0 : index
    %c0_20 = arith.constant 0 : index
    %81 = vector.load %arg1[%c1, %c0_19, %c0_20] : memref<8x4x256xf32, #tpu.memory_space<vmem>>, vector<1x4x256xf32>
    %82 = vector.shape_cast %81 : vector<1x4x256xf32> to vector<4x256xf32>
    %c1_21 = arith.constant 1 : index
    %c0_22 = arith.constant 0 : index
    %c0_23 = arith.constant 0 : index
    %83 = vector.load %arg2[%c1_21, %c0_22, %c0_23] : memref<8x6x256xf32, #tpu.memory_space<vmem>>, vector<1x6x256xf32>
    %84 = vector.shape_cast %83 : vector<1x6x256xf32> to vector<6x256xf32>
    %85 = vector.extract_strided_slice %0 {offsets = [0, 0], sizes = [32, 1], strides = [1, 1]} : vector<32x4xf32> to vector<32x1xf32>
    %86 = vector.extract_strided_slice %82 {offsets = [0, 0], sizes = [1, 256], strides = [1, 1]} : vector<4x256xf32> to vector<1x256xf32>
    %87 = vector.broadcast %85 : vector<32x1xf32> to vector<32x256xf32>
    %88 = vector.broadcast %86 : vector<1x256xf32> to vector<32x256xf32>
    %89 = arith.mulf %87, %88 : vector<32x256xf32>
    %90 = vector.broadcast %1 : vector<32x1xf32> to vector<32x256xf32>
    %91 = arith.addf %90, %89 : vector<32x256xf32>
    %92 = vector.extract_strided_slice %0 {offsets = [0, 1], sizes = [32, 1], strides = [1, 1]} : vector<32x4xf32> to vector<32x1xf32>
    %93 = vector.extract_strided_slice %82 {offsets = [1, 0], sizes = [1, 256], strides = [1, 1]} : vector<4x256xf32> to vector<1x256xf32>
    %94 = vector.broadcast %92 : vector<32x1xf32> to vector<32x256xf32>
    %95 = vector.broadcast %93 : vector<1x256xf32> to vector<32x256xf32>
    %96 = arith.mulf %94, %95 : vector<32x256xf32>
    %97 = arith.addf %91, %96 : vector<32x256xf32>
    %98 = vector.extract_strided_slice %0 {offsets = [0, 2], sizes = [32, 1], strides = [1, 1]} : vector<32x4xf32> to vector<32x1xf32>
    %99 = vector.extract_strided_slice %82 {offsets = [2, 0], sizes = [1, 256], strides = [1, 1]} : vector<4x256xf32> to vector<1x256xf32>
    %100 = vector.broadcast %98 : vector<32x1xf32> to vector<32x256xf32>
    %101 = vector.broadcast %99 : vector<1x256xf32> to vector<32x256xf32>
    %102 = arith.mulf %100, %101 : vector<32x256xf32>
    %103 = arith.addf %97, %102 : vector<32x256xf32>
    %104 = vector.extract_strided_slice %0 {offsets = [0, 3], sizes = [32, 1], strides = [1, 1]} : vector<32x4xf32> to vector<32x1xf32>
    %105 = vector.extract_strided_slice %82 {offsets = [3, 0], sizes = [1, 256], strides = [1, 1]} : vector<4x256xf32> to vector<1x256xf32>
    %106 = vector.broadcast %104 : vector<32x1xf32> to vector<32x256xf32>
    %107 = vector.broadcast %105 : vector<1x256xf32> to vector<32x256xf32>
    %108 = arith.mulf %106, %107 : vector<32x256xf32>
    %109 = arith.addf %103, %108 : vector<32x256xf32>
    %110 = vector.extract_strided_slice %2 {offsets = [0, 0], sizes = [32, 1], strides = [1, 1]} : vector<32x6xf32> to vector<32x1xf32>
    %111 = vector.extract_strided_slice %84 {offsets = [0, 0], sizes = [1, 256], strides = [1, 1]} : vector<6x256xf32> to vector<1x256xf32>
    %112 = vector.broadcast %110 : vector<32x1xf32> to vector<32x256xf32>
    %113 = vector.broadcast %111 : vector<1x256xf32> to vector<32x256xf32>
    %114 = arith.mulf %112, %113 : vector<32x256xf32>
    %115 = vector.broadcast %3 : vector<32x1xf32> to vector<32x256xf32>
    %116 = arith.addf %115, %114 : vector<32x256xf32>
    %117 = vector.extract_strided_slice %2 {offsets = [0, 1], sizes = [32, 1], strides = [1, 1]} : vector<32x6xf32> to vector<32x1xf32>
    %118 = vector.extract_strided_slice %84 {offsets = [1, 0], sizes = [1, 256], strides = [1, 1]} : vector<6x256xf32> to vector<1x256xf32>
    %119 = vector.broadcast %117 : vector<32x1xf32> to vector<32x256xf32>
    %120 = vector.broadcast %118 : vector<1x256xf32> to vector<32x256xf32>
    %121 = arith.mulf %119, %120 : vector<32x256xf32>
    %122 = arith.addf %116, %121 : vector<32x256xf32>
    %123 = vector.extract_strided_slice %2 {offsets = [0, 2], sizes = [32, 1], strides = [1, 1]} : vector<32x6xf32> to vector<32x1xf32>
    %124 = vector.extract_strided_slice %84 {offsets = [2, 0], sizes = [1, 256], strides = [1, 1]} : vector<6x256xf32> to vector<1x256xf32>
    %125 = vector.broadcast %123 : vector<32x1xf32> to vector<32x256xf32>
    %126 = vector.broadcast %124 : vector<1x256xf32> to vector<32x256xf32>
    %127 = arith.mulf %125, %126 : vector<32x256xf32>
    %128 = arith.addf %122, %127 : vector<32x256xf32>
    %129 = vector.extract_strided_slice %2 {offsets = [0, 3], sizes = [32, 1], strides = [1, 1]} : vector<32x6xf32> to vector<32x1xf32>
    %130 = vector.extract_strided_slice %84 {offsets = [3, 0], sizes = [1, 256], strides = [1, 1]} : vector<6x256xf32> to vector<1x256xf32>
    %131 = vector.broadcast %129 : vector<32x1xf32> to vector<32x256xf32>
    %132 = vector.broadcast %130 : vector<1x256xf32> to vector<32x256xf32>
    %133 = arith.mulf %131, %132 : vector<32x256xf32>
    %134 = arith.addf %128, %133 : vector<32x256xf32>
    %135 = vector.extract_strided_slice %2 {offsets = [0, 4], sizes = [32, 1], strides = [1, 1]} : vector<32x6xf32> to vector<32x1xf32>
    %136 = vector.extract_strided_slice %84 {offsets = [4, 0], sizes = [1, 256], strides = [1, 1]} : vector<6x256xf32> to vector<1x256xf32>
    %137 = vector.broadcast %135 : vector<32x1xf32> to vector<32x256xf32>
    %138 = vector.broadcast %136 : vector<1x256xf32> to vector<32x256xf32>
    %139 = arith.mulf %137, %138 : vector<32x256xf32>
    %140 = arith.addf %134, %139 : vector<32x256xf32>
    %141 = vector.extract_strided_slice %2 {offsets = [0, 5], sizes = [32, 1], strides = [1, 1]} : vector<32x6xf32> to vector<32x1xf32>
    %142 = vector.extract_strided_slice %84 {offsets = [5, 0], sizes = [1, 256], strides = [1, 1]} : vector<6x256xf32> to vector<1x256xf32>
    %143 = vector.broadcast %141 : vector<32x1xf32> to vector<32x256xf32>
    %144 = vector.broadcast %142 : vector<1x256xf32> to vector<32x256xf32>
    %145 = arith.mulf %143, %144 : vector<32x256xf32>
    %146 = arith.addf %140, %145 : vector<32x256xf32>
    %147 = tpu.concatenate %109, %146 in 0 : vector<32x256xf32>, vector<32x256xf32> -> vector<64x256xf32>
    %cst_24 = arith.constant 0.000000e+00 : f32
    %148 = vector.broadcast %cst_24 : f32 to vector<64x256xf32>
    %149 = arith.maximumf %147, %148 : vector<64x256xf32>
    %150 = arith.truncf %149 : vector<64x256xf32> to vector<64x256xbf16>
    %cst_25 = arith.constant dense<0.000000e+00> : vector<64x256xf32>
    %151 = tpu.matmul %4, %150, %cst_25 {dimension_numbers = #tpu.dot_dimension_numbers<[1], [0], [0], [1], [0, 0, 1, 1], [], []>} : vector<64x64xbf16>, vector<64x256xbf16>, vector<64x256xf32> -> vector<64x256xf32>
    %152 = vector.broadcast %5 : vector<64x1xf32> to vector<64x256xf32>
    %153 = arith.addf %151, %152 : vector<64x256xf32>
    %cst_26 = arith.constant 0.000000e+00 : f32
    %154 = vector.broadcast %cst_26 : f32 to vector<64x256xf32>
    %155 = arith.maximumf %153, %154 : vector<64x256xf32>
    %156 = arith.maximumf %80, %155 : vector<64x256xf32>
    %c2 = arith.constant 2 : index
    %c0_27 = arith.constant 0 : index
    %c0_28 = arith.constant 0 : index
    %157 = vector.load %arg1[%c2, %c0_27, %c0_28] : memref<8x4x256xf32, #tpu.memory_space<vmem>>, vector<1x4x256xf32>
    %158 = vector.shape_cast %157 : vector<1x4x256xf32> to vector<4x256xf32>
    %c2_29 = arith.constant 2 : index
    %c0_30 = arith.constant 0 : index
    %c0_31 = arith.constant 0 : index
    %159 = vector.load %arg2[%c2_29, %c0_30, %c0_31] : memref<8x6x256xf32, #tpu.memory_space<vmem>>, vector<1x6x256xf32>
    %160 = vector.shape_cast %159 : vector<1x6x256xf32> to vector<6x256xf32>
    %161 = vector.extract_strided_slice %0 {offsets = [0, 0], sizes = [32, 1], strides = [1, 1]} : vector<32x4xf32> to vector<32x1xf32>
    %162 = vector.extract_strided_slice %158 {offsets = [0, 0], sizes = [1, 256], strides = [1, 1]} : vector<4x256xf32> to vector<1x256xf32>
    %163 = vector.broadcast %161 : vector<32x1xf32> to vector<32x256xf32>
    %164 = vector.broadcast %162 : vector<1x256xf32> to vector<32x256xf32>
    %165 = arith.mulf %163, %164 : vector<32x256xf32>
    %166 = vector.broadcast %1 : vector<32x1xf32> to vector<32x256xf32>
    %167 = arith.addf %166, %165 : vector<32x256xf32>
    %168 = vector.extract_strided_slice %0 {offsets = [0, 1], sizes = [32, 1], strides = [1, 1]} : vector<32x4xf32> to vector<32x1xf32>
    %169 = vector.extract_strided_slice %158 {offsets = [1, 0], sizes = [1, 256], strides = [1, 1]} : vector<4x256xf32> to vector<1x256xf32>
    %170 = vector.broadcast %168 : vector<32x1xf32> to vector<32x256xf32>
    %171 = vector.broadcast %169 : vector<1x256xf32> to vector<32x256xf32>
    %172 = arith.mulf %170, %171 : vector<32x256xf32>
    %173 = arith.addf %167, %172 : vector<32x256xf32>
    %174 = vector.extract_strided_slice %0 {offsets = [0, 2], sizes = [32, 1], strides = [1, 1]} : vector<32x4xf32> to vector<32x1xf32>
    %175 = vector.extract_strided_slice %158 {offsets = [2, 0], sizes = [1, 256], strides = [1, 1]} : vector<4x256xf32> to vector<1x256xf32>
    %176 = vector.broadcast %174 : vector<32x1xf32> to vector<32x256xf32>
    %177 = vector.broadcast %175 : vector<1x256xf32> to vector<32x256xf32>
    %178 = arith.mulf %176, %177 : vector<32x256xf32>
    %179 = arith.addf %173, %178 : vector<32x256xf32>
    %180 = vector.extract_strided_slice %0 {offsets = [0, 3], sizes = [32, 1], strides = [1, 1]} : vector<32x4xf32> to vector<32x1xf32>
    %181 = vector.extract_strided_slice %158 {offsets = [3, 0], sizes = [1, 256], strides = [1, 1]} : vector<4x256xf32> to vector<1x256xf32>
    %182 = vector.broadcast %180 : vector<32x1xf32> to vector<32x256xf32>
    %183 = vector.broadcast %181 : vector<1x256xf32> to vector<32x256xf32>
    %184 = arith.mulf %182, %183 : vector<32x256xf32>
    %185 = arith.addf %179, %184 : vector<32x256xf32>
    %186 = vector.extract_strided_slice %2 {offsets = [0, 0], sizes = [32, 1], strides = [1, 1]} : vector<32x6xf32> to vector<32x1xf32>
    %187 = vector.extract_strided_slice %160 {offsets = [0, 0], sizes = [1, 256], strides = [1, 1]} : vector<6x256xf32> to vector<1x256xf32>
    %188 = vector.broadcast %186 : vector<32x1xf32> to vector<32x256xf32>
    %189 = vector.broadcast %187 : vector<1x256xf32> to vector<32x256xf32>
    %190 = arith.mulf %188, %189 : vector<32x256xf32>
    %191 = vector.broadcast %3 : vector<32x1xf32> to vector<32x256xf32>
    %192 = arith.addf %191, %190 : vector<32x256xf32>
    %193 = vector.extract_strided_slice %2 {offsets = [0, 1], sizes = [32, 1], strides = [1, 1]} : vector<32x6xf32> to vector<32x1xf32>
    %194 = vector.extract_strided_slice %160 {offsets = [1, 0], sizes = [1, 256], strides = [1, 1]} : vector<6x256xf32> to vector<1x256xf32>
    %195 = vector.broadcast %193 : vector<32x1xf32> to vector<32x256xf32>
    %196 = vector.broadcast %194 : vector<1x256xf32> to vector<32x256xf32>
    %197 = arith.mulf %195, %196 : vector<32x256xf32>
    %198 = arith.addf %192, %197 : vector<32x256xf32>
    %199 = vector.extract_strided_slice %2 {offsets = [0, 2], sizes = [32, 1], strides = [1, 1]} : vector<32x6xf32> to vector<32x1xf32>
    %200 = vector.extract_strided_slice %160 {offsets = [2, 0], sizes = [1, 256], strides = [1, 1]} : vector<6x256xf32> to vector<1x256xf32>
    %201 = vector.broadcast %199 : vector<32x1xf32> to vector<32x256xf32>
    %202 = vector.broadcast %200 : vector<1x256xf32> to vector<32x256xf32>
    %203 = arith.mulf %201, %202 : vector<32x256xf32>
    %204 = arith.addf %198, %203 : vector<32x256xf32>
    %205 = vector.extract_strided_slice %2 {offsets = [0, 3], sizes = [32, 1], strides = [1, 1]} : vector<32x6xf32> to vector<32x1xf32>
    %206 = vector.extract_strided_slice %160 {offsets = [3, 0], sizes = [1, 256], strides = [1, 1]} : vector<6x256xf32> to vector<1x256xf32>
    %207 = vector.broadcast %205 : vector<32x1xf32> to vector<32x256xf32>
    %208 = vector.broadcast %206 : vector<1x256xf32> to vector<32x256xf32>
    %209 = arith.mulf %207, %208 : vector<32x256xf32>
    %210 = arith.addf %204, %209 : vector<32x256xf32>
    %211 = vector.extract_strided_slice %2 {offsets = [0, 4], sizes = [32, 1], strides = [1, 1]} : vector<32x6xf32> to vector<32x1xf32>
    %212 = vector.extract_strided_slice %160 {offsets = [4, 0], sizes = [1, 256], strides = [1, 1]} : vector<6x256xf32> to vector<1x256xf32>
    %213 = vector.broadcast %211 : vector<32x1xf32> to vector<32x256xf32>
    %214 = vector.broadcast %212 : vector<1x256xf32> to vector<32x256xf32>
    %215 = arith.mulf %213, %214 : vector<32x256xf32>
    %216 = arith.addf %210, %215 : vector<32x256xf32>
    %217 = vector.extract_strided_slice %2 {offsets = [0, 5], sizes = [32, 1], strides = [1, 1]} : vector<32x6xf32> to vector<32x1xf32>
    %218 = vector.extract_strided_slice %160 {offsets = [5, 0], sizes = [1, 256], strides = [1, 1]} : vector<6x256xf32> to vector<1x256xf32>
    %219 = vector.broadcast %217 : vector<32x1xf32> to vector<32x256xf32>
    %220 = vector.broadcast %218 : vector<1x256xf32> to vector<32x256xf32>
    %221 = arith.mulf %219, %220 : vector<32x256xf32>
    %222 = arith.addf %216, %221 : vector<32x256xf32>
    %223 = tpu.concatenate %185, %222 in 0 : vector<32x256xf32>, vector<32x256xf32> -> vector<64x256xf32>
    %cst_32 = arith.constant 0.000000e+00 : f32
    %224 = vector.broadcast %cst_32 : f32 to vector<64x256xf32>
    %225 = arith.maximumf %223, %224 : vector<64x256xf32>
    %226 = arith.truncf %225 : vector<64x256xf32> to vector<64x256xbf16>
    %cst_33 = arith.constant dense<0.000000e+00> : vector<64x256xf32>
    %227 = tpu.matmul %4, %226, %cst_33 {dimension_numbers = #tpu.dot_dimension_numbers<[1], [0], [0], [1], [0, 0, 1, 1], [], []>} : vector<64x64xbf16>, vector<64x256xbf16>, vector<64x256xf32> -> vector<64x256xf32>
    %228 = vector.broadcast %5 : vector<64x1xf32> to vector<64x256xf32>
    %229 = arith.addf %227, %228 : vector<64x256xf32>
    %cst_34 = arith.constant 0.000000e+00 : f32
    %230 = vector.broadcast %cst_34 : f32 to vector<64x256xf32>
    %231 = arith.maximumf %229, %230 : vector<64x256xf32>
    %232 = arith.maximumf %156, %231 : vector<64x256xf32>
    %c3 = arith.constant 3 : index
    %c0_35 = arith.constant 0 : index
    %c0_36 = arith.constant 0 : index
    %233 = vector.load %arg1[%c3, %c0_35, %c0_36] : memref<8x4x256xf32, #tpu.memory_space<vmem>>, vector<1x4x256xf32>
    %234 = vector.shape_cast %233 : vector<1x4x256xf32> to vector<4x256xf32>
    %c3_37 = arith.constant 3 : index
    %c0_38 = arith.constant 0 : index
    %c0_39 = arith.constant 0 : index
    %235 = vector.load %arg2[%c3_37, %c0_38, %c0_39] : memref<8x6x256xf32, #tpu.memory_space<vmem>>, vector<1x6x256xf32>
    %236 = vector.shape_cast %235 : vector<1x6x256xf32> to vector<6x256xf32>
    %237 = vector.extract_strided_slice %0 {offsets = [0, 0], sizes = [32, 1], strides = [1, 1]} : vector<32x4xf32> to vector<32x1xf32>
    %238 = vector.extract_strided_slice %234 {offsets = [0, 0], sizes = [1, 256], strides = [1, 1]} : vector<4x256xf32> to vector<1x256xf32>
    %239 = vector.broadcast %237 : vector<32x1xf32> to vector<32x256xf32>
    %240 = vector.broadcast %238 : vector<1x256xf32> to vector<32x256xf32>
    %241 = arith.mulf %239, %240 : vector<32x256xf32>
    %242 = vector.broadcast %1 : vector<32x1xf32> to vector<32x256xf32>
    %243 = arith.addf %242, %241 : vector<32x256xf32>
    %244 = vector.extract_strided_slice %0 {offsets = [0, 1], sizes = [32, 1], strides = [1, 1]} : vector<32x4xf32> to vector<32x1xf32>
    %245 = vector.extract_strided_slice %234 {offsets = [1, 0], sizes = [1, 256], strides = [1, 1]} : vector<4x256xf32> to vector<1x256xf32>
    %246 = vector.broadcast %244 : vector<32x1xf32> to vector<32x256xf32>
    %247 = vector.broadcast %245 : vector<1x256xf32> to vector<32x256xf32>
    %248 = arith.mulf %246, %247 : vector<32x256xf32>
    %249 = arith.addf %243, %248 : vector<32x256xf32>
    %250 = vector.extract_strided_slice %0 {offsets = [0, 2], sizes = [32, 1], strides = [1, 1]} : vector<32x4xf32> to vector<32x1xf32>
    %251 = vector.extract_strided_slice %234 {offsets = [2, 0], sizes = [1, 256], strides = [1, 1]} : vector<4x256xf32> to vector<1x256xf32>
    %252 = vector.broadcast %250 : vector<32x1xf32> to vector<32x256xf32>
    %253 = vector.broadcast %251 : vector<1x256xf32> to vector<32x256xf32>
    %254 = arith.mulf %252, %253 : vector<32x256xf32>
    %255 = arith.addf %249, %254 : vector<32x256xf32>
    %256 = vector.extract_strided_slice %0 {offsets = [0, 3], sizes = [32, 1], strides = [1, 1]} : vector<32x4xf32> to vector<32x1xf32>
    %257 = vector.extract_strided_slice %234 {offsets = [3, 0], sizes = [1, 256], strides = [1, 1]} : vector<4x256xf32> to vector<1x256xf32>
    %258 = vector.broadcast %256 : vector<32x1xf32> to vector<32x256xf32>
    %259 = vector.broadcast %257 : vector<1x256xf32> to vector<32x256xf32>
    %260 = arith.mulf %258, %259 : vector<32x256xf32>
    %261 = arith.addf %255, %260 : vector<32x256xf32>
    %262 = vector.extract_strided_slice %2 {offsets = [0, 0], sizes = [32, 1], strides = [1, 1]} : vector<32x6xf32> to vector<32x1xf32>
    %263 = vector.extract_strided_slice %236 {offsets = [0, 0], sizes = [1, 256], strides = [1, 1]} : vector<6x256xf32> to vector<1x256xf32>
    %264 = vector.broadcast %262 : vector<32x1xf32> to vector<32x256xf32>
    %265 = vector.broadcast %263 : vector<1x256xf32> to vector<32x256xf32>
    %266 = arith.mulf %264, %265 : vector<32x256xf32>
    %267 = vector.broadcast %3 : vector<32x1xf32> to vector<32x256xf32>
    %268 = arith.addf %267, %266 : vector<32x256xf32>
    %269 = vector.extract_strided_slice %2 {offsets = [0, 1], sizes = [32, 1], strides = [1, 1]} : vector<32x6xf32> to vector<32x1xf32>
    %270 = vector.extract_strided_slice %236 {offsets = [1, 0], sizes = [1, 256], strides = [1, 1]} : vector<6x256xf32> to vector<1x256xf32>
    %271 = vector.broadcast %269 : vector<32x1xf32> to vector<32x256xf32>
    %272 = vector.broadcast %270 : vector<1x256xf32> to vector<32x256xf32>
    %273 = arith.mulf %271, %272 : vector<32x256xf32>
    %274 = arith.addf %268, %273 : vector<32x256xf32>
    %275 = vector.extract_strided_slice %2 {offsets = [0, 2], sizes = [32, 1], strides = [1, 1]} : vector<32x6xf32> to vector<32x1xf32>
    %276 = vector.extract_strided_slice %236 {offsets = [2, 0], sizes = [1, 256], strides = [1, 1]} : vector<6x256xf32> to vector<1x256xf32>
    %277 = vector.broadcast %275 : vector<32x1xf32> to vector<32x256xf32>
    %278 = vector.broadcast %276 : vector<1x256xf32> to vector<32x256xf32>
    %279 = arith.mulf %277, %278 : vector<32x256xf32>
    %280 = arith.addf %274, %279 : vector<32x256xf32>
    %281 = vector.extract_strided_slice %2 {offsets = [0, 3], sizes = [32, 1], strides = [1, 1]} : vector<32x6xf32> to vector<32x1xf32>
    %282 = vector.extract_strided_slice %236 {offsets = [3, 0], sizes = [1, 256], strides = [1, 1]} : vector<6x256xf32> to vector<1x256xf32>
    %283 = vector.broadcast %281 : vector<32x1xf32> to vector<32x256xf32>
    %284 = vector.broadcast %282 : vector<1x256xf32> to vector<32x256xf32>
    %285 = arith.mulf %283, %284 : vector<32x256xf32>
    %286 = arith.addf %280, %285 : vector<32x256xf32>
    %287 = vector.extract_strided_slice %2 {offsets = [0, 4], sizes = [32, 1], strides = [1, 1]} : vector<32x6xf32> to vector<32x1xf32>
    %288 = vector.extract_strided_slice %236 {offsets = [4, 0], sizes = [1, 256], strides = [1, 1]} : vector<6x256xf32> to vector<1x256xf32>
    %289 = vector.broadcast %287 : vector<32x1xf32> to vector<32x256xf32>
    %290 = vector.broadcast %288 : vector<1x256xf32> to vector<32x256xf32>
    %291 = arith.mulf %289, %290 : vector<32x256xf32>
    %292 = arith.addf %286, %291 : vector<32x256xf32>
    %293 = vector.extract_strided_slice %2 {offsets = [0, 5], sizes = [32, 1], strides = [1, 1]} : vector<32x6xf32> to vector<32x1xf32>
    %294 = vector.extract_strided_slice %236 {offsets = [5, 0], sizes = [1, 256], strides = [1, 1]} : vector<6x256xf32> to vector<1x256xf32>
    %295 = vector.broadcast %293 : vector<32x1xf32> to vector<32x256xf32>
    %296 = vector.broadcast %294 : vector<1x256xf32> to vector<32x256xf32>
    %297 = arith.mulf %295, %296 : vector<32x256xf32>
    %298 = arith.addf %292, %297 : vector<32x256xf32>
    %299 = tpu.concatenate %261, %298 in 0 : vector<32x256xf32>, vector<32x256xf32> -> vector<64x256xf32>
    %cst_40 = arith.constant 0.000000e+00 : f32
    %300 = vector.broadcast %cst_40 : f32 to vector<64x256xf32>
    %301 = arith.maximumf %299, %300 : vector<64x256xf32>
    %302 = arith.truncf %301 : vector<64x256xf32> to vector<64x256xbf16>
    %cst_41 = arith.constant dense<0.000000e+00> : vector<64x256xf32>
    %303 = tpu.matmul %4, %302, %cst_41 {dimension_numbers = #tpu.dot_dimension_numbers<[1], [0], [0], [1], [0, 0, 1, 1], [], []>} : vector<64x64xbf16>, vector<64x256xbf16>, vector<64x256xf32> -> vector<64x256xf32>
    %304 = vector.broadcast %5 : vector<64x1xf32> to vector<64x256xf32>
    %305 = arith.addf %303, %304 : vector<64x256xf32>
    %cst_42 = arith.constant 0.000000e+00 : f32
    %306 = vector.broadcast %cst_42 : f32 to vector<64x256xf32>
    %307 = arith.maximumf %305, %306 : vector<64x256xf32>
    %308 = arith.maximumf %232, %307 : vector<64x256xf32>
    %c4 = arith.constant 4 : index
    %c0_43 = arith.constant 0 : index
    %c0_44 = arith.constant 0 : index
    %309 = vector.load %arg1[%c4, %c0_43, %c0_44] : memref<8x4x256xf32, #tpu.memory_space<vmem>>, vector<1x4x256xf32>
    %310 = vector.shape_cast %309 : vector<1x4x256xf32> to vector<4x256xf32>
    %c4_45 = arith.constant 4 : index
    %c0_46 = arith.constant 0 : index
    %c0_47 = arith.constant 0 : index
    %311 = vector.load %arg2[%c4_45, %c0_46, %c0_47] : memref<8x6x256xf32, #tpu.memory_space<vmem>>, vector<1x6x256xf32>
    %312 = vector.shape_cast %311 : vector<1x6x256xf32> to vector<6x256xf32>
    %313 = vector.extract_strided_slice %0 {offsets = [0, 0], sizes = [32, 1], strides = [1, 1]} : vector<32x4xf32> to vector<32x1xf32>
    %314 = vector.extract_strided_slice %310 {offsets = [0, 0], sizes = [1, 256], strides = [1, 1]} : vector<4x256xf32> to vector<1x256xf32>
    %315 = vector.broadcast %313 : vector<32x1xf32> to vector<32x256xf32>
    %316 = vector.broadcast %314 : vector<1x256xf32> to vector<32x256xf32>
    %317 = arith.mulf %315, %316 : vector<32x256xf32>
    %318 = vector.broadcast %1 : vector<32x1xf32> to vector<32x256xf32>
    %319 = arith.addf %318, %317 : vector<32x256xf32>
    %320 = vector.extract_strided_slice %0 {offsets = [0, 1], sizes = [32, 1], strides = [1, 1]} : vector<32x4xf32> to vector<32x1xf32>
    %321 = vector.extract_strided_slice %310 {offsets = [1, 0], sizes = [1, 256], strides = [1, 1]} : vector<4x256xf32> to vector<1x256xf32>
    %322 = vector.broadcast %320 : vector<32x1xf32> to vector<32x256xf32>
    %323 = vector.broadcast %321 : vector<1x256xf32> to vector<32x256xf32>
    %324 = arith.mulf %322, %323 : vector<32x256xf32>
    %325 = arith.addf %319, %324 : vector<32x256xf32>
    %326 = vector.extract_strided_slice %0 {offsets = [0, 2], sizes = [32, 1], strides = [1, 1]} : vector<32x4xf32> to vector<32x1xf32>
    %327 = vector.extract_strided_slice %310 {offsets = [2, 0], sizes = [1, 256], strides = [1, 1]} : vector<4x256xf32> to vector<1x256xf32>
    %328 = vector.broadcast %326 : vector<32x1xf32> to vector<32x256xf32>
    %329 = vector.broadcast %327 : vector<1x256xf32> to vector<32x256xf32>
    %330 = arith.mulf %328, %329 : vector<32x256xf32>
    %331 = arith.addf %325, %330 : vector<32x256xf32>
    %332 = vector.extract_strided_slice %0 {offsets = [0, 3], sizes = [32, 1], strides = [1, 1]} : vector<32x4xf32> to vector<32x1xf32>
    %333 = vector.extract_strided_slice %310 {offsets = [3, 0], sizes = [1, 256], strides = [1, 1]} : vector<4x256xf32> to vector<1x256xf32>
    %334 = vector.broadcast %332 : vector<32x1xf32> to vector<32x256xf32>
    %335 = vector.broadcast %333 : vector<1x256xf32> to vector<32x256xf32>
    %336 = arith.mulf %334, %335 : vector<32x256xf32>
    %337 = arith.addf %331, %336 : vector<32x256xf32>
    %338 = vector.extract_strided_slice %2 {offsets = [0, 0], sizes = [32, 1], strides = [1, 1]} : vector<32x6xf32> to vector<32x1xf32>
    %339 = vector.extract_strided_slice %312 {offsets = [0, 0], sizes = [1, 256], strides = [1, 1]} : vector<6x256xf32> to vector<1x256xf32>
    %340 = vector.broadcast %338 : vector<32x1xf32> to vector<32x256xf32>
    %341 = vector.broadcast %339 : vector<1x256xf32> to vector<32x256xf32>
    %342 = arith.mulf %340, %341 : vector<32x256xf32>
    %343 = vector.broadcast %3 : vector<32x1xf32> to vector<32x256xf32>
    %344 = arith.addf %343, %342 : vector<32x256xf32>
    %345 = vector.extract_strided_slice %2 {offsets = [0, 1], sizes = [32, 1], strides = [1, 1]} : vector<32x6xf32> to vector<32x1xf32>
    %346 = vector.extract_strided_slice %312 {offsets = [1, 0], sizes = [1, 256], strides = [1, 1]} : vector<6x256xf32> to vector<1x256xf32>
    %347 = vector.broadcast %345 : vector<32x1xf32> to vector<32x256xf32>
    %348 = vector.broadcast %346 : vector<1x256xf32> to vector<32x256xf32>
    %349 = arith.mulf %347, %348 : vector<32x256xf32>
    %350 = arith.addf %344, %349 : vector<32x256xf32>
    %351 = vector.extract_strided_slice %2 {offsets = [0, 2], sizes = [32, 1], strides = [1, 1]} : vector<32x6xf32> to vector<32x1xf32>
    %352 = vector.extract_strided_slice %312 {offsets = [2, 0], sizes = [1, 256], strides = [1, 1]} : vector<6x256xf32> to vector<1x256xf32>
    %353 = vector.broadcast %351 : vector<32x1xf32> to vector<32x256xf32>
    %354 = vector.broadcast %352 : vector<1x256xf32> to vector<32x256xf32>
    %355 = arith.mulf %353, %354 : vector<32x256xf32>
    %356 = arith.addf %350, %355 : vector<32x256xf32>
    %357 = vector.extract_strided_slice %2 {offsets = [0, 3], sizes = [32, 1], strides = [1, 1]} : vector<32x6xf32> to vector<32x1xf32>
    %358 = vector.extract_strided_slice %312 {offsets = [3, 0], sizes = [1, 256], strides = [1, 1]} : vector<6x256xf32> to vector<1x256xf32>
    %359 = vector.broadcast %357 : vector<32x1xf32> to vector<32x256xf32>
    %360 = vector.broadcast %358 : vector<1x256xf32> to vector<32x256xf32>
    %361 = arith.mulf %359, %360 : vector<32x256xf32>
    %362 = arith.addf %356, %361 : vector<32x256xf32>
    %363 = vector.extract_strided_slice %2 {offsets = [0, 4], sizes = [32, 1], strides = [1, 1]} : vector<32x6xf32> to vector<32x1xf32>
    %364 = vector.extract_strided_slice %312 {offsets = [4, 0], sizes = [1, 256], strides = [1, 1]} : vector<6x256xf32> to vector<1x256xf32>
    %365 = vector.broadcast %363 : vector<32x1xf32> to vector<32x256xf32>
    %366 = vector.broadcast %364 : vector<1x256xf32> to vector<32x256xf32>
    %367 = arith.mulf %365, %366 : vector<32x256xf32>
    %368 = arith.addf %362, %367 : vector<32x256xf32>
    %369 = vector.extract_strided_slice %2 {offsets = [0, 5], sizes = [32, 1], strides = [1, 1]} : vector<32x6xf32> to vector<32x1xf32>
    %370 = vector.extract_strided_slice %312 {offsets = [5, 0], sizes = [1, 256], strides = [1, 1]} : vector<6x256xf32> to vector<1x256xf32>
    %371 = vector.broadcast %369 : vector<32x1xf32> to vector<32x256xf32>
    %372 = vector.broadcast %370 : vector<1x256xf32> to vector<32x256xf32>
    %373 = arith.mulf %371, %372 : vector<32x256xf32>
    %374 = arith.addf %368, %373 : vector<32x256xf32>
    %375 = tpu.concatenate %337, %374 in 0 : vector<32x256xf32>, vector<32x256xf32> -> vector<64x256xf32>
    %cst_48 = arith.constant 0.000000e+00 : f32
    %376 = vector.broadcast %cst_48 : f32 to vector<64x256xf32>
    %377 = arith.maximumf %375, %376 : vector<64x256xf32>
    %378 = arith.truncf %377 : vector<64x256xf32> to vector<64x256xbf16>
    %cst_49 = arith.constant dense<0.000000e+00> : vector<64x256xf32>
    %379 = tpu.matmul %4, %378, %cst_49 {dimension_numbers = #tpu.dot_dimension_numbers<[1], [0], [0], [1], [0, 0, 1, 1], [], []>} : vector<64x64xbf16>, vector<64x256xbf16>, vector<64x256xf32> -> vector<64x256xf32>
    %380 = vector.broadcast %5 : vector<64x1xf32> to vector<64x256xf32>
    %381 = arith.addf %379, %380 : vector<64x256xf32>
    %cst_50 = arith.constant 0.000000e+00 : f32
    %382 = vector.broadcast %cst_50 : f32 to vector<64x256xf32>
    %383 = arith.maximumf %381, %382 : vector<64x256xf32>
    %384 = arith.maximumf %308, %383 : vector<64x256xf32>
    %c5 = arith.constant 5 : index
    %c0_51 = arith.constant 0 : index
    %c0_52 = arith.constant 0 : index
    %385 = vector.load %arg1[%c5, %c0_51, %c0_52] : memref<8x4x256xf32, #tpu.memory_space<vmem>>, vector<1x4x256xf32>
    %386 = vector.shape_cast %385 : vector<1x4x256xf32> to vector<4x256xf32>
    %c5_53 = arith.constant 5 : index
    %c0_54 = arith.constant 0 : index
    %c0_55 = arith.constant 0 : index
    %387 = vector.load %arg2[%c5_53, %c0_54, %c0_55] : memref<8x6x256xf32, #tpu.memory_space<vmem>>, vector<1x6x256xf32>
    %388 = vector.shape_cast %387 : vector<1x6x256xf32> to vector<6x256xf32>
    %389 = vector.extract_strided_slice %0 {offsets = [0, 0], sizes = [32, 1], strides = [1, 1]} : vector<32x4xf32> to vector<32x1xf32>
    %390 = vector.extract_strided_slice %386 {offsets = [0, 0], sizes = [1, 256], strides = [1, 1]} : vector<4x256xf32> to vector<1x256xf32>
    %391 = vector.broadcast %389 : vector<32x1xf32> to vector<32x256xf32>
    %392 = vector.broadcast %390 : vector<1x256xf32> to vector<32x256xf32>
    %393 = arith.mulf %391, %392 : vector<32x256xf32>
    %394 = vector.broadcast %1 : vector<32x1xf32> to vector<32x256xf32>
    %395 = arith.addf %394, %393 : vector<32x256xf32>
    %396 = vector.extract_strided_slice %0 {offsets = [0, 1], sizes = [32, 1], strides = [1, 1]} : vector<32x4xf32> to vector<32x1xf32>
    %397 = vector.extract_strided_slice %386 {offsets = [1, 0], sizes = [1, 256], strides = [1, 1]} : vector<4x256xf32> to vector<1x256xf32>
    %398 = vector.broadcast %396 : vector<32x1xf32> to vector<32x256xf32>
    %399 = vector.broadcast %397 : vector<1x256xf32> to vector<32x256xf32>
    %400 = arith.mulf %398, %399 : vector<32x256xf32>
    %401 = arith.addf %395, %400 : vector<32x256xf32>
    %402 = vector.extract_strided_slice %0 {offsets = [0, 2], sizes = [32, 1], strides = [1, 1]} : vector<32x4xf32> to vector<32x1xf32>
    %403 = vector.extract_strided_slice %386 {offsets = [2, 0], sizes = [1, 256], strides = [1, 1]} : vector<4x256xf32> to vector<1x256xf32>
    %404 = vector.broadcast %402 : vector<32x1xf32> to vector<32x256xf32>
    %405 = vector.broadcast %403 : vector<1x256xf32> to vector<32x256xf32>
    %406 = arith.mulf %404, %405 : vector<32x256xf32>
    %407 = arith.addf %401, %406 : vector<32x256xf32>
    %408 = vector.extract_strided_slice %0 {offsets = [0, 3], sizes = [32, 1], strides = [1, 1]} : vector<32x4xf32> to vector<32x1xf32>
    %409 = vector.extract_strided_slice %386 {offsets = [3, 0], sizes = [1, 256], strides = [1, 1]} : vector<4x256xf32> to vector<1x256xf32>
    %410 = vector.broadcast %408 : vector<32x1xf32> to vector<32x256xf32>
    %411 = vector.broadcast %409 : vector<1x256xf32> to vector<32x256xf32>
    %412 = arith.mulf %410, %411 : vector<32x256xf32>
    %413 = arith.addf %407, %412 : vector<32x256xf32>
    %414 = vector.extract_strided_slice %2 {offsets = [0, 0], sizes = [32, 1], strides = [1, 1]} : vector<32x6xf32> to vector<32x1xf32>
    %415 = vector.extract_strided_slice %388 {offsets = [0, 0], sizes = [1, 256], strides = [1, 1]} : vector<6x256xf32> to vector<1x256xf32>
    %416 = vector.broadcast %414 : vector<32x1xf32> to vector<32x256xf32>
    %417 = vector.broadcast %415 : vector<1x256xf32> to vector<32x256xf32>
    %418 = arith.mulf %416, %417 : vector<32x256xf32>
    %419 = vector.broadcast %3 : vector<32x1xf32> to vector<32x256xf32>
    %420 = arith.addf %419, %418 : vector<32x256xf32>
    %421 = vector.extract_strided_slice %2 {offsets = [0, 1], sizes = [32, 1], strides = [1, 1]} : vector<32x6xf32> to vector<32x1xf32>
    %422 = vector.extract_strided_slice %388 {offsets = [1, 0], sizes = [1, 256], strides = [1, 1]} : vector<6x256xf32> to vector<1x256xf32>
    %423 = vector.broadcast %421 : vector<32x1xf32> to vector<32x256xf32>
    %424 = vector.broadcast %422 : vector<1x256xf32> to vector<32x256xf32>
    %425 = arith.mulf %423, %424 : vector<32x256xf32>
    %426 = arith.addf %420, %425 : vector<32x256xf32>
    %427 = vector.extract_strided_slice %2 {offsets = [0, 2], sizes = [32, 1], strides = [1, 1]} : vector<32x6xf32> to vector<32x1xf32>
    %428 = vector.extract_strided_slice %388 {offsets = [2, 0], sizes = [1, 256], strides = [1, 1]} : vector<6x256xf32> to vector<1x256xf32>
    %429 = vector.broadcast %427 : vector<32x1xf32> to vector<32x256xf32>
    %430 = vector.broadcast %428 : vector<1x256xf32> to vector<32x256xf32>
    %431 = arith.mulf %429, %430 : vector<32x256xf32>
    %432 = arith.addf %426, %431 : vector<32x256xf32>
    %433 = vector.extract_strided_slice %2 {offsets = [0, 3], sizes = [32, 1], strides = [1, 1]} : vector<32x6xf32> to vector<32x1xf32>
    %434 = vector.extract_strided_slice %388 {offsets = [3, 0], sizes = [1, 256], strides = [1, 1]} : vector<6x256xf32> to vector<1x256xf32>
    %435 = vector.broadcast %433 : vector<32x1xf32> to vector<32x256xf32>
    %436 = vector.broadcast %434 : vector<1x256xf32> to vector<32x256xf32>
    %437 = arith.mulf %435, %436 : vector<32x256xf32>
    %438 = arith.addf %432, %437 : vector<32x256xf32>
    %439 = vector.extract_strided_slice %2 {offsets = [0, 4], sizes = [32, 1], strides = [1, 1]} : vector<32x6xf32> to vector<32x1xf32>
    %440 = vector.extract_strided_slice %388 {offsets = [4, 0], sizes = [1, 256], strides = [1, 1]} : vector<6x256xf32> to vector<1x256xf32>
    %441 = vector.broadcast %439 : vector<32x1xf32> to vector<32x256xf32>
    %442 = vector.broadcast %440 : vector<1x256xf32> to vector<32x256xf32>
    %443 = arith.mulf %441, %442 : vector<32x256xf32>
    %444 = arith.addf %438, %443 : vector<32x256xf32>
    %445 = vector.extract_strided_slice %2 {offsets = [0, 5], sizes = [32, 1], strides = [1, 1]} : vector<32x6xf32> to vector<32x1xf32>
    %446 = vector.extract_strided_slice %388 {offsets = [5, 0], sizes = [1, 256], strides = [1, 1]} : vector<6x256xf32> to vector<1x256xf32>
    %447 = vector.broadcast %445 : vector<32x1xf32> to vector<32x256xf32>
    %448 = vector.broadcast %446 : vector<1x256xf32> to vector<32x256xf32>
    %449 = arith.mulf %447, %448 : vector<32x256xf32>
    %450 = arith.addf %444, %449 : vector<32x256xf32>
    %451 = tpu.concatenate %413, %450 in 0 : vector<32x256xf32>, vector<32x256xf32> -> vector<64x256xf32>
    %cst_56 = arith.constant 0.000000e+00 : f32
    %452 = vector.broadcast %cst_56 : f32 to vector<64x256xf32>
    %453 = arith.maximumf %451, %452 : vector<64x256xf32>
    %454 = arith.truncf %453 : vector<64x256xf32> to vector<64x256xbf16>
    %cst_57 = arith.constant dense<0.000000e+00> : vector<64x256xf32>
    %455 = tpu.matmul %4, %454, %cst_57 {dimension_numbers = #tpu.dot_dimension_numbers<[1], [0], [0], [1], [0, 0, 1, 1], [], []>} : vector<64x64xbf16>, vector<64x256xbf16>, vector<64x256xf32> -> vector<64x256xf32>
    %456 = vector.broadcast %5 : vector<64x1xf32> to vector<64x256xf32>
    %457 = arith.addf %455, %456 : vector<64x256xf32>
    %cst_58 = arith.constant 0.000000e+00 : f32
    %458 = vector.broadcast %cst_58 : f32 to vector<64x256xf32>
    %459 = arith.maximumf %457, %458 : vector<64x256xf32>
    %460 = arith.maximumf %384, %459 : vector<64x256xf32>
    %c6 = arith.constant 6 : index
    %c0_59 = arith.constant 0 : index
    %c0_60 = arith.constant 0 : index
    %461 = vector.load %arg1[%c6, %c0_59, %c0_60] : memref<8x4x256xf32, #tpu.memory_space<vmem>>, vector<1x4x256xf32>
    %462 = vector.shape_cast %461 : vector<1x4x256xf32> to vector<4x256xf32>
    %c6_61 = arith.constant 6 : index
    %c0_62 = arith.constant 0 : index
    %c0_63 = arith.constant 0 : index
    %463 = vector.load %arg2[%c6_61, %c0_62, %c0_63] : memref<8x6x256xf32, #tpu.memory_space<vmem>>, vector<1x6x256xf32>
    %464 = vector.shape_cast %463 : vector<1x6x256xf32> to vector<6x256xf32>
    %465 = vector.extract_strided_slice %0 {offsets = [0, 0], sizes = [32, 1], strides = [1, 1]} : vector<32x4xf32> to vector<32x1xf32>
    %466 = vector.extract_strided_slice %462 {offsets = [0, 0], sizes = [1, 256], strides = [1, 1]} : vector<4x256xf32> to vector<1x256xf32>
    %467 = vector.broadcast %465 : vector<32x1xf32> to vector<32x256xf32>
    %468 = vector.broadcast %466 : vector<1x256xf32> to vector<32x256xf32>
    %469 = arith.mulf %467, %468 : vector<32x256xf32>
    %470 = vector.broadcast %1 : vector<32x1xf32> to vector<32x256xf32>
    %471 = arith.addf %470, %469 : vector<32x256xf32>
    %472 = vector.extract_strided_slice %0 {offsets = [0, 1], sizes = [32, 1], strides = [1, 1]} : vector<32x4xf32> to vector<32x1xf32>
    %473 = vector.extract_strided_slice %462 {offsets = [1, 0], sizes = [1, 256], strides = [1, 1]} : vector<4x256xf32> to vector<1x256xf32>
    %474 = vector.broadcast %472 : vector<32x1xf32> to vector<32x256xf32>
    %475 = vector.broadcast %473 : vector<1x256xf32> to vector<32x256xf32>
    %476 = arith.mulf %474, %475 : vector<32x256xf32>
    %477 = arith.addf %471, %476 : vector<32x256xf32>
    %478 = vector.extract_strided_slice %0 {offsets = [0, 2], sizes = [32, 1], strides = [1, 1]} : vector<32x4xf32> to vector<32x1xf32>
    %479 = vector.extract_strided_slice %462 {offsets = [2, 0], sizes = [1, 256], strides = [1, 1]} : vector<4x256xf32> to vector<1x256xf32>
    %480 = vector.broadcast %478 : vector<32x1xf32> to vector<32x256xf32>
    %481 = vector.broadcast %479 : vector<1x256xf32> to vector<32x256xf32>
    %482 = arith.mulf %480, %481 : vector<32x256xf32>
    %483 = arith.addf %477, %482 : vector<32x256xf32>
    %484 = vector.extract_strided_slice %0 {offsets = [0, 3], sizes = [32, 1], strides = [1, 1]} : vector<32x4xf32> to vector<32x1xf32>
    %485 = vector.extract_strided_slice %462 {offsets = [3, 0], sizes = [1, 256], strides = [1, 1]} : vector<4x256xf32> to vector<1x256xf32>
    %486 = vector.broadcast %484 : vector<32x1xf32> to vector<32x256xf32>
    %487 = vector.broadcast %485 : vector<1x256xf32> to vector<32x256xf32>
    %488 = arith.mulf %486, %487 : vector<32x256xf32>
    %489 = arith.addf %483, %488 : vector<32x256xf32>
    %490 = vector.extract_strided_slice %2 {offsets = [0, 0], sizes = [32, 1], strides = [1, 1]} : vector<32x6xf32> to vector<32x1xf32>
    %491 = vector.extract_strided_slice %464 {offsets = [0, 0], sizes = [1, 256], strides = [1, 1]} : vector<6x256xf32> to vector<1x256xf32>
    %492 = vector.broadcast %490 : vector<32x1xf32> to vector<32x256xf32>
    %493 = vector.broadcast %491 : vector<1x256xf32> to vector<32x256xf32>
    %494 = arith.mulf %492, %493 : vector<32x256xf32>
    %495 = vector.broadcast %3 : vector<32x1xf32> to vector<32x256xf32>
    %496 = arith.addf %495, %494 : vector<32x256xf32>
    %497 = vector.extract_strided_slice %2 {offsets = [0, 1], sizes = [32, 1], strides = [1, 1]} : vector<32x6xf32> to vector<32x1xf32>
    %498 = vector.extract_strided_slice %464 {offsets = [1, 0], sizes = [1, 256], strides = [1, 1]} : vector<6x256xf32> to vector<1x256xf32>
    %499 = vector.broadcast %497 : vector<32x1xf32> to vector<32x256xf32>
    %500 = vector.broadcast %498 : vector<1x256xf32> to vector<32x256xf32>
    %501 = arith.mulf %499, %500 : vector<32x256xf32>
    %502 = arith.addf %496, %501 : vector<32x256xf32>
    %503 = vector.extract_strided_slice %2 {offsets = [0, 2], sizes = [32, 1], strides = [1, 1]} : vector<32x6xf32> to vector<32x1xf32>
    %504 = vector.extract_strided_slice %464 {offsets = [2, 0], sizes = [1, 256], strides = [1, 1]} : vector<6x256xf32> to vector<1x256xf32>
    %505 = vector.broadcast %503 : vector<32x1xf32> to vector<32x256xf32>
    %506 = vector.broadcast %504 : vector<1x256xf32> to vector<32x256xf32>
    %507 = arith.mulf %505, %506 : vector<32x256xf32>
    %508 = arith.addf %502, %507 : vector<32x256xf32>
    %509 = vector.extract_strided_slice %2 {offsets = [0, 3], sizes = [32, 1], strides = [1, 1]} : vector<32x6xf32> to vector<32x1xf32>
    %510 = vector.extract_strided_slice %464 {offsets = [3, 0], sizes = [1, 256], strides = [1, 1]} : vector<6x256xf32> to vector<1x256xf32>
    %511 = vector.broadcast %509 : vector<32x1xf32> to vector<32x256xf32>
    %512 = vector.broadcast %510 : vector<1x256xf32> to vector<32x256xf32>
    %513 = arith.mulf %511, %512 : vector<32x256xf32>
    %514 = arith.addf %508, %513 : vector<32x256xf32>
    %515 = vector.extract_strided_slice %2 {offsets = [0, 4], sizes = [32, 1], strides = [1, 1]} : vector<32x6xf32> to vector<32x1xf32>
    %516 = vector.extract_strided_slice %464 {offsets = [4, 0], sizes = [1, 256], strides = [1, 1]} : vector<6x256xf32> to vector<1x256xf32>
    %517 = vector.broadcast %515 : vector<32x1xf32> to vector<32x256xf32>
    %518 = vector.broadcast %516 : vector<1x256xf32> to vector<32x256xf32>
    %519 = arith.mulf %517, %518 : vector<32x256xf32>
    %520 = arith.addf %514, %519 : vector<32x256xf32>
    %521 = vector.extract_strided_slice %2 {offsets = [0, 5], sizes = [32, 1], strides = [1, 1]} : vector<32x6xf32> to vector<32x1xf32>
    %522 = vector.extract_strided_slice %464 {offsets = [5, 0], sizes = [1, 256], strides = [1, 1]} : vector<6x256xf32> to vector<1x256xf32>
    %523 = vector.broadcast %521 : vector<32x1xf32> to vector<32x256xf32>
    %524 = vector.broadcast %522 : vector<1x256xf32> to vector<32x256xf32>
    %525 = arith.mulf %523, %524 : vector<32x256xf32>
    %526 = arith.addf %520, %525 : vector<32x256xf32>
    %527 = tpu.concatenate %489, %526 in 0 : vector<32x256xf32>, vector<32x256xf32> -> vector<64x256xf32>
    %cst_64 = arith.constant 0.000000e+00 : f32
    %528 = vector.broadcast %cst_64 : f32 to vector<64x256xf32>
    %529 = arith.maximumf %527, %528 : vector<64x256xf32>
    %530 = arith.truncf %529 : vector<64x256xf32> to vector<64x256xbf16>
    %cst_65 = arith.constant dense<0.000000e+00> : vector<64x256xf32>
    %531 = tpu.matmul %4, %530, %cst_65 {dimension_numbers = #tpu.dot_dimension_numbers<[1], [0], [0], [1], [0, 0, 1, 1], [], []>} : vector<64x64xbf16>, vector<64x256xbf16>, vector<64x256xf32> -> vector<64x256xf32>
    %532 = vector.broadcast %5 : vector<64x1xf32> to vector<64x256xf32>
    %533 = arith.addf %531, %532 : vector<64x256xf32>
    %cst_66 = arith.constant 0.000000e+00 : f32
    %534 = vector.broadcast %cst_66 : f32 to vector<64x256xf32>
    %535 = arith.maximumf %533, %534 : vector<64x256xf32>
    %536 = arith.maximumf %460, %535 : vector<64x256xf32>
    %c7 = arith.constant 7 : index
    %c0_67 = arith.constant 0 : index
    %c0_68 = arith.constant 0 : index
    %537 = vector.load %arg1[%c7, %c0_67, %c0_68] : memref<8x4x256xf32, #tpu.memory_space<vmem>>, vector<1x4x256xf32>
    %538 = vector.shape_cast %537 : vector<1x4x256xf32> to vector<4x256xf32>
    %c7_69 = arith.constant 7 : index
    %c0_70 = arith.constant 0 : index
    %c0_71 = arith.constant 0 : index
    %539 = vector.load %arg2[%c7_69, %c0_70, %c0_71] : memref<8x6x256xf32, #tpu.memory_space<vmem>>, vector<1x6x256xf32>
    %540 = vector.shape_cast %539 : vector<1x6x256xf32> to vector<6x256xf32>
    %541 = vector.extract_strided_slice %0 {offsets = [0, 0], sizes = [32, 1], strides = [1, 1]} : vector<32x4xf32> to vector<32x1xf32>
    %542 = vector.extract_strided_slice %538 {offsets = [0, 0], sizes = [1, 256], strides = [1, 1]} : vector<4x256xf32> to vector<1x256xf32>
    %543 = vector.broadcast %541 : vector<32x1xf32> to vector<32x256xf32>
    %544 = vector.broadcast %542 : vector<1x256xf32> to vector<32x256xf32>
    %545 = arith.mulf %543, %544 : vector<32x256xf32>
    %546 = vector.broadcast %1 : vector<32x1xf32> to vector<32x256xf32>
    %547 = arith.addf %546, %545 : vector<32x256xf32>
    %548 = vector.extract_strided_slice %0 {offsets = [0, 1], sizes = [32, 1], strides = [1, 1]} : vector<32x4xf32> to vector<32x1xf32>
    %549 = vector.extract_strided_slice %538 {offsets = [1, 0], sizes = [1, 256], strides = [1, 1]} : vector<4x256xf32> to vector<1x256xf32>
    %550 = vector.broadcast %548 : vector<32x1xf32> to vector<32x256xf32>
    %551 = vector.broadcast %549 : vector<1x256xf32> to vector<32x256xf32>
    %552 = arith.mulf %550, %551 : vector<32x256xf32>
    %553 = arith.addf %547, %552 : vector<32x256xf32>
    %554 = vector.extract_strided_slice %0 {offsets = [0, 2], sizes = [32, 1], strides = [1, 1]} : vector<32x4xf32> to vector<32x1xf32>
    %555 = vector.extract_strided_slice %538 {offsets = [2, 0], sizes = [1, 256], strides = [1, 1]} : vector<4x256xf32> to vector<1x256xf32>
    %556 = vector.broadcast %554 : vector<32x1xf32> to vector<32x256xf32>
    %557 = vector.broadcast %555 : vector<1x256xf32> to vector<32x256xf32>
    %558 = arith.mulf %556, %557 : vector<32x256xf32>
    %559 = arith.addf %553, %558 : vector<32x256xf32>
    %560 = vector.extract_strided_slice %0 {offsets = [0, 3], sizes = [32, 1], strides = [1, 1]} : vector<32x4xf32> to vector<32x1xf32>
    %561 = vector.extract_strided_slice %538 {offsets = [3, 0], sizes = [1, 256], strides = [1, 1]} : vector<4x256xf32> to vector<1x256xf32>
    %562 = vector.broadcast %560 : vector<32x1xf32> to vector<32x256xf32>
    %563 = vector.broadcast %561 : vector<1x256xf32> to vector<32x256xf32>
    %564 = arith.mulf %562, %563 : vector<32x256xf32>
    %565 = arith.addf %559, %564 : vector<32x256xf32>
    %566 = vector.extract_strided_slice %2 {offsets = [0, 0], sizes = [32, 1], strides = [1, 1]} : vector<32x6xf32> to vector<32x1xf32>
    %567 = vector.extract_strided_slice %540 {offsets = [0, 0], sizes = [1, 256], strides = [1, 1]} : vector<6x256xf32> to vector<1x256xf32>
    %568 = vector.broadcast %566 : vector<32x1xf32> to vector<32x256xf32>
    %569 = vector.broadcast %567 : vector<1x256xf32> to vector<32x256xf32>
    %570 = arith.mulf %568, %569 : vector<32x256xf32>
    %571 = vector.broadcast %3 : vector<32x1xf32> to vector<32x256xf32>
    %572 = arith.addf %571, %570 : vector<32x256xf32>
    %573 = vector.extract_strided_slice %2 {offsets = [0, 1], sizes = [32, 1], strides = [1, 1]} : vector<32x6xf32> to vector<32x1xf32>
    %574 = vector.extract_strided_slice %540 {offsets = [1, 0], sizes = [1, 256], strides = [1, 1]} : vector<6x256xf32> to vector<1x256xf32>
    %575 = vector.broadcast %573 : vector<32x1xf32> to vector<32x256xf32>
    %576 = vector.broadcast %574 : vector<1x256xf32> to vector<32x256xf32>
    %577 = arith.mulf %575, %576 : vector<32x256xf32>
    %578 = arith.addf %572, %577 : vector<32x256xf32>
    %579 = vector.extract_strided_slice %2 {offsets = [0, 2], sizes = [32, 1], strides = [1, 1]} : vector<32x6xf32> to vector<32x1xf32>
    %580 = vector.extract_strided_slice %540 {offsets = [2, 0], sizes = [1, 256], strides = [1, 1]} : vector<6x256xf32> to vector<1x256xf32>
    %581 = vector.broadcast %579 : vector<32x1xf32> to vector<32x256xf32>
    %582 = vector.broadcast %580 : vector<1x256xf32> to vector<32x256xf32>
    %583 = arith.mulf %581, %582 : vector<32x256xf32>
    %584 = arith.addf %578, %583 : vector<32x256xf32>
    %585 = vector.extract_strided_slice %2 {offsets = [0, 3], sizes = [32, 1], strides = [1, 1]} : vector<32x6xf32> to vector<32x1xf32>
    %586 = vector.extract_strided_slice %540 {offsets = [3, 0], sizes = [1, 256], strides = [1, 1]} : vector<6x256xf32> to vector<1x256xf32>
    %587 = vector.broadcast %585 : vector<32x1xf32> to vector<32x256xf32>
    %588 = vector.broadcast %586 : vector<1x256xf32> to vector<32x256xf32>
    %589 = arith.mulf %587, %588 : vector<32x256xf32>
    %590 = arith.addf %584, %589 : vector<32x256xf32>
    %591 = vector.extract_strided_slice %2 {offsets = [0, 4], sizes = [32, 1], strides = [1, 1]} : vector<32x6xf32> to vector<32x1xf32>
    %592 = vector.extract_strided_slice %540 {offsets = [4, 0], sizes = [1, 256], strides = [1, 1]} : vector<6x256xf32> to vector<1x256xf32>
    %593 = vector.broadcast %591 : vector<32x1xf32> to vector<32x256xf32>
    %594 = vector.broadcast %592 : vector<1x256xf32> to vector<32x256xf32>
    %595 = arith.mulf %593, %594 : vector<32x256xf32>
    %596 = arith.addf %590, %595 : vector<32x256xf32>
    %597 = vector.extract_strided_slice %2 {offsets = [0, 5], sizes = [32, 1], strides = [1, 1]} : vector<32x6xf32> to vector<32x1xf32>
    %598 = vector.extract_strided_slice %540 {offsets = [5, 0], sizes = [1, 256], strides = [1, 1]} : vector<6x256xf32> to vector<1x256xf32>
    %599 = vector.broadcast %597 : vector<32x1xf32> to vector<32x256xf32>
    %600 = vector.broadcast %598 : vector<1x256xf32> to vector<32x256xf32>
    %601 = arith.mulf %599, %600 : vector<32x256xf32>
    %602 = arith.addf %596, %601 : vector<32x256xf32>
    %603 = tpu.concatenate %565, %602 in 0 : vector<32x256xf32>, vector<32x256xf32> -> vector<64x256xf32>
    %cst_72 = arith.constant 0.000000e+00 : f32
    %604 = vector.broadcast %cst_72 : f32 to vector<64x256xf32>
    %605 = arith.maximumf %603, %604 : vector<64x256xf32>
    %606 = arith.truncf %605 : vector<64x256xf32> to vector<64x256xbf16>
    %cst_73 = arith.constant dense<0.000000e+00> : vector<64x256xf32>
    %607 = tpu.matmul %4, %606, %cst_73 {dimension_numbers = #tpu.dot_dimension_numbers<[1], [0], [0], [1], [0, 0, 1, 1], [], []>} : vector<64x64xbf16>, vector<64x256xbf16>, vector<64x256xf32> -> vector<64x256xf32>
    %608 = vector.broadcast %5 : vector<64x1xf32> to vector<64x256xf32>
    %609 = arith.addf %607, %608 : vector<64x256xf32>
    %cst_74 = arith.constant 0.000000e+00 : f32
    %610 = vector.broadcast %cst_74 : f32 to vector<64x256xf32>
    %611 = arith.maximumf %609, %610 : vector<64x256xf32>
    %612 = arith.maximumf %536, %611 : vector<64x256xf32>
    %c0_75 = arith.constant 0 : index
    %c0_76 = arith.constant 0 : index
    %613 = vector.load %arg9[%c0_75, %c0_76] : memref<64x256xf32, #tpu.memory_space<vmem>>, vector<64x256xf32>
    tpu.vector_store %arg9[%c0_75, %c0_76], %612 {strides = array<i32>} : memref<64x256xf32, #tpu.memory_space<vmem>>, vector<64x256xf32>,
    return
  }
  func.func @transform_0(%arg0: i32) -> (i32, i32, i32) {
    %c0_i32 = arith.constant 0 : i32
    %c0_i32_0 = arith.constant 0 : i32
    %c0_i32_1 = arith.constant 0 : i32
    return %c0_i32, %c0_i32_0, %arg0 : i32, i32, i32
  }
  func.func @transform_1(%arg0: i32) -> (i32, i32, i32) {
    %c0_i32 = arith.constant 0 : i32
    %c0_i32_0 = arith.constant 0 : i32
    %c0_i32_1 = arith.constant 0 : i32
    return %c0_i32, %c0_i32_0, %arg0 : i32, i32, i32
  }
  func.func @transform_2(%arg0: i32) -> (i32, i32) {
    %c0_i32 = arith.constant 0 : i32
    %c0_i32_0 = arith.constant 0 : i32
    %c0_i32_1 = arith.constant 0 : i32
    return %c0_i32, %c0_i32_0 : i32, i32
  }
  func.func @transform_3(%arg0: i32) -> (i32, i32) {
    %c0_i32 = arith.constant 0 : i32
    %c0_i32_0 = arith.constant 0 : i32
    %c0_i32_1 = arith.constant 0 : i32
    return %c0_i32, %c0_i32_0 : i32, i32
  }
  func.func @transform_4(%arg0: i32) -> (i32, i32) {
    %c0_i32 = arith.constant 0 : i32
    %c0_i32_0 = arith.constant 0 : i32
    %c0_i32_1 = arith.constant 0 : i32
    return %c0_i32, %c0_i32_0 : i32, i32
  }
  func.func @transform_5(%arg0: i32) -> (i32, i32) {
    %c0_i32 = arith.constant 0 : i32
    %c0_i32_0 = arith.constant 0 : i32
    %c0_i32_1 = arith.constant 0 : i32
    return %c0_i32, %c0_i32_0 : i32, i32
  }
  func.func @transform_6(%arg0: i32) -> (i32, i32) {
    %c0_i32 = arith.constant 0 : i32
    %c0_i32_0 = arith.constant 0 : i32
    %c0_i32_1 = arith.constant 0 : i32
    return %c0_i32, %c0_i32_0 : i32, i32
  }
  func.func @transform_7(%arg0: i32) -> (i32, i32) {
    %c0_i32 = arith.constant 0 : i32
    %c0_i32_0 = arith.constant 0 : i32
    %c0_i32_1 = arith.constant 0 : i32
    return %c0_i32, %c0_i32_0 : i32, i32
  }
  func.func @transform_8(%arg0: i32) -> (i32, i32) {
    %c0_i32 = arith.constant 0 : i32
    %c0_i32_0 = arith.constant 0 : i32
    return %c0_i32, %arg0 : i32, i32
  }
}

</mosaic_0001>

<bundles_post_ra>
// kernel: grid_gcn_conv_forward.1
= control target key start
LH: loop header
LB: loop body
LE: loop exit
PB: predicated region body
PF: predicated region fallthrough
CT: control target
= control target key end

     0   :  { %s4422_s27 = smov 0   ;;  %s4424_s28 = smov 0   ;;  %s7860_s0 = inlined_call_operand.vmem [shape: f32[8,4,512], index: 0, kind: input, shape index: {}]   ;;  %s7861_s1 = inlined_call_operand.vmem [shape: f32[8,6,512], index: 1, kind: input, shape index: {}]   ;;  %s7862_s2 = inlined_call_operand.vmem [shape: f32[32,4], index: 2, kind: input, shape index: {}]   ;;  %s7863_s3 = inlined_call_operand.vmem [shape: f32[32,1], index: 3, kind: input, shape index: {}]   ;;  %s7864_s4 = inlined_call_operand.vmem [shape: f32[32,6], index: 4, kind: input, shape index: {}]   ;;  %s7865_s5 = inlined_call_operand.vmem [shape: f32[32,1], index: 5, kind: input, shape index: {}]   ;;  %s7866_s6 = inlined_call_operand.vmem [shape: bf16[64,64], index: 6, kind: input, shape index: {}]   ;;  %s7867_s7 = inlined_call_operand.vmem [shape: f32[64,1], index: 7, kind: input, shape index: {}]   ;;  %s7868_s8 = inlined_call_operand.vmem [shape: f32[64,512], index: 8, kind: output, shape index: {}]  }
   0x1   :  { %s4426_s29 = smov 0  }
   0x2 LB: > { %s4199_s30 = sadd.s32 4294967295, %s4369_s29   ;;  %s4439_s9 = sadd.s32 1, %s4369_s29   ;;  %s4369_s29 = sphi %s4426_s29, %s8603_s29   ;;  %s4365_s28 = sphi %s4424_s28, %s8602_s28   ;;  %s4361_s27 = sphi %s4422_s27, %s8601_s27  }
   0x3   : > { %s22_s10 = ssub.s32 %s4369_s29, %s4439_s9  ;;  %s25_s11 = sadd.s32 1, %s4365_s28 }
   0x4   : > { %p23_p0 = scmp.eq.s32.totalorder %s22_s10, 0  ;;  %p32_p1 = scmp.ne.s32.totalorder %s4365_s28, %s4361_s27 }
   0x5   : > { %p33_p2 = scmp.eq.s32.totalorder %s4369_s29, 0  ;;  %p214_p3 = scmp.eq.s32.totalorder %s4199_s30, 1 }
   0x6   : > { %s4450_s12 = scalar_select %p23_p0, %s4365_s28, %s25_s11  }
   0x7   : > { %p4452_p4 = por %p33_p2, %p32_p1  ;;  %p4456_p5 = por %p214_p3, %p32_p1 }
   0x8   : > { %p4202_p6 = scmp.ge.s32.totalorder %s4369_s29, 2 }
   0xa   : > { %254 = sbr.rel (%p4202_p6) target bundleno = 37 (0x25), region = 40 }
  0x11   : > { %257 = sbr.rel (!%p4452_p4) target bundleno = 25 (0x19), region = 44  ;;  %s259_s15 = sand.u32 (%p4452_p4), 1, %s4365_s28  }
  0x12   : > { %s4275_s16 = sshll.u32 (%p4452_p4), %s4369_s29, 3  ;;  %s4203_s17 = sshll.u32 (%p4452_p4), %s259_s15, 6 }
  0x13   : > { %s264_s20 = scalar_lea.vmem (%p4452_p4), %s7860_s0, %s4275_s16  ;;  %s261_s21 = scalar_lea.vmem (%p4452_p4), [#allocation2], %s4203_s17 }
  0x14   : > { %v306_v0 = vld [vmem:[%s264_s20] sm:$0xff] (%p4452_p4)  ;;  %v308_v1 = vld [vmem:[%s264_s20 + $0x10] sm:$0xff] (%p4452_p4) }
  0x15   : > { %v310_v2 = vld [vmem:[%s264_s20 + $0x20] sm:$0xff] (%p4452_p4)  ;;  %307 = vst [vmem:[%s261_s21] sm:$0xff] (%p4452_p4), %v306_v0  ;;  %309 = vst [vmem:[%s261_s21 + $0x8] sm:$0xff] (%p4452_p4), %v308_v1  ;;  %v312_v3 = vld [vmem:[%s264_s20 + $0x30] sm:$0xff] (%p4452_p4) }
  0x16   : > { %311 = vst [vmem:[%s261_s21 + $0x10] sm:$0xff] (%p4452_p4), %v310_v2  ;;  %v314_v4 = vld [vmem:[%s264_s20 + $0x40] sm:$0xff] (%p4452_p4)  ;;  %v316_v5 = vld [vmem:[%s264_s20 + $0x50] sm:$0xff] (%p4452_p4)  ;;  %313 = vst [vmem:[%s261_s21 + $0x18] sm:$0xff] (%p4452_p4), %v312_v3 }
  0x17   : > { %315 = vst [vmem:[%s261_s21 + $0x20] sm:$0xff] (%p4452_p4), %v314_v4  ;;  %317 = vst [vmem:[%s261_s21 + $0x28] sm:$0xff] (%p4452_p4), %v316_v5  ;;  %v318_v6 = vld [vmem:[%s264_s20 + $0x60] sm:$0xff] (%p4452_p4)  ;;  %v320_v7 = vld [vmem:[%s264_s20 + $0x70] sm:$0xff] (%p4452_p4) }
  0x18   : > { %319 = vst [vmem:[%s261_s21 + $0x30] sm:$0xff] %v318_v6  ;;  %321 = vst [vmem:[%s261_s21 + $0x38] sm:$0xff] %v320_v7 }
  0x19 PF: > { %327 = sbr.rel (!%p4452_p4) target bundleno = 37 (0x25), region = 82  ;;  %s329_s22 = sand.u32 (%p4452_p4), 1, %s4365_s28  }
  0x1a   : > { %s4276_s23 = sshll.u32 (%p4452_p4), %s4369_s29, 4  ;;  %s4206_s24 = sshll.u32 (%p4452_p4), %s329_s22, 7 }
  0x1b   : > { %s4475_s10 = scalar_lea.vmem (%p4452_p4), %s7861_s1, %s4276_s23  ;;  %s331_s11 = scalar_lea.vmem (%p4452_p4), [#allocation3], %s4206_s24 }
  0x1c   : > { %v347_v8 = vld [vmem:[%s4475_s10] sm:$0xff] (%p4452_p4)  ;;  %v349_v9 = vld [vmem:[%s4475_s10 + $0x8] sm:$0xff] (%p4452_p4) }
  0x1d   : > { %v351_v10 = vld [vmem:[%s4475_s10 + $0x20] sm:$0xff] (%p4452_p4)  ;;  %348 = vst [vmem:[%s331_s11] sm:$0xff] (%p4452_p4), %v347_v8  ;;  %350 = vst [vmem:[%s331_s11 + $0x8] sm:$0xff] (%p4452_p4), %v349_v9  ;;  %v353_v11 = vld [vmem:[%s4475_s10 + $0x28] sm:$0xff] (%p4452_p4) }
  0x1e   : > { %352 = vst [vmem:[%s331_s11 + $0x10] sm:$0xff] (%p4452_p4), %v351_v10  ;;  %v355_v12 = vld [vmem:[%s4475_s10 + $0x40] sm:$0xff] (%p4452_p4)  ;;  %v357_v13 = vld [vmem:[%s4475_s10 + $0x48] sm:$0xff] (%p4452_p4)  ;;  %354 = vst [vmem:[%s331_s11 + $0x18] sm:$0xff] (%p4452_p4), %v353_v11 }
  0x1f   : > { %356 = vst [vmem:[%s331_s11 + $0x20] sm:$0xff] (%p4452_p4), %v355_v12  ;;  %358 = vst [vmem:[%s331_s11 + $0x28] sm:$0xff] (%p4452_p4), %v357_v13  ;;  %v359_v14 = vld [vmem:[%s4475_s10 + $0x60] sm:$0xff] (%p4452_p4)  ;;  %v361_v15 = vld [vmem:[%s4475_s10 + $0x68] sm:$0xff] (%p4452_p4) }
  0x20   : > { %v363_v16 = vld [vmem:[%s4475_s10 + $0x80] sm:$0xff]  ;;  %360 = vst [vmem:[%s331_s11 + $0x30] sm:$0xff] %v359_v14  ;;  %362 = vst [vmem:[%s331_s11 + $0x38] sm:$0xff] %v361_v15  ;;  %v365_v17 = vld [vmem:[%s4475_s10 + $0x88] sm:$0xff] }
  0x21   : > { %364 = vst [vmem:[%s331_s11 + $0x40] sm:$0xff] %v363_v16  ;;  %v367_v18 = vld [vmem:[%s4475_s10 + $0xa0] sm:$0xff]  ;;  %v369_v19 = vld [vmem:[%s4475_s10 + $0xa8] sm:$0xff]  ;;  %366 = vst [vmem:[%s331_s11 + $0x48] sm:$0xff] %v365_v17 }
  0x22   : > { %368 = vst [vmem:[%s331_s11 + $0x50] sm:$0xff] %v367_v18  ;;  %370 = vst [vmem:[%s331_s11 + $0x58] sm:$0xff] %v369_v19  ;;  %v371_v20 = vld [vmem:[%s4475_s10 + $0xc0] sm:$0xff]  ;;  %v373_v21 = vld [vmem:[%s4475_s10 + $0xc8] sm:$0xff] }
  0x23   : > { %v375_v22 = vld [vmem:[%s4475_s10 + $0xe0] sm:$0xff]  ;;  %372 = vst [vmem:[%s331_s11 + $0x60] sm:$0xff] %v371_v20  ;;  %374 = vst [vmem:[%s331_s11 + $0x68] sm:$0xff] %v373_v21  ;;  %v377_v23 = vld [vmem:[%s4475_s10 + $0xe8] sm:$0xff] }
  0x24   : > { %376 = vst [vmem:[%s331_s11 + $0x70] sm:$0xff] %v375_v22  ;;  %378 = vst [vmem:[%s331_s11 + $0x78] sm:$0xff] %v377_v23 }
  0x25 PF: > { %p4209_p7 = scmp.ge.s32.totalorder %s4369_s29, 1  ;;  %p383_p8 = scmp.lt.s32.totalorder %s4369_s29, 3 }
  0x27   : > { %p384_p9 = pnand %p4209_p7, %p383_p8 }
  0x29   : > { %387 = sbr.rel (%p384_p9) target bundleno = 860 (0x35c), region = 105 }
  0x30   : > { %v441_v24 = vld [vmem:[%s7863_s3] sm:$0xff]  ;;  %v4371_v26 = vmov 1   ;;  %v7869_v27 = vmov 0   ;;  %v442_v28 = vld [vmem:[%s7863_s3 + $0x8] sm:$0xff]  ;;  %v439_v29 = vld [vmem:[%s7862_s2 + $0x10] sm:$0xff]  ;;  %v4373_v32 = vmov 2   ;;  %v493_v45 = vlaneseq }
  0x31   : > { %v437_v25 = vld [vmem:[%s7862_s2] sm:$0xff]  ;;  %4309 = vset.pattern.permute.xlu0 %v4371_v26  ;;  %4308 = vset.pattern.permute.xlu1 %v7869_v27  ;;  %v438_v31 = vld [vmem:[%s7862_s2 + $0x8] sm:$0xff]  ;;  %v440_v33 = vld [vmem:[%s7862_s2 + $0x18] sm:$0xff]  ;;  %v4374_v38 = vmov 3   ;;  %v7871_v43 = vmov 5   ;;  %s390_s16 = sand.u32 1, %s4361_s27  }
  0x32   : > { %521 = vperm.xlu1 %4308, %v441_v24   ;;  %548 = vperm.xlu0 %4309, %v437_v25   ;;  %v4514_v30 = vld [vmem:[%s7864_s4] sm:$0xff]  ;;  %v4531_v34 = vld [vmem:[%s7864_s4 + $0x8] sm:$0xff]  ;;  %v443_v35 = vld [vmem:[%s7863_s3 + $0x10] sm:$0xff]  ;;  %s4210_s17 = sshll.u32 %s390_s16, 6  ;;  %v494_v46 = vshrl.u32 %v493_v45, 7  ;;  %v4376_v52 = vmov 4  }
  0x33   : > { %1090 = vmatprep.mubr.bf16.mxu0 %v7869_v27  ;;  %1489 = vmatprep.mubr.bf16.mxu1 %v7869_v27  ;;  %v444_v36 = vld [vmem:[%s7863_s3 + $0x18] sm:$0xff]  ;;  %v449_v40 = vld [vmem:[%s7865_s5] sm:$0xff]  ;;  %v450_v41 = vld [vmem:[%s7865_s5 + $0x8] sm:$0xff]  ;;  %s4596_s18 = scalar_lea.vmem [#allocation2], %s4210_s17  ;;  %s4629_s27 = sshll.u32 %s390_s16, 7  ;;  %vm1045_vm0 = vcmask 523264  }
  0x34   : > { %v452_v37 = vld [vmem:[%s7865_s5 + $0x18] sm:$0xff]  ;;  %v4569_v42 = vld [vmem:[%s7864_s4 + $0x10] sm:$0xff]  ;;  %v4594_v47 = vsub.s32 5, %v494_v46  ;;  %v4599_v48 = vld [vmem:[%s4596_s18] sm:$0xff]  ;;  %v4601_v49 = vsub.s32 4, %v494_v46  ;;  %v4603_v50 = vsub.s32 1, %v494_v46 }
  0x35   : > { %v4551_v39 = vld [vmem:[%s7864_s4 + $0x18] sm:$0xff]  ;;  %v451_v44 = vld [vmem:[%s7865_s5 + $0x10] sm:$0xff]  ;;  %v4606_v51 = vld [vmem:[%s4596_s18 + $0x8] sm:$0xff]  ;;  %v4609_v53 = vsub.s32 0, %v494_v46  ;;  %v4614_v55 = vsub.s32 6, %v494_v46  ;;  %v4616_v56 = vsub.s32 2, %v494_v46 }
  0x36   : > { %526 = vperm.xlu1 %4308, %v442_v28   ;;  %556 = vperm.xlu0 %4309, %v439_v29   ;;  %8143 = vst [vmem:[#allocation5_spill] sm:$0xff] %v4594_v47  ;;  %8144 = vst [vmem:[#allocation6_spill] sm:$0xff] %v4601_v49  ;;  %v570_v54 = vrot.slane %v4599_v48, %v4594_v47  ;;  %v1194_v57 = vrot.slane %v4606_v51, %v4594_v47  ;;  %v4627_v61 = vld [vmem:[%s4596_s18 + $0x10] sm:$0xff]  ;;  %v4638_v1 = vld [vmem:[%s4596_s18 + $0x18] sm:$0xff]  ;;  %v4670_v14 = vsub.s32 7, %v494_v46  ;;  %s4701_s19 = scalar_lea.vmem [#allocation3], %s4629_s27 }
  0x37   : > { %8145 = vst [vmem:[#allocation7_spill] sm:$0xff] %v4603_v50  ;;  %8146 = vst [vmem:[#allocation8_spill] sm:$0xff] %v4609_v53  ;;  %v500_v58 = vrot.slane %v4599_v48, %v4601_v49  ;;  %v566_v59 = vrot.slane %v4599_v48, %v4603_v50  ;;  %v1190_v60 = vrot.slane %v4606_v51, %v4603_v50  ;;  %v4685_v19 = vsub.s32 3, %v494_v46  ;;  %v4704_v24 = vld [vmem:[%s4701_s19 + $0x8] sm:$0x3f] }
  0x38   : > { %8147 = vst [vmem:[#allocation9_spill] sm:$0xff] %v4614_v55  ;;  %8148 = vst [vmem:[#allocation10_spill] sm:$0xff] %v4616_v56  ;;  %v1160_v62 = vrot.slane %v4606_v51, %v4601_v49  ;;  %v496_v63 = vrot.slane %v4599_v48, %v4609_v53  ;;  %v1156_v0 = vrot.slane %v4606_v51, %v4609_v53  ;;  %v4712_v28 = vld [vmem:[%s4701_s19 + $0x18] sm:$0x3f] }
  0x39   : > { %v4642_v2 = vrot.slane %v570_v54, %v4603_v50  ;;  %v620_v3 = vrot.slane %v4599_v48, %v4614_v55  ;;  %v1228_v4 = vrot.slane %v4606_v51, %v4614_v55  ;;  %v1575_v5 = vrot.slane %v4627_v61, %v4601_v49  ;;  %8153 = vst [vmem:[#allocation15_spill] sm:$0xff] %v4670_v14 }
  0x3a   : > { %4310 = vset.pattern.permute.xlu1 %v4371_v26  ;;  %762 = vperm.xlu0 %4309, %v4514_v30   ;;  %v4651_v6 = vrot.slane %v1194_v57, %v4603_v50  ;;  %v616_v7 = vrot.slane %v4599_v48, %v4616_v56  ;;  %v1224_v8 = vrot.slane %v4606_v51, %v4616_v56 }
  0x3b   : > { %552 = vperm.xlu1 %4310, %v438_v31   ;;  %8149 = vst [vmem:[#allocation11_spill] sm:$0xff] %v4642_v2  ;;  %v1609_v9 = vrot.slane %v4627_v61, %v4594_v47  ;;  %v4660_v10 = vrot.slane %v500_v58, %v4609_v53  ;;  %v4663_v11 = vrot.slane %v566_v59, %v4603_v50  ;;  %8154 = vst [vmem:[#allocation16_spill] sm:$0xff] %v4685_v19 }
  0x3c   : > { %8150 = vst [vmem:[#allocation12_spill] sm:$0xff] %v4651_v6  ;;  %v4666_v12 = vrot.slane %v1190_v60, %v4603_v50  ;;  %v2024_v13 = vrot.slane %v4638_v1, %v4594_v47  ;;  %v4673_v15 = vrot.slane %v1160_v62, %v4609_v53  ;;  %v4676_v16 = vrot.slane %v496_v63, %v4609_v53 }
  0x3d   : > { %8151 = vst [vmem:[#allocation13_spill] sm:$0xff] %v4663_v11  ;;  %v4679_v17 = vrot.slane %v1156_v0, %v4609_v53  ;;  %v4683_v18 = vrot.slane %v620_v3, %v4616_v56  ;;  %v4688_v20 = vrot.slane %v1228_v4, %v4616_v56  ;;  %v4691_v21 = vrot.slane %v1575_v5, %v4609_v53 }
  0x3e   : > { %4317 = vset.pattern.permute.xlu0 %v7869_v27  ;;  %8152 = vst [vmem:[#allocation14_spill] sm:$0xff] %v4666_v12  ;;  %v4695_v22 = vrot.slane %v616_v7, %v4616_v56  ;;  %v4698_v23 = vrot.slane %v1224_v8, %v4616_v56  ;;  %v4743_v45 = vrot.slane %v4704_v24, %v4609_v53 }
  0x3f   : > { %4311 = vset.pattern.permute.xlu1 %v7869_v27  ;;  %474 = vperm.xlu0 %4317, %v437_v25   ;;  %8155 = vst [vmem:[#allocation17_spill] sm:$0xff] %v4691_v21  ;;  %v1639_v46 = vrot.slane %v4627_v61, %v4616_v56  ;;  %v1258_v54 = vrot.slane %v4606_v51, %v4685_v19 }
  0x40   : > { %484 = vperm.xlu1 %4311, %v439_v29   ;;  %v4752_v57 = vrot.slane %v4712_v28, %v4609_v53  ;;  %v1677_v7 = vrot.slane %v4627_v61, %v4670_v14 }
  0x41   : > { %v4796_v8 = vrot.slane %v1639_v46, %v4616_v56 }
  0x43   : > { %479 = vperm.xlu0 %4317, %v438_v31   ;;  %8170 = vst [vmem:[#allocation32_spill] sm:$0xff] %v4796_v8 }
  0x44   : > { %4312 = vset.pattern.permute.xlu1 %v4373_v32 }
  0x45   : > { %598 = vperm.xlu1 %4312, %v437_v25  }
  0x47   : > { %489 = vperm.xlu0 %4317, %v440_v33  }
  0x49   : > { %602 = vperm.xlu1 %4312, %v438_v31  }
  0x4b   : > { %699 = vperm.xlu0 %4317, %v4514_v30  }
  0x4d   : > { %4313 = vset.pattern.permute.xlu1 %v7869_v27 }
  0x4e   : > { %704 = vperm.xlu1 %4313, %v4531_v34  }
  0x4f   : > { %531 = vperm.xlu0 %4317, %v443_v35   ;;  %v670_v35 = vrot.slane %v4599_v48, %v4670_v14 }
  0x51   : > { %v4776_v63 = vrot.slane %v670_v35, %v4685_v19  ;;  %v4816_v35 = vrot.slane %v4712_v28, %v4603_v50 }
  0x52   : > { %536 = vperm.xlu1 %4313, %v444_v36   ;;  %v4729_v36 = vld [vmem:[%s4701_s19 + $0x10] sm:$0x3f] }
  0x53   : > { %750 = vperm.xlu0 %4317, %v452_v37   ;;  %v2058_v37 = vrot.slane %v4638_v1, %v4614_v55  ;;  %v4764_v59 = vrot.slane %v4729_v36, %v4609_v53  ;;  %8164 = vst [vmem:[#allocation26_spill] sm:$0xff] %v4776_v63  ;;  %8175 = vst [vmem:[#allocation37_spill] sm:$0xff] %v4816_v35  ;;  %v4853_v46 = vrot.slane %v4729_v36, %v4616_v56 }
  0x55   : > { %8160 = vst [vmem:[#allocation22_spill] sm:$0xff] %v4764_v59  ;;  %v4779_v0 = vrot.slane %v2058_v37, %v4616_v56  ;;  %8183 = vst [vmem:[#allocation45_spill] sm:$0xff] %v4853_v46 }
  0x56   : > { %4314 = vset.pattern.permute.xlu1 %v4371_v26 }
  0x57   : > { %560 = vperm.xlu1 %4314, %v440_v33   ;;  %4324 = vset.pattern.permute.xlu0 %v4373_v32  ;;  %8165 = vst [vmem:[#allocation27_spill] sm:$0xff] %v4779_v0 }
  0x58   : > { %610 = vperm.xlu0 %4324, %v440_v33  }
  0x5b   : > { %4315 = vset.pattern.permute.xlu1 %v4374_v38 }
  0x5c   : > { %648 = vperm.xlu1 %4315, %v437_v25   ;;  %802 = vperm.xlu0 %4324, %v4514_v30   ;;  %v4707_v25 = vrot.slane %v1609_v9, %v4603_v50  ;;  %v4799_v9 = vrot.slane %v1258_v54, %v4685_v19  ;;  %v4856_v54 = vrot.slane %v1677_v7, %v4685_v19 }
  0x5e   : > { %8156 = vst [vmem:[#allocation18_spill] sm:$0xff] %v4707_v25  ;;  %8171 = vst [vmem:[#allocation33_spill] sm:$0xff] %v4799_v9 }
  0x5f   : > { %8184 = vst [vmem:[#allocation46_spill] sm:$0xff] %v4856_v54  ;;  %v4880_v54 = vrot.slane %v4704_v24, %v4601_v49 }
  0x60   : > { %4316 = vset.pattern.permute.xlu1 %v7869_v27  ;;  %814 = vperm.xlu0 %4324, %v4551_v39  }
  0x61   : > { %735 = vperm.xlu1 %4316, %v449_v40   ;;  %v2020_v40 = vrot.slane %v4638_v1, %v4603_v50  ;;  %8191 = vst [vmem:[#allocation53_spill] sm:$0xff] %v4880_v54 }
  0x63   : > { %v4785_v3 = vrot.slane %v2020_v40, %v4603_v50  ;;  %v4833_v40 = vrot.slane %v4712_v28, %v4616_v56 }
  0x64   : > { %4328 = vset.pattern.permute.xlu0 %v4374_v38 }
  0x65   : > { %740 = vperm.xlu1 %4316, %v450_v41   ;;  %652 = vperm.xlu0 %4328, %v438_v31   ;;  %v1643_v31 = vrot.slane %v4627_v61, %v4614_v55  ;;  %v1262_v41 = vrot.slane %v4606_v51, %v4670_v14  ;;  %8167 = vst [vmem:[#allocation29_spill] sm:$0xff] %v4785_v3  ;;  %8178 = vst [vmem:[#allocation40_spill] sm:$0xff] %v4833_v40 }
  0x67   : > { %v4767_v60 = vrot.slane %v1643_v31, %v4616_v56  ;;  %v4788_v4 = vrot.slane %v1262_v41, %v4685_v19  ;;  %v1673_v31 = vrot.slane %v4627_v61, %v4685_v19 }
  0x69   : > { %4318 = vset.pattern.permute.xlu1 %v4371_v26  ;;  %656 = vperm.xlu0 %4328, %v439_v29   ;;  %8161 = vst [vmem:[#allocation23_spill] sm:$0xff] %v4767_v60  ;;  %8168 = vst [vmem:[#allocation30_spill] sm:$0xff] %v4788_v4  ;;  %v4870_v55 = vrot.slane %v1673_v31, %v4685_v19 }
  0x6a   : > { %766 = vperm.xlu1 %4318, %v4531_v34  }
  0x6b   : > { %8188 = vst [vmem:[#allocation50_spill] sm:$0xff] %v4870_v55  ;;  %v4899_v55 = vrot.slane %v4712_v28, %v4594_v47 }
  0x6d   : > { %842 = vperm.xlu0 %4328, %v4514_v30   ;;  %8196 = vst [vmem:[#allocation58_spill] sm:$0xff] %v4899_v55 }
  0x6e   : > { %4319 = vset.pattern.permute.xlu1 %v4373_v32 }
  0x6f   : > { %606 = vperm.xlu1 %4319, %v439_v29   ;;  %v4715_v29 = vld [vmem:[%s4701_s19] sm:$0x3f] }
  0x70   : > { %v4756_v58 = vrot.slane %v4715_v29, %v4609_v53  ;;  %v4820_v37 = vrot.slane %v4715_v29, %v4603_v50  ;;  %v4837_v41 = vrot.slane %v4715_v29, %v4616_v56  ;;  %v4903_v54 = vrot.slane %v4715_v29, %v4601_v49 }
  0x71   : > { %850 = vperm.xlu0 %4328, %v4569_v42  }
  0x72   : > { %8158 = vst [vmem:[#allocation20_spill] sm:$0xff] %v4756_v58  ;;  %8176 = vst [vmem:[#allocation38_spill] sm:$0xff] %v4820_v37 }
  0x73   : > { %4320 = vset.pattern.permute.xlu1 %v7869_v27  ;;  %8179 = vst [vmem:[#allocation41_spill] sm:$0xff] %v4837_v41  ;;  %8197 = vst [vmem:[#allocation59_spill] sm:$0xff] %v4903_v54  ;;  %v8207_v54 = vmov 5  }
  0x74   : > { %709 = vperm.xlu1 %4320, %v4569_v42  }
  0x75   : > { %4332 = vset.pattern.permute.xlu0 %v7871_v43 }
  0x76   : > { %926 = vperm.xlu0 %4332, %v4531_v34  }
  0x78   : > { %714 = vperm.xlu1 %4320, %v4551_v39  }
  0x7a   : > { %930 = vperm.xlu0 %4332, %v4569_v42  }
  0x7c   : > { %4321 = vset.pattern.permute.xlu1 %v4373_v32 }
  0x7d   : > { %806 = vperm.xlu1 %4321, %v4531_v34  }
  0x7e   : > { %4335 = vset.pattern.permute.xlu0 %v7869_v27 }
  0x81   : > { %4322 = vset.pattern.permute.xlu1 %v4374_v38 }
  0x82   : > { %660 = vperm.xlu1 %4322, %v440_v33   ;;  %v4722_v33 = vrot.slane %v2024_v13, %v4603_v50  ;;  %v4803_v13 = vrot.slane %v4704_v24, %v4603_v50 }
  0x84   : > { %8157 = vst [vmem:[#allocation19_spill] sm:$0xff] %v4722_v33  ;;  %8172 = vst [vmem:[#allocation34_spill] sm:$0xff] %v4803_v13 }
  0x86   : > { %4323 = vset.pattern.permute.xlu1 %v7869_v27  ;;  %v4860_v27 = vrot.slane %v4715_v29, %v4685_v19 }
  0x87   : > { %745 = vperm.xlu1 %4323, %v451_v44   ;;  %v666_v44 = vrot.slane %v4599_v48, %v4685_v19 }
  0x88   : > { %8185 = vst [vmem:[#allocation47_spill] sm:$0xff] %v4860_v27  ;;  %v4884_v27 = vrot.slane %v4712_v28, %v4601_v49 }
  0x89   : > { %v4791_v5 = vrot.slane %v666_v44, %v4685_v19  ;;  %v4841_v44 = vrot.slane %v4729_v36, %v4603_v50 }
  0x8a   : > { %8192 = vst [vmem:[#allocation54_spill] sm:$0xff] %v4884_v27 }
  0x8b   : > { %4325 = vset.pattern.permute.xlu1 %v4371_v26  ;;  %v1605_v26 = vrot.slane %v4627_v61, %v4603_v50  ;;  %8169 = vst [vmem:[#allocation31_spill] sm:$0xff] %v4791_v5  ;;  %8180 = vst [vmem:[#allocation42_spill] sm:$0xff] %v4841_v44 }
  0x8c   : > { %770 = vperm.xlu1 %4325, %v4569_v42  }
  0x8d   : > { %v4759_v48 = vrot.slane %v1605_v26, %v4603_v50  ;;  %v2092_v26 = vrot.slane %v4638_v1, %v4670_v14 }
  0x8f   : > { %8159 = vst [vmem:[#allocation21_spill] sm:$0xff] %v4759_v48  ;;  %v4867_v14 = vrot.slane %v2092_v26, %v4685_v19 }
  0x90   : > { %774 = vperm.xlu1 %4325, %v4551_v39  }
  0x91   : > { %8187 = vst [vmem:[#allocation49_spill] sm:$0xff] %v4867_v14 }
  0x94   : > { %4326 = vset.pattern.permute.xlu1 %v4374_v38 }
  0x95   : > { %846 = vperm.xlu1 %4326, %v4531_v34  }
  0x99   : > { %4327 = vset.pattern.permute.xlu1 %v4373_v32  ;;  %v1990_v32 = vrot.slane %v4638_v1, %v4601_v49 }
  0x9a   : > { %810 = vperm.xlu1 %4327, %v4569_v42  }
  0x9b   : > { %v4770_v51 = vrot.slane %v1990_v32, %v4609_v53 }
  0x9d   : > { %8162 = vst [vmem:[#allocation24_spill] sm:$0xff] %v4770_v51 }
  0x9e   : > { %4329 = vset.pattern.permute.xlu1 %v4376_v52 }
  0x9f   : > { %882 = vperm.xlu1 %4329, %v4514_v30  }
  0xa3   : > { %886 = vperm.xlu1 %4329, %v4531_v34   ;;  %v1571_v34 = vrot.slane %v4627_v61, %v4609_v53  ;;  %v2088_v61 = vrot.slane %v4638_v1, %v4685_v19 }
  0xa5   : > { %v4773_v62 = vrot.slane %v1571_v34, %v4609_v53  ;;  %v4890_v31 = vrot.slane %v2088_v61, %v4685_v19  ;;  %v4911_v61 = vrot.slane %v4715_v29, %v4594_v47 }
  0xa7   : > { %4330 = vset.pattern.permute.xlu1 %v4374_v38  ;;  %v1986_v38 = vrot.slane %v4638_v1, %v4609_v53  ;;  %8163 = vst [vmem:[#allocation25_spill] sm:$0xff] %v4773_v62  ;;  %8194 = vst [vmem:[#allocation56_spill] sm:$0xff] %v4890_v31 }
  0xa8   : > { %854 = vperm.xlu1 %4330, %v4551_v39   ;;  %8199 = vst [vmem:[#allocation61_spill] sm:$0xff] %v4911_v61 }
  0xac   : > { %4331 = vset.pattern.permute.xlu1 %v7871_v43  ;;  %v4864_v43 = vrot.slane %v4729_v36, %v4685_v19 }
  0xad   : > { %922 = vperm.xlu1 %4331, %v4514_v30   ;;  %v4782_v30 = vrot.slane %v1986_v38, %v4609_v53  ;;  %v2054_v38 = vrot.slane %v4638_v1, %v4616_v56  ;;  %v4845_v1 = vrot.slane %v4704_v24, %v4685_v19 }
  0xae   : > { %8186 = vst [vmem:[#allocation48_spill] sm:$0xff] %v4864_v43  ;;  %v4895_v43 = vrot.slane %v4704_v24, %v4594_v47 }
  0xaf   : > { %8166 = vst [vmem:[#allocation28_spill] sm:$0xff] %v4782_v30  ;;  %8181 = vst [vmem:[#allocation43_spill] sm:$0xff] %v4845_v1  ;;  %v4237_v1 = vld [vmem:[%s4701_s19 + $0x38] sm:$0x3f]  ;;  %v4887_v26 = vrot.slane %v2054_v38, %v4616_v56  ;;  %v4907_v38 = vrot.slane %v4729_v36, %v4601_v49 }
  0xb0   : > { %8195 = vst [vmem:[#allocation57_spill] sm:$0xff] %v4895_v43 }
  0xb1   : > { %v4809_v32 = vpop.permute.xlu1 %521  ;;  %4333 = vset.pattern.permute.xlu1 %v4376_v52  ;;  %v4812_v34 = vpop.permute.xlu0 %548  ;;  %v4829_v52 = vrot.slane %v4704_v24, %v4616_v56  ;;  %8193 = vst [vmem:[#allocation55_spill] sm:$0xff] %v4887_v26  ;;  %8198 = vst [vmem:[#allocation60_spill] sm:$0xff] %v4907_v38  ;;  %v4915_v24 = vrot.slane %v4729_v36, %v4594_v47 }
  0xb2   : > { %8173 = vst [vmem:[#allocation35_spill] sm:$0xff] %v4809_v32  ;;  %8174 = vst [vmem:[#allocation36_spill] sm:$0xff] %v4812_v34  ;;  %890 = vperm.xlu1 %4333, %v4569_v42   ;;  %v4849_v42 = vrot.slane %v4712_v28, %v4685_v19  ;;  %v4921_v28 = vrot.slane %v4237_v1, %v4609_v53  ;;  %v582_v56 = vmul.f32 %v4642_v2, %v4812_v34 }
  0xb3   : > { %8177 = vst [vmem:[#allocation39_spill] sm:$0xff] %v4829_v52  ;;  %8200 = vst [vmem:[#allocation62_spill] sm:$0xff] %v4915_v24  ;;  %v1206_v49 = vmul.f32 %v4651_v6, %v4812_v34  ;;  %v581_v29 = vmul.f32 %v4663_v11, %v4812_v34  ;;  %v4931_v38 = vmul.f32 %v4666_v12, %v4812_v34 }
  0xb4   : > { %8182 = vst [vmem:[#allocation44_spill] sm:$0xff] %v4849_v42  ;;  %v4230_v42 = vld [vmem:[%s4701_s19 + $0x28] sm:$0x3f]  ;;  %8202 = vst [vmem:[#allocation64_spill] sm:$0xff] %v4921_v28  ;;  %v4937_v47 = vmul.f32 %v4707_v25, %v4812_v34  ;;  %v4941_v1 = vmul.f32 %v4722_v33, %v4812_v34  ;;  %v4949_v28 = vmul.f32 %v4785_v3, %v4812_v34 }
  0xb5   : > { %v4874_v46 = vpop.permute.xlu1 %526  ;;  %v4876_v7 = vpop.permute.xlu0 %556  ;;  %v4918_v19 = vrot.slane %v4230_v42, %v4609_v53  ;;  %v4945_v53 = vmul.f32 %v4759_v48, %v4812_v34 }
  0xb6   : > { %8189 = vst [vmem:[#allocation51_spill] sm:$0xff] %v4874_v46  ;;  %8190 = vst [vmem:[#allocation52_spill] sm:$0xff] %v4876_v7  ;;  %894 = vperm.xlu1 %4333, %v4551_v39   ;;  %v4956_v27 = vmul.f32 %v4642_v2, %v4876_v7  ;;  %v4960_v31 = vmul.f32 %v4651_v6, %v4876_v7  ;;  %v4964_v26 = vmul.f32 %v4663_v11, %v4876_v7 }
  0xb7   : > { %8201 = vst [vmem:[#allocation63_spill] sm:$0xff] %v4918_v19  ;;  %8204 = vst [vmem:[#allocation66_spill] sm:$0xff] %v4945_v53  ;;  %v4968_v34 = vmul.f32 %v4666_v12, %v4876_v7  ;;  %v4981_v24 = vmul.f32 %v4759_v48, %v4876_v7  ;;  %v4985_v61 = vmul.f32 %v4785_v3, %v4876_v7 }
  0xb8   : > { %8205 = vst [vmem:[#allocation67_spill] sm:$0xff] %v4949_v28  ;;  %v4977_v28 = vmul.f32 %v4722_v33, %v4876_v7 }
  0xb9   : > { %v4933_v36 = vpop.permute.xlu0 %762  ;;  %8210 = vst [vmem:[#allocation71_spill] sm:$0xff] %v4981_v24  ;;  %8211 = vst [vmem:[#allocation72_spill] sm:$0xff] %v4985_v61 }
  0xba   : > { %8203 = vst [vmem:[#allocation65_spill] sm:$0xff] %v4933_v36  ;;  %v4951_v19 = vpop.permute.xlu1 %552  ;;  %4334 = vset.pattern.permute.xlu1 %v8207_v54  ;;  %v4973_v54 = vmul.f32 %v4707_v25, %v4876_v7  ;;  %8209 = vst [vmem:[#allocation70_spill] sm:$0xff] %v4977_v28  ;;  %v4989_v55 = vmul.f32 %v4803_v13, %v4933_v36  ;;  %v5001_v28 = vmul.f32 %v4841_v44, %v4933_v36 }
  0xbb   : > { %8206 = vst [vmem:[#allocation68_spill] sm:$0xff] %v4951_v19  ;;  %934 = vperm.xlu1 %4334, %v4551_v39   ;;  %v4993_v39 = vmul.f32 %v4816_v35, %v4933_v36  ;;  %v584_v7 = vmul.f32 %v4642_v2, %v4951_v19  ;;  %v1208_v61 = vmul.f32 %v4651_v6, %v4951_v19 }
  0xbc   : > { %8208 = vst [vmem:[#allocation69_spill] sm:$0xff] %v4973_v54  ;;  %8212 = vst [vmem:[#allocation73_spill] sm:$0xff] %v4989_v55  ;;  %v4997_v54 = vmul.f32 %v4820_v37, %v4933_v36  ;;  %v583_v24 = vmul.f32 %v4663_v11, %v4951_v19  ;;  %v1207_v43 = vmul.f32 %v4666_v12, %v4951_v19 }
  0xbd   : > { %8213 = vst [vmem:[#allocation74_spill] sm:$0xff] %v4993_v39  ;;  %8215 = vst [vmem:[#allocation76_spill] sm:$0xff] %v5001_v28  ;;  %v5015_v37 = vmul.f32 %v4707_v25, %v4951_v19  ;;  %v5019_v36 = vmul.f32 %v4722_v33, %v4951_v19  ;;  %v5023_v44 = vmul.f32 %v4759_v48, %v4951_v19  ;;  %v8220_v48 = vmov 0  }
  0xbe   : > { %8214 = vst [vmem:[#allocation75_spill] sm:$0xff] %v4997_v54  ;;  %v5011_v35 = vpop.permute.xlu0 %474  ;;  %v5027_v13 = vmul.f32 %v4785_v3, %v4951_v19  ;;  %v5053_v55 = vrot.slane %v4230_v42, %v4603_v50 }
  0xbf   : > { %8216 = vst [vmem:[#allocation77_spill] sm:$0xff] %v5011_v35  ;;  %8217 = vst [vmem:[#allocation78_spill] sm:$0xff] %v5023_v44  ;;  %v5029_v28 = vpop.permute.xlu1 %484  ;;  %v512_v54 = vmul.f32 %v4660_v10, %v5011_v35  ;;  %v1172_v25 = vmul.f32 %v4673_v15, %v5011_v35  ;;  %v511_v33 = vmul.f32 %v4676_v16, %v5011_v35  ;;  %4336 = vset.pattern.permute.xlu1 %v8220_v48 }
  0xc0   : > { %8218 = vst [vmem:[#allocation79_spill] sm:$0xff] %v5027_v13  ;;  %8219 = vst [vmem:[#allocation80_spill] sm:$0xff] %v5029_v28  ;;  %v1171_v39 = vmul.f32 %v4679_v17, %v5011_v35  ;;  %v5042_v19 = vmul.f32 %v4660_v10, %v5029_v28  ;;  %v5046_v3 = vmul.f32 %v4673_v15, %v5029_v28 }
  0xc1   : > { %v5050_v13 = vmul.f32 %v4676_v16, %v5029_v28  ;;  %8221 = vst [vmem:[#allocation81_spill] sm:$0xff] %v5053_v55  ;;  %v540_v14 = vadd.f32 %v4809_v32, %v512_v54  ;;  %v1180_v41 = vadd.f32 %v1172_v25, %v4809_v32  ;;  %v539_v48 = vadd.f32 %v4809_v32, %v511_v33 }
  0xc2   : > { %v5060_v40 = vmul.f32 %v4679_v17, %v5029_v28  ;;  %v5062_v52 = vpop.permute.xlu0 %479  ;;  %v1179_v9 = vadd.f32 %v1171_v39, %v4809_v32  ;;  %v1587_v5 = vmul.f32 %v4691_v21, %v5011_v35  ;;  %v5069_v42 = vmul.f32 %v4770_v51, %v5011_v35 }
  0xc3   : > { %8222 = vst [vmem:[#allocation82_spill] sm:$0xff] %v5062_v52  ;;  %v5073_v25 = vmul.f32 %v4773_v62, %v5011_v35  ;;  %v514_v33 = vmul.f32 %v4660_v10, %v5062_v52  ;;  %v590_v54 = vadd.f32 %v582_v56, %v540_v14  ;;  %v1174_v50 = vmul.f32 %v4673_v15, %v5062_v52 }
  0xc4   : > { %v5081_v39 = vmul.f32 %v4782_v30, %v5011_v35  ;;  %v5083_v55 = vpop.permute.xlu1 %598  ;;  %v1214_v28 = vadd.f32 %v1206_v49, %v1180_v41  ;;  %v513_v4 = vmul.f32 %v4676_v16, %v5062_v52  ;;  %v589_v63 = vadd.f32 %v581_v29, %v539_v48 }
  0xc5   : > { %8223 = vst [vmem:[#allocation83_spill] sm:$0xff] %v5073_v25  ;;  %8225 = vst [vmem:[#allocation85_spill] sm:$0xff] %v5083_v55  ;;  %v1173_v44 = vmul.f32 %v4679_v17, %v5062_v52  ;;  %v542_v53 = vadd.f32 %v4874_v46, %v514_v33  ;;  %v632_v56 = vmul.f32 %v4683_v18, %v5083_v55 }
  0xc6   : > { %8224 = vst [vmem:[#allocation84_spill] sm:$0xff] %v5081_v39  ;;  %v1182_v14 = vadd.f32 %v1174_v50, %v4874_v46  ;;  %v1240_v35 = vmul.f32 %v4688_v20, %v5083_v55  ;;  %v5095_v39 = vpop.permute.xlu0 %489  ;;  %v541_v49 = vadd.f32 %v4874_v46, %v513_v4  ;;  %v631_v48 = vmul.f32 %v4695_v22, %v5083_v55 }
  0xc7   : > { %8226 = vst [vmem:[#allocation86_spill] sm:$0xff] %v5095_v39  ;;  %v1181_v41 = vadd.f32 %v1173_v44, %v4874_v46  ;;  %v1239_v29 = vmul.f32 %v4698_v23, %v5083_v55  ;;  %v592_v33 = vadd.f32 %v584_v7, %v542_v53  ;;  %v5103_v12 = vadd.f32 %v632_v56, %v590_v54 }
  0xc8   : > { %v1216_v11 = vadd.f32 %v1208_v61, %v1182_v14  ;;  %v1213_v50 = vadd.f32 %v4931_v38, %v1179_v9  ;;  %v5106_v6 = vpop.permute.xlu1 %602  ;;  %v5108_v2 = vadd.f32 %v1240_v35, %v1214_v28  ;;  %v591_v30 = vadd.f32 %v583_v24, %v541_v49 }
  0xc9   : > { %8227 = vst [vmem:[#allocation87_spill] sm:$0xff] %v5106_v6  ;;  %v5110_v4 = vadd.f32 %v631_v48, %v589_v63  ;;  %v1215_v8 = vadd.f32 %v1207_v43, %v1181_v41  ;;  %v634_v44 = vmul.f32 %v4683_v18, %v5106_v6  ;;  %v1242_v25 = vmul.f32 %v4688_v20, %v5106_v6 }
  0xca   : > { %v633_v53 = vmul.f32 %v4695_v22, %v5106_v6  ;;  %v1241_v9 = vmul.f32 %v4698_v23, %v5106_v6  ;;  %v5120_v7 = vpop.permute.xlu0 %699  ;;  %v5122_v35 = vadd.f32 %v1239_v29, %v1213_v50  ;;  %v518_v63 = vmul.f32 %v4660_v10, %v5095_v39 }
  0xcb   : > { %8228 = vst [vmem:[#allocation88_spill] sm:$0xff] %v5120_v7  ;;  %v1178_v43 = vmul.f32 %v4673_v15, %v5095_v39  ;;  %v517_v38 = vmul.f32 %v4676_v16, %v5095_v39  ;;  %v5130_v61 = vadd.f32 %v634_v44, %v592_v33  ;;  %v5132_v24 = vadd.f32 %v1242_v25, %v1216_v11 }
  0xcc   : > { %v5134_v28 = vadd.f32 %v633_v53, %v591_v30  ;;  %v1177_v54 = vmul.f32 %v4679_v17, %v5095_v39  ;;  %v5138_v56 = vadd.f32 %v1241_v9, %v1215_v8  ;;  %v5142_v10 = vmul.f32 %v4743_v45, %v5120_v7 }
  0xcd   : > { %v5146_v15 = vmul.f32 %v4752_v57, %v5120_v7  ;;  %v5150_v16 = vmul.f32 %v4756_v58, %v5120_v7  ;;  %v5152_v11 = vpop.permute.xlu1 %704  ;;  %v5156_v30 = vmul.f32 %v4764_v59, %v5120_v7  ;;  %v1589_v17 = vmul.f32 %v4691_v21, %v5062_v52  ;;  %v8243_v21 = vld [vmem:[#allocation66_spill] sm:$0xff] }
  0xce   : > { %8229 = vst [vmem:[#allocation89_spill] sm:$0xff] %v5152_v11  ;;  %v1595_v8 = vadd.f32 %v1587_v5, %v4809_v32  ;;  %v1655_v25 = vmul.f32 %v4767_v60, %v5083_v55  ;;  %v5163_v14 = vpop.permute.xlu0 %531  ;;  %v5167_v49 = vmul.f32 %v4743_v45, %v5152_v11  ;;  %v5171_v48 = vmul.f32 %v4752_v57, %v5152_v11 }
  0xcf   : > { %8230 = vst [vmem:[#allocation90_spill] sm:$0xff] %v5163_v14  ;;  %v5175_v41 = vmul.f32 %v4756_v58, %v5152_v11  ;;  %v1657_v5 = vmul.f32 %v4767_v60, %v5106_v6  ;;  %v544_v29 = vadd.f32 %v5163_v14, %v5042_v19  ;;  %v1184_v33 = vadd.f32 %v5046_v3, %v5163_v14 }
  0xd0   : > { %v543_v50 = vadd.f32 %v5163_v14, %v5050_v13  ;;  %v1183_v44 = vadd.f32 %v5060_v40, %v5163_v14  ;;  %v5189_v53 = vmul.f32 %v4764_v59, %v5152_v11  ;;  %v1597_v9 = vadd.f32 %v1589_v17, %v4874_v46 }
  0xd1   : > { %v2004_v7 = vmul.f32 %v4770_v51, %v5062_v52  ;;  %v2010_v19 = vadd.f32 %v5069_v42, %v4809_v32  ;;  %v5196_v60 = vpop.permute.xlu1 %536  ;;  %v5199_v3 = vadd.f32 %v4956_v27, %v544_v29  ;;  %v5202_v13 = vadd.f32 %v4960_v31, %v1184_v33 }
  0xd2   : > { %8231 = vst [vmem:[#allocation91_spill] sm:$0xff] %v5196_v60  ;;  %v5205_v40 = vadd.f32 %v4964_v26, %v543_v50  ;;  %v1629_v11 = vadd.f32 %v4937_v47, %v1595_v8  ;;  %v5208_v17 = vpop.permute.xlu0 %750  ;;  %v546_v51 = vadd.f32 %v5196_v60, %v518_v63  ;;  %v1186_v14 = vadd.f32 %v1178_v43, %v5196_v60 }
  0xd3   : > { %8232 = vst [vmem:[#allocation92_spill] sm:$0xff] %v5208_v17  ;;  %v545_v42 = vadd.f32 %v5196_v60, %v517_v38  ;;  %v5214_v39 = vadd.f32 %v4968_v34, %v1183_v44  ;;  %v1185_v27 = vadd.f32 %v1177_v54, %v5196_v60  ;;  %v1631_v31 = vadd.f32 %v5015_v37, %v1597_v9  ;;  %v8234_v37 = vld [vmem:[#allocation83_spill] sm:$0xff] }
  0xd4   : > { %v5218_v29 = vadd.f32 %v1655_v25, %v1629_v11  ;;  %v2012_v26 = vadd.f32 %v2004_v7, %v4874_v46  ;;  %v2044_v47 = vadd.f32 %v4941_v1, %v2010_v19  ;;  %v2070_v63 = vmul.f32 %v4779_v0, %v5083_v55  ;;  %v8235_v7 = vld [vmem:[#allocation32_spill] sm:$0xff]  ;;  %v8239_v9 = vld [vmem:[#allocation11_spill] sm:$0xff] }
  0xd5   : > { %v2072_v43 = vmul.f32 %v4779_v0, %v5106_v6  ;;  %v1588_v34 = vmul.f32 %v4773_v62, %v5062_v52  ;;  %v5228_v38 = vadd.f32 %v1657_v5, %v1631_v31  ;;  %v1594_v11 = vadd.f32 %v8234_v37, %v4809_v32  ;;  %v8237_v5 = vld [vmem:[#allocation28_spill] sm:$0xff] }
  0xd6   : > { %v2046_v54 = vadd.f32 %v5019_v36, %v2012_v26  ;;  %v1654_v8 = vmul.f32 %v8235_v7, %v5083_v55  ;;  %v5235_v1 = vpop.permute.xlu1 %560  ;;  %v5237_v25 = vadd.f32 %v2070_v63, %v2044_v47  ;;  %v1656_v50 = vmul.f32 %v8235_v7, %v5106_v6  ;;  %v8240_v31 = vld [vmem:[#allocation12_spill] sm:$0xff]  ;;  %v8241_v47 = vld [vmem:[#allocation13_spill] sm:$0xff] }
  0xd7   : > { %8233 = vst [vmem:[#allocation93_spill] sm:$0xff] %v5228_v38  ;;  %8236 = vst [vmem:[#allocation83_spill] sm:$0xff] %v5235_v1  ;;  %v1596_v33 = vadd.f32 %v1588_v34, %v4874_v46  ;;  %v5244_v44 = vmul.f32 %v8237_v5, %v5062_v52  ;;  %v5246_v36 = vpop.permute.xlu0 %610  ;;  %v588_v19 = vmul.f32 %v8239_v9, %v5235_v1  ;;  %v8242_v34 = vld [vmem:[#allocation14_spill] sm:$0xff]  ;;  %v8245_v55 = vld [vmem:[#allocation84_spill] sm:$0xff] }
  0xd8   : > { %8238 = vst [vmem:[#allocation94_spill] sm:$0xff] %v5246_v36  ;;  %v1212_v26 = vmul.f32 %v8240_v31, %v5235_v1  ;;  %v587_v63 = vmul.f32 %v8241_v47, %v5235_v1  ;;  %v1211_v37 = vmul.f32 %v8242_v34, %v5235_v1  ;;  %v638_v7 = vmul.f32 %v4683_v18, %v5246_v36  ;;  %v8244_v1 = vld [vmem:[#allocation78_spill] sm:$0xff] }
  0xd9   : > { %v1246_v52 = vmul.f32 %v4688_v20, %v5246_v36  ;;  %v637_v5 = vmul.f32 %v4695_v22, %v5246_v36  ;;  %v1245_v9 = vmul.f32 %v4698_v23, %v5246_v36  ;;  %v596_v62 = vadd.f32 %v588_v19, %v546_v51  ;;  %v8260_v19 = vld [vmem:[#allocation45_spill] sm:$0xff]  ;;  %v8262_v36 = vld [vmem:[#allocation46_spill] sm:$0xff] }
  0xda   : > { %v1220_v31 = vadd.f32 %v1212_v26, %v1186_v14  ;;  %v595_v0 = vadd.f32 %v587_v63, %v545_v42  ;;  %v1219_v60 = vadd.f32 %v1211_v37, %v1185_v27  ;;  %v5264_v47 = vadd.f32 %v2072_v43, %v2046_v54  ;;  %v8254_v43 = vld [vmem:[#allocation30_spill] sm:$0xff] }
  0xdb   : > { %v1628_v34 = vadd.f32 %v8243_v21, %v1594_v11  ;;  %v1630_v6 = vadd.f32 %v8244_v1, %v1596_v33  ;;  %v5270_v17 = vadd.f32 %v8245_v55, %v4809_v32  ;;  %v5272_v38 = vpop.permute.xlu1 %648  ;;  %v5274_v59 = vpop.permute.xlu0 %802  ;;  %v5276_v58 = vadd.f32 %v638_v7, %v596_v62  ;;  %v8253_v21 = vld [vmem:[#allocation26_spill] sm:$0xff]  ;;  %v8255_v55 = vld [vmem:[#allocation31_spill] sm:$0xff]  ;;  %v8256_v1 = vld [vmem:[#allocation33_spill] sm:$0xff] }
  0xdc   : > { %8247 = vst [vmem:[#allocation12_spill] sm:$0xff] %v5272_v38  ;;  %8248 = vst [vmem:[#allocation13_spill] sm:$0xff] %v5274_v59  ;;  %v5278_v51 = vadd.f32 %v1246_v52, %v1220_v31  ;;  %v5280_v14 = vadd.f32 %v637_v5, %v595_v0  ;;  %v5282_v42 = vadd.f32 %v1245_v9, %v1219_v60  ;;  %v8257_v62 = vld [vmem:[#allocation39_spill] sm:$0xff]  ;;  %v8258_v0 = vld [vmem:[#allocation40_spill] sm:$0xff] }
  0xdd   : > { %8246 = vst [vmem:[#allocation11_spill] sm:$0xff] %v5270_v17  ;;  %8249 = vst [vmem:[#allocation14_spill] sm:$0xff] %v5276_v58  ;;  %v682_v27 = vmul.f32 %v8253_v21, %v5272_v38  ;;  %v1274_v54 = vmul.f32 %v8254_v43, %v5272_v38  ;;  %v681_v11 = vmul.f32 %v8255_v55, %v5272_v38  ;;  %v8259_v60 = vld [vmem:[#allocation41_spill] sm:$0xff] }
  0xde   : > { %8250 = vst [vmem:[#allocation66_spill] sm:$0xff] %v5278_v51  ;;  %8251 = vst [vmem:[#allocation78_spill] sm:$0xff] %v5280_v14  ;;  %v1273_v33 = vmul.f32 %v8256_v1, %v5272_v38  ;;  %v826_v52 = vmul.f32 %v8257_v62, %v5274_v59  ;;  %v1346_v7 = vmul.f32 %v8258_v0, %v5274_v59  ;;  %v8263_v14 = vld [vmem:[#allocation49_spill] sm:$0xff] }
  0xdf   : > { %8252 = vst [vmem:[#allocation84_spill] sm:$0xff] %v5282_v42  ;;  %v825_v5 = vmul.f32 %v8259_v60, %v5274_v59  ;;  %v1345_v26 = vmul.f32 %v8260_v19, %v5274_v59  ;;  %v690_v63 = vadd.f32 %v682_v27, %v5103_v12  ;;  %v1282_v37 = vadd.f32 %v1274_v54, %v5108_v2  ;;  %v5304_v32 = vpop.permute.xlu0 %814 }
  0xe0   : > { %v689_v9 = vadd.f32 %v681_v11, %v5110_v4  ;;  %v1281_v31 = vadd.f32 %v1273_v33, %v5122_v35  ;;  %8261 = vst [vmem:[#allocation26_spill] sm:$0xff] %v5304_v32  ;;  %v1689_v42 = vmul.f32 %v8262_v36, %v5272_v38  ;;  %v2104_v51 = vmul.f32 %v8263_v14, %v5272_v38  ;;  %v5314_v59 = vpop.permute.xlu1 %735  ;;  %v8270_v33 = vld [vmem:[#allocation74_spill] sm:$0xff] }
  0xe1   : > { %v5310_v58 = vadd.f32 %v1654_v8, %v1628_v34  ;;  %v5312_v17 = vadd.f32 %v1656_v50, %v1630_v6  ;;  %8264 = vst [vmem:[#allocation30_spill] sm:$0xff] %v5314_v59  ;;  %v962_v12 = vmax.f32 %v690_v63, 0.0  ;;  %v1434_v2 = vmax.f32 %v1282_v37, 0.0  ;;  %v8271_v63 = vld [vmem:[#allocation75_spill] sm:$0xff] }
  0xe2   : > { %v961_v27 = vmax.f32 %v689_v9, 0.0  ;;  %v1433_v4 = vmax.f32 %v1281_v31, 0.0  ;;  %v754_v35 = vadd.f32 %v5314_v59, %v5142_v10  ;;  %v1306_v54 = vadd.f32 %v5146_v15, %v5314_v59  ;;  %v8272_v9 = vld [vmem:[#allocation76_spill] sm:$0xff] }
  0xe3   : > { %v753_v11 = vadd.f32 %v5314_v59, %v5150_v16  ;;  %v1305_v8 = vadd.f32 %v5156_v30, %v5314_v59  ;;  %v5326_v6 = vmul.f32 %v8257_v62, %v5304_v32  ;;  %v5330_v50 = vmul.f32 %v8258_v0, %v5304_v32  ;;  %v8269_v16 = vld [vmem:[#allocation73_spill] sm:$0xff] }
  0xe4   : > { %v5334_v10 = vmul.f32 %v8259_v60, %v5304_v32  ;;  %v5338_v15 = vmul.f32 %v8260_v19, %v5304_v32  ;;  %v794_v34 = vadd.f32 %v8269_v16, %v754_v35  ;;  %v1330_v30 = vadd.f32 %v8270_v33, %v1306_v54  ;;  %v5344_v59 = vpop.permute.xlu1 %740  ;;  %v8275_v32 = vld [vmem:[#allocation50_spill] sm:$0xff] }
  0xe5   : > { %8265 = vst [vmem:[#allocation31_spill] sm:$0xff] %v5326_v6  ;;  %8266 = vst [vmem:[#allocation33_spill] sm:$0xff] %v5330_v50  ;;  %v793_v37 = vadd.f32 %v8271_v63, %v753_v11  ;;  %v1329_v31 = vadd.f32 %v8272_v9, %v1305_v8  ;;  %v5346_v6 = vpop.permute.xlu0 %652  ;;  %v5349_v50 = vadd.f32 %v1689_v42, %v5218_v29 }
  0xe6   : > { %8267 = vst [vmem:[#allocation39_spill] sm:$0xff] %v5334_v10  ;;  %8268 = vst [vmem:[#allocation40_spill] sm:$0xff] %v5338_v15  ;;  %v5352_v10 = vadd.f32 %v2104_v51, %v5237_v25  ;;  %v5356_v15 = vmul.f32 %v8275_v32, %v5272_v38  ;;  %v5360_v35 = vadd.f32 %v5244_v44, %v4874_v46 }
  0xe7   : > { %8273 = vst [vmem:[#allocation46_spill] sm:$0xff] %v5344_v59  ;;  %8274 = vst [vmem:[#allocation49_spill] sm:$0xff] %v5346_v6  ;;  %v684_v54 = vmul.f32 %v8253_v21, %v5346_v6  ;;  %v1276_v11 = vmul.f32 %v8254_v43, %v5346_v6  ;;  %v683_v29 = vmul.f32 %v8255_v55, %v5346_v6 }
  0xe8   : > { %8276 = vst [vmem:[#allocation73_spill] sm:$0xff] %v5360_v35  ;;  %v1275_v25 = vmul.f32 %v8256_v1, %v5346_v6  ;;  %v756_v51 = vadd.f32 %v5344_v59, %v5167_v49  ;;  %v834_v42 = vadd.f32 %v826_v52, %v794_v34  ;;  %v1308_v44 = vadd.f32 %v5171_v48, %v5344_v59 }
  0xe9   : > { %v1354_v8 = vadd.f32 %v1346_v7, %v1330_v30  ;;  %v692_v16 = vadd.f32 %v684_v54, %v5130_v61  ;;  %v1284_v33 = vadd.f32 %v1276_v11, %v5132_v24  ;;  %v691_v63 = vadd.f32 %v683_v29, %v5134_v28  ;;  %v5378_v46 = vpop.permute.xlu0 %656  ;;  %v5384_v48 = vpop.permute.xlu1 %766  ;;  %v8280_v54 = vld [vmem:[#allocation34_spill] sm:$0xff]  ;;  %v8281_v29 = vld [vmem:[#allocation37_spill] sm:$0xff] }
  0xea   : > { %v1283_v9 = vadd.f32 %v1275_v25, %v5138_v56  ;;  %8277 = vst [vmem:[#allocation74_spill] sm:$0xff] %v5378_v46  ;;  %v755_v38 = vadd.f32 %v5344_v59, %v5175_v41  ;;  %v833_v35 = vadd.f32 %v825_v5, %v793_v37  ;;  %v1307_v49 = vadd.f32 %v5189_v53, %v5344_v59 }
  0xeb   : > { %v1353_v52 = vadd.f32 %v1345_v26, %v1329_v31  ;;  %8278 = vst [vmem:[#allocation75_spill] sm:$0xff] %v5384_v48  ;;  %v964_v7 = vmax.f32 %v692_v16, 0.0  ;;  %v1436_v61 = vmax.f32 %v1284_v33, 0.0  ;;  %v963_v34 = vmax.f32 %v691_v63, 0.0  ;;  %v8282_v16 = vld [vmem:[#allocation38_spill] sm:$0xff] }
  0xec   : > { %v1435_v24 = vmax.f32 %v1283_v9, 0.0  ;;  %v686_v28 = vmul.f32 %v8253_v21, %v5378_v46  ;;  %v1278_v56 = vmul.f32 %v8254_v43, %v5378_v46  ;;  %v685_v41 = vmul.f32 %v8255_v55, %v5378_v46  ;;  %v8283_v63 = vld [vmem:[#allocation42_spill] sm:$0xff] }
  0xed   : > { %v1277_v5 = vmul.f32 %v8256_v1, %v5378_v46  ;;  %v978_v53 = vpack.c.bf16 %v964_v7, %v962_v12  ;;  %v1450_v26 = vpack.c.bf16 %v1436_v61, %v1434_v2  ;;  %v977_v30 = vpack.c.bf16 %v963_v34, %v961_v27  ;;  %v5394_v31 = vpop.permute.xlu0 %842  ;;  %v8284_v12 = vld [vmem:[#allocation43_spill] sm:$0xff]  ;;  %v8285_v27 = vld [vmem:[#allocation44_spill] sm:$0xff] }
  0xee   : > { %v1449_v37 = vpack.c.bf16 %v1435_v24, %v1433_v4  ;;  %8279 = vst [vmem:[#allocation76_spill] sm:$0xff] %v5394_v31  ;;  %v788_v11 = vmul.f32 %v8280_v54, %v5384_v48  ;;  %v1324_v25 = vmul.f32 %v8281_v29, %v5384_v48  ;;  %v787_v33 = vmul.f32 %v8282_v16, %v5384_v48  ;;  %v8286_v7 = vld [vmem:[#allocation47_spill] sm:$0xff]  ;;  %v5411_v24 = vpop.permute.xlu1 %606 }
  0xef   : > { %v1323_v9 = vmul.f32 %v8283_v63, %v5384_v48  ;;  %1058 = vmatprep.subr.bf16.mxu0 %v978_v53  ;;  %1457 = vmatprep.subr.bf16.mxu1 %v1450_v26  ;;  %v866_v2 = vmul.f32 %v8284_v12, %v5394_v31  ;;  %v1370_v4 = vmul.f32 %v8285_v27, %v5394_v31 }
  0xf0   : > { %v865_v61 = vmul.f32 %v8286_v7, %v5394_v31  ;;  %8287 = vst [vmem:[#allocation50_spill] sm:$0xff] %v5411_v24  ;;  %1059 = vmatpush1.bf16.msra.mxu0 %v977_v30  ;;  %1458 = vmatpush1.bf16.msra.mxu1 %v1449_v37  ;;  %v5413_v59 = vadd.f32 %v788_v11, %v756_v51 }
  0xf1   : > { %v5415_v48 = vadd.f32 %v1324_v25, %v1308_v44  ;;  %v5417_v53 = vadd.f32 %v787_v33, %v755_v38  ;;  %v636_v63 = vmul.f32 %v4683_v18, %v5411_v24  ;;  %v1244_v16 = vmul.f32 %v4688_v20, %v5411_v24  ;;  %v5428_v51 = vpop.permute.xlu0 %850 }
  0xf2   : > { %v635_v34 = vmul.f32 %v4695_v22, %v5411_v24  ;;  %v1243_v30 = vmul.f32 %v4698_v23, %v5411_v24  ;;  %8288 = vst [vmem:[#allocation34_spill] sm:$0xff] %v5428_v51  ;;  %v5430_v44 = vadd.f32 %v866_v2, %v834_v42  ;;  %v5432_v38 = vadd.f32 %v1370_v4, %v1354_v8  ;;  %v8292_v23 = vld [vmem:[#allocation48_spill] sm:$0xff] }
  0xf3   : > { %v5434_v37 = vadd.f32 %v865_v61, %v833_v35  ;;  %v5436_v11 = vadd.f32 %v1323_v9, %v1307_v49  ;;  %v644_v18 = vadd.f32 %v636_v63, %v5199_v3  ;;  %v1252_v20 = vadd.f32 %v1244_v16, %v5202_v13  ;;  %v5456_v13 = vpop.permute.xlu1 %709  ;;  %v8298_v2 = vld [vmem:[#allocation20_spill] sm:$0xff]  ;;  %v8300_v61 = vld [vmem:[#allocation57_spill] sm:$0xff] }
  0xf4   : > { %8289 = vst [vmem:[#allocation37_spill] sm:$0xff] %v5430_v44  ;;  %8290 = vst [vmem:[#allocation43_spill] sm:$0xff] %v5432_v38  ;;  %v643_v25 = vadd.f32 %v635_v34, %v5205_v40  ;;  %v1251_v22 = vadd.f32 %v1243_v30, %v5214_v39  ;;  %v1369_v33 = vmul.f32 %v8292_v23, %v5394_v31  ;;  %v8302_v30 = vld [vmem:[#allocation58_spill] sm:$0xff]  ;;  %v8313_v38 = vld [vmem:[#allocation92_spill] sm:$0xff] }
  0xf5   : > { %8291 = vst [vmem:[#allocation44_spill] sm:$0xff] %v5434_v37  ;;  %v5446_v42 = vmul.f32 %v8284_v12, %v5428_v51  ;;  %v5450_v35 = vmul.f32 %v8285_v27, %v5428_v51  ;;  %v5454_v3 = vmul.f32 %v8286_v7, %v5428_v51  ;;  %8296 = vst [vmem:[#allocation96_spill] sm:$0xff] %v5456_v13  ;;  %v5484_v4 = vpop.permute.xlu0 %926 }
  0xf6   : > { %v5458_v40 = vadd.f32 %v686_v28, %v644_v18  ;;  %v5460_v39 = vadd.f32 %v1278_v56, %v1252_v20  ;;  %v5462_v8 = vadd.f32 %v685_v41, %v643_v25  ;;  %v5464_v49 = vadd.f32 %v1277_v5, %v1251_v22  ;;  %8299 = vst [vmem:[#allocation20_spill] sm:$0xff] %v5484_v4  ;;  %v8304_v20 = vld [vmem:[#allocation61_spill] sm:$0xff]  ;;  %v8306_v22 = vld [vmem:[#allocation62_spill] sm:$0xff] }
  0xf7   : > { %8293 = vst [vmem:[#allocation47_spill] sm:$0xff] %v5446_v42  ;;  %8294 = vst [vmem:[#allocation48_spill] sm:$0xff] %v5450_v35  ;;  %v5466_v16 = vadd.f32 %v1369_v33, %v1353_v52  ;;  %v5470_v63 = vmul.f32 %v4743_v45, %v5456_v13  ;;  %v5474_v9 = vmul.f32 %v4752_v57, %v5456_v13  ;;  %v5502_v5 = vpop.permute.xlu1 %714  ;;  %v8309_v52 = vld [vmem:[#allocation22_spill] sm:$0xff] }
  0xf8   : > { %8295 = vst [vmem:[#allocation95_spill] sm:$0xff] %v5454_v3  ;;  %v5478_v28 = vmul.f32 %v8298_v2, %v5456_v13  ;;  %v5488_v34 = vmul.f32 %v8300_v61, %v5484_v4  ;;  %v5492_v18 = vmul.f32 %v8302_v30, %v5484_v4  ;;  %v5496_v25 = vmul.f32 %v8304_v20, %v5484_v4  ;;  %v8342_v3 = vld [vmem:[#allocation84_spill] sm:$0xff] }
  0xf9   : > { %8297 = vst [vmem:[#allocation97_spill] sm:$0xff] %v5466_v16  ;;  %v5500_v33 = vmul.f32 %v8306_v22, %v5484_v4  ;;  %8308 = vst [vmem:[#allocation102_spill] sm:$0xff] %v5502_v5  ;;  %v5506_v41 = vmul.f32 %v8309_v52, %v5456_v13  ;;  %v5510_v56 = vmul.f32 %v8292_v23, %v5428_v51  ;;  %v5524_v51 = vpop.permute.xlu0 %930 }
  0xfa   : > { %8301 = vst [vmem:[#allocation98_spill] sm:$0xff] %v5488_v34  ;;  %8303 = vst [vmem:[#allocation99_spill] sm:$0xff] %v5492_v18  ;;  %v1691_v26 = vmul.f32 %v8262_v36, %v5346_v6  ;;  %v2106_v31 = vmul.f32 %v8263_v14, %v5346_v6  ;;  %v732_v4 = vmul.f32 %v4743_v45, %v5502_v5  ;;  %v8312_v18 = vld [vmem:[#allocation93_spill] sm:$0xff] }
  0xfb   : > { %8305 = vst [vmem:[#allocation100_spill] sm:$0xff] %v5496_v25  ;;  %8307 = vst [vmem:[#allocation101_spill] sm:$0xff] %v5500_v33  ;;  %v1304_v33 = vmul.f32 %v4752_v57, %v5502_v5  ;;  %v731_v13 = vmul.f32 %v8298_v2, %v5502_v5  ;;  %v1303_v25 = vmul.f32 %v8309_v52, %v5502_v5 }
  0xfc   : > { %8310 = vst [vmem:[#allocation22_spill] sm:$0xff] %v5510_v56  ;;  %8311 = vst [vmem:[#allocation103_spill] sm:$0xff] %v5524_v51  ;;  %v1699_v34 = vadd.f32 %v1691_v26, %v8312_v18  ;;  %v2114_v16 = vadd.f32 %v2106_v31, %v5264_v47  ;;  %v1690_v37 = vmul.f32 %v8275_v32, %v5346_v6 }
  0xfd   : > { %v1696_v45 = vadd.f32 %v5356_v15, %v5310_v58  ;;  %v5533_v57 = vadd.f32 %v8313_v38, %v732_v4  ;;  %v5537_v2 = vmul.f32 %v8300_v61, %v5524_v51  ;;  %v5540_v52 = vadd.f32 %v1304_v33, %v8313_v38  ;;  %v5560_v4 = vpop.permute.xlu1 %806 }
  0xfe   : > { %v5544_v26 = vmul.f32 %v8302_v30, %v5524_v51  ;;  %v5547_v47 = vadd.f32 %v8313_v38, %v731_v13  ;;  %v5551_v58 = vmul.f32 %v8304_v20, %v5524_v51  ;;  %v5554_v15 = vadd.f32 %v1303_v25, %v8313_v38  ;;  %8318 = vst [vmem:[#allocation107_spill] sm:$0xff] %v5560_v4  ;;  %v8338_v30 = vld [vmem:[#allocation91_spill] sm:$0xff] }
  0xff   : > { %8314 = vst [vmem:[#allocation93_spill] sm:$0xff] %v5537_v2  ;;  %v5558_v31 = vmul.f32 %v8306_v22, %v5524_v51  ;;  %v1851_v18 = vmax.f32 %v1699_v34, 0.0  ;;  %v2266_v33 = vmax.f32 %v2114_v16, 0.0  ;;  %v1698_v5 = vadd.f32 %v1690_v37, %v5312_v17  ;;  %v8323_v34 = vld [vmem:[#allocation11_spill] sm:$0xff] }
 0x100   : > { %8315 = vst [vmem:[#allocation104_spill] sm:$0xff] %v5544_v26  ;;  %8316 = vst [vmem:[#allocation105_spill] sm:$0xff] %v5551_v58  ;;  %v1848_v26 = vmax.f32 %v1696_v45, 0.0  ;;  %v828_v13 = vmul.f32 %v8257_v62, %v5560_v4  ;;  %v1348_v58 = vmul.f32 %v8258_v0, %v5560_v4  ;;  %v827_v25 = vmul.f32 %v8259_v60, %v5560_v4  ;;  %v8324_v45 = vld [vmem:[#allocation67_spill] sm:$0xff] }
 0x101   : > { %8317 = vst [vmem:[#allocation106_spill] sm:$0xff] %v5558_v31  ;;  %v1347_v51 = vmul.f32 %v8260_v19, %v5560_v4  ;;  %v8319_v38 = vmax.f32 %v5349_v50, 0.0  ;;  %v8321_v16 = vmax.f32 %v5352_v10, 0.0  ;;  %v1850_v37 = vmax.f32 %v1698_v5, 0.0  ;;  %v8326_v10 = vld [vmem:[#allocation73_spill] sm:$0xff]  ;;  %v8344_v19 = vld [vmem:[#allocation18_spill] sm:$0xff] }
 0x102   : > { %v2043_v2 = vadd.f32 %v8324_v45, %v8323_v34  ;;  %v5582_v22 = vadd.f32 %v828_v13, %v5413_v59  ;;  %v5585_v20 = vadd.f32 %v1348_v58, %v5415_v48  ;;  %v5588_v4 = vadd.f32 %v827_v25, %v5417_v53  ;;  %v8330_v45 = vld [vmem:[#allocation87_spill] sm:$0xff]  ;;  %v5601_v13 = vpop.permute.xlu1 %660  ;;  %v8332_v48 = vld [vmem:[#allocation12_spill] sm:$0xff] }
 0x103   : > { %v5573_v31 = vpack.c.bf16 %v1851_v18, %v8319_v38  ;;  %v5577_v17 = vpack.c.bf16 %v2266_v33, %v8321_v16  ;;  %v5591_v50 = vadd.f32 %v1347_v51, %v5436_v11  ;;  %v5593_v38 = vpack.c.bf16 %v1850_v37, %v1848_v26  ;;  %v8327_v18 = vld [vmem:[#allocation79_spill] sm:$0xff]  ;;  %v8328_v33 = vld [vmem:[#allocation85_spill] sm:$0xff]  ;;  %8331 = vst [vmem:[#allocation67_spill] sm:$0xff] %v5601_v13  ;;  %v8333_v58 = vld [vmem:[#allocation56_spill] sm:$0xff] }
 0x104   : > { %v2045_v5 = vadd.f32 %v8327_v18, %v8326_v10  ;;  %v8329_v16 = vld [vmem:[#allocation55_spill] sm:$0xff]  ;;  %v2103_v53 = vmul.f32 %v8333_v58, %v8332_v48  ;;  %v2105_v51 = vmul.f32 %v8333_v58, %v5346_v6  ;;  %v8334_v11 = vld [vmem:[#allocation80_spill] sm:$0xff]  ;;  %v8335_v26 = vld [vmem:[#allocation17_spill] sm:$0xff]  ;;  %v688_v18 = vmul.f32 %v8253_v21, %v5601_v13 }
 0x105   : > { %8320 = vst [vmem:[#allocation108_spill] sm:$0xff] %v5573_v31  ;;  %8322 = vst [vmem:[#allocation109_spill] sm:$0xff] %v5577_v17  ;;  %v2069_v34 = vmul.f32 %v8329_v16, %v8328_v33  ;;  %v2071_v59 = vmul.f32 %v8329_v16, %v8330_v45  ;;  %v1591_v25 = vmul.f32 %v8335_v26, %v8334_v11  ;;  %v8336_v37 = vld [vmem:[#allocation86_spill] sm:$0xff] }
 0x106   : > { %8325 = vst [vmem:[#allocation11_spill] sm:$0xff] %v5593_v38  ;;  %v1593_v10 = vmul.f32 %v8335_v26, %v8336_v37  ;;  %v1280_v45 = vmul.f32 %v8254_v43, %v5601_v13  ;;  %v687_v33 = vmul.f32 %v8255_v55, %v5601_v13  ;;  %v1279_v48 = vmul.f32 %v8256_v1, %v5601_v13  ;;  %v8337_v17 = vld [vmem:[#allocation90_spill] sm:$0xff]  ;;  %v8343_v55 = vld [vmem:[#allocation83_spill] sm:$0xff]  ;;  %v8345_v1 = vld [vmem:[#allocation69_spill] sm:$0xff] }
 0x107   : > { %v2077_v38 = vadd.f32 %v2069_v34, %v2043_v2  ;;  %v2079_v6 = vadd.f32 %v2071_v59, %v2045_v5  ;;  %v1599_v31 = vadd.f32 %v1591_v25, %v8337_v17  ;;  %v8339_v58 = vld [vmem:[#allocation14_spill] sm:$0xff]  ;;  %v1627_v60 = vmul.f32 %v8344_v19, %v8343_v55  ;;  %v5628_v5 = vpop.permute.xlu1 %745 }
 0x108   : > { %v1601_v61 = vadd.f32 %v1593_v10, %v8338_v30  ;;  %v696_v26 = vadd.f32 %v688_v18, %v8339_v58  ;;  %v8340_v16 = vld [vmem:[#allocation66_spill] sm:$0xff]  ;;  %v1287_v43 = vadd.f32 %v1279_v48, %v8342_v3  ;;  %8346 = vst [vmem:[#allocation73_spill] sm:$0xff] %v5628_v5  ;;  %v1309_v19 = vadd.f32 %v5506_v41, %v5628_v5 }
 0x109   : > { %v1288_v44 = vadd.f32 %v1280_v45, %v8340_v16  ;;  %v8341_v21 = vld [vmem:[#allocation78_spill] sm:$0xff]  ;;  %v2111_v35 = vadd.f32 %v2103_v53, %v2077_v38  ;;  %v2113_v42 = vadd.f32 %v2105_v51, %v2079_v6  ;;  %v1633_v2 = vadd.f32 %v8345_v1, %v1599_v31 }
 0x10a   : > { %v695_v56 = vadd.f32 %v687_v33, %v8341_v21  ;;  %v968_v34 = vmax.f32 %v696_v26, 0.0  ;;  %v1439_v10 = vmax.f32 %v1287_v43, 0.0  ;;  %v758_v16 = vadd.f32 %v5628_v5, %v5470_v63  ;;  %v8352_v41 = vld [vmem:[#allocation94_spill] sm:$0xff] }
 0x10b   : > { %v1440_v59 = vmax.f32 %v1288_v44, 0.0  ;;  %v1310_v33 = vadd.f32 %v5474_v9, %v5628_v5  ;;  %v757_v6 = vadd.f32 %v5628_v5, %v5478_v28  ;;  %v8347_v3 = vmax.f32 %v5458_v40, 0.0  ;;  %v8351_v28 = vld [vmem:[#allocation23_spill] sm:$0xff]  ;;  %v5654_v18 = vpop.permute.xlu1 %770  ;;  %v8356_v21 = vld [vmem:[#allocation38_spill] sm:$0xff] }
 0x10c   : > { %v967_v25 = vmax.f32 %v695_v56, 0.0  ;;  %v8348_v38 = vmax.f32 %v5460_v39, 0.0  ;;  %v8349_v56 = vmax.f32 %v5462_v8, 0.0  ;;  %v8350_v63 = vmax.f32 %v5464_v49, 0.0  ;;  %8353 = vst [vmem:[#allocation79_spill] sm:$0xff] %v5654_v18 }
 0x10d   : > { %v980_v31 = vpack.c.bf16 %v968_v34, %v8347_v3  ;;  %v2263_v58 = vmax.f32 %v2111_v35, 0.0  ;;  %v2265_v9 = vmax.f32 %v2113_v42, 0.0  ;;  %v1635_v53 = vadd.f32 %v1627_v60, %v1601_v61  ;;  %v8355_v35 = vld [vmem:[#allocation24_spill] sm:$0xff] }
 0x10e   : > { %v1452_v44 = vpack.c.bf16 %v1440_v59, %v8348_v38  ;;  %v979_v45 = vpack.c.bf16 %v967_v25, %v8349_v56  ;;  %v1451_v48 = vpack.c.bf16 %v1439_v10, %v8350_v63  ;;  %v1659_v51 = vmul.f32 %v8351_v28, %v5411_v24 }
 0x10f   : > { %1060 = vmatprep.subr.bf16.mxu0 %v980_v31  ;;  %v1661_v40 = vmul.f32 %v8351_v28, %v8352_v41  ;;  %v1693_v39 = vmul.f32 %v8262_v36, %v5378_v46  ;;  %v1695_v8 = vmul.f32 %v8262_v36, %v5601_v13  ;;  %v5656_v42 = vpack.c.bf16 %v2265_v9, %v2263_v58  ;;  %v8357_v36 = vld [vmem:[#allocation42_spill] sm:$0xff] }
 0x110   : > { %1459 = vmatprep.subr.bf16.mxu1 %v1452_v44  ;;  %1061 = vmatpush1.bf16.msra.mxu0 %v979_v45  ;;  %v1667_v60 = vadd.f32 %v1659_v51, %v1633_v2  ;;  %v2006_v49 = vmul.f32 %v8355_v35, %v8334_v11  ;;  %v790_v61 = vmul.f32 %v8280_v54, %v5654_v18  ;;  %v5671_v44 = vpop.permute.xlu1 %774 }
 0x111   : > { %1460 = vmatpush1.bf16.msra.mxu1 %v1451_v48  ;;  %8354 = vst [vmem:[#allocation17_spill] sm:$0xff] %v5656_v42  ;;  %v1326_v26 = vmul.f32 %v8281_v29, %v5654_v18  ;;  %v789_v43 = vmul.f32 %v8356_v21, %v5654_v18  ;;  %v1325_v1 = vmul.f32 %v8357_v36, %v5654_v18  ;;  %8358 = vst [vmem:[#allocation14_spill] sm:$0xff] %v5671_v44  ;;  %v8359_v48 = vld [vmem:[#allocation19_spill] sm:$0xff] }
 0x112   : > { %v1669_v34 = vadd.f32 %v1661_v40, %v1635_v53  ;;  %v1701_v59 = vadd.f32 %v1693_v39, %v1667_v60  ;;  %v2008_v2 = vmul.f32 %v8355_v35, %v8336_v37  ;;  %v2014_v25 = vadd.f32 %v2006_v49, %v8337_v17  ;;  %v8361_v40 = vld [vmem:[#allocation27_spill] sm:$0xff] }
 0x113   : > { %v798_v10 = vadd.f32 %v790_v61, %v758_v16  ;;  %v1334_v3 = vadd.f32 %v1326_v26, %v1310_v33  ;;  %v797_v31 = vadd.f32 %v789_v43, %v757_v6  ;;  %v1333_v38 = vadd.f32 %v1325_v1, %v1309_v19  ;;  %v8360_v19 = vld [vmem:[#allocation70_spill] sm:$0xff]  ;;  %v8364_v43 = vld [vmem:[#allocation31_spill] sm:$0xff] }
 0x114   : > { %v1703_v56 = vadd.f32 %v1695_v8, %v1669_v34  ;;  %v1853_v45 = vmax.f32 %v1701_v59, 0.0  ;;  %v2016_v63 = vadd.f32 %v2008_v2, %v8338_v30  ;;  %v2042_v58 = vmul.f32 %v8359_v48, %v8343_v55 }
 0x115   : > { %v792_v9 = vmul.f32 %v8280_v54, %v5671_v44  ;;  %v1328_v53 = vmul.f32 %v8281_v29, %v5671_v44  ;;  %v791_v16 = vmul.f32 %v8356_v21, %v5671_v44  ;;  %v1327_v33 = vmul.f32 %v8357_v36, %v5671_v44  ;;  %v5697_v21 = vpop.permute.xlu1 %846 }
 0x116   : > { %v1855_v6 = vmax.f32 %v1703_v56, 0.0  ;;  %v2048_v28 = vadd.f32 %v8360_v19, %v2014_v25  ;;  %v2050_v51 = vadd.f32 %v2042_v58, %v2016_v63  ;;  %v2074_v39 = vmul.f32 %v8361_v40, %v5411_v24  ;;  %8363 = vst [vmem:[#allocation78_spill] sm:$0xff] %v5697_v21  ;;  %v8368_v58 = vld [vmem:[#allocation25_spill] sm:$0xff] }
 0x117   : > { %v800_v8 = vadd.f32 %v792_v9, %v5533_v57  ;;  %v1336_v54 = vadd.f32 %v1328_v53, %v5540_v52  ;;  %v799_v60 = vadd.f32 %v791_v16, %v5547_v47  ;;  %v1335_v29 = vadd.f32 %v1327_v33, %v5554_v15  ;;  %v8365_v57 = vld [vmem:[#allocation33_spill] sm:$0xff]  ;;  %v8366_v47 = vld [vmem:[#allocation39_spill] sm:$0xff]  ;;  %v8367_v15 = vld [vmem:[#allocation40_spill] sm:$0xff] }
 0x118   : > { %v5691_v35 = vpack.c.bf16 %v1855_v6, %v1853_v45  ;;  %v2076_v49 = vmul.f32 %v8361_v40, %v8352_v41  ;;  %v2082_v61 = vadd.f32 %v2074_v39, %v2048_v28  ;;  %v2108_v26 = vmul.f32 %v8263_v14, %v5378_v46  ;;  %v8370_v39 = vld [vmem:[#allocation21_spill] sm:$0xff] }
 0x119   : > { %v5700_v36 = vadd.f32 %v8364_v43, %v800_v8  ;;  %v5703_v52 = vadd.f32 %v8365_v57, %v1336_v54  ;;  %v5706_v1 = vadd.f32 %v8366_v47, %v799_v60  ;;  %v5709_v34 = vadd.f32 %v8367_v15, %v1335_v29  ;;  %v8372_v29 = vld [vmem:[#allocation41_spill] sm:$0xff]  ;;  %v8374_v47 = vld [vmem:[#allocation71_spill] sm:$0xff] }
 0x11a   : > { %8362 = vst [vmem:[#allocation66_spill] sm:$0xff] %v5691_v35  ;;  %v868_v59 = vmul.f32 %v8284_v12, %v5697_v21  ;;  %v1372_v2 = vmul.f32 %v8285_v27, %v5697_v21  ;;  %v867_v25 = vmul.f32 %v8286_v7, %v5697_v21  ;;  %v1371_v56 = vmul.f32 %v8292_v23, %v5697_v21 }
 0x11b   : > { %v2084_v45 = vadd.f32 %v2076_v49, %v2050_v51  ;;  %v2110_v63 = vmul.f32 %v8263_v14, %v5601_v13  ;;  %v2116_v48 = vadd.f32 %v2108_v26, %v2082_v61  ;;  %v1590_v9 = vmul.f32 %v8368_v58, %v8334_v11  ;;  %v5730_v14 = vpop.permute.xlu1 %810  ;;  %v8373_v61 = vld [vmem:[#allocation45_spill] sm:$0xff] }
 0x11c   : > { %v876_v53 = vadd.f32 %v868_v59, %v5582_v22  ;;  %v1380_v16 = vadd.f32 %v1372_v2, %v5585_v20  ;;  %v875_v33 = vadd.f32 %v867_v25, %v5588_v4  ;;  %v1379_v6 = vadd.f32 %v1371_v56, %v5591_v50  ;;  %8369 = vst [vmem:[#allocation84_spill] sm:$0xff] %v5730_v14  ;;  %v8371_v22 = vld [vmem:[#allocation32_spill] sm:$0xff] }
 0x11d   : > { %v2118_v19 = vadd.f32 %v2110_v63, %v2084_v45  ;;  %v2268_v28 = vmax.f32 %v2116_v48, 0.0  ;;  %v1592_v51 = vmul.f32 %v8368_v58, %v8336_v37  ;;  %v1598_v40 = vadd.f32 %v1590_v9, %v8337_v17  ;;  %v8376_v48 = vld [vmem:[#allocation28_spill] sm:$0xff] }
 0x11e   : > { %v1626_v8 = vmul.f32 %v8370_v39, %v8343_v55  ;;  %v1658_v54 = vmul.f32 %v8371_v22, %v5411_v24  ;;  %v1660_v20 = vmul.f32 %v8371_v22, %v8352_v41  ;;  %v1692_v4 = vmul.f32 %v8275_v32, %v5378_v46 }
 0x11f   : > { %v830_v50 = vmul.f32 %v8257_v62, %v5730_v14  ;;  %v1350_v60 = vmul.f32 %v8258_v0, %v5730_v14  ;;  %v829_v49 = vmul.f32 %v8372_v29, %v5730_v14  ;;  %v1349_v26 = vmul.f32 %v8373_v61, %v5730_v14  ;;  %v5756_v9 = vpop.permute.xlu1 %882 }
 0x120   : > { %v2270_v43 = vmax.f32 %v2118_v19, 0.0  ;;  %v1600_v57 = vadd.f32 %v1592_v51, %v8338_v30  ;;  %v1632_v15 = vadd.f32 %v8374_v47, %v1598_v40  ;;  %v1694_v59 = vmul.f32 %v8275_v32, %v5601_v13  ;;  %8377 = vst [vmem:[#allocation69_spill] sm:$0xff] %v5756_v9  ;;  %v8378_v19 = vld [vmem:[#allocation47_spill] sm:$0xff]  ;;  %v8379_v40 = vld [vmem:[#allocation48_spill] sm:$0xff] }
 0x121   : > { %v838_v2 = vadd.f32 %v830_v50, %v798_v10  ;;  %v1358_v25 = vadd.f32 %v1350_v60, %v1334_v3  ;;  %v837_v62 = vadd.f32 %v829_v49, %v797_v31  ;;  %v1357_v56 = vadd.f32 %v1349_v26, %v1333_v38  ;;  %v8380_v32 = vld [vmem:[#allocation95_spill] sm:$0xff]  ;;  %v8381_v3 = vld [vmem:[#allocation22_spill] sm:$0xff]  ;;  %v8382_v38 = vld [vmem:[#allocation53_spill] sm:$0xff] }
 0x122   : > { %v5752_v45 = vpack.c.bf16 %v2270_v43, %v2268_v28  ;;  %v1634_v0 = vadd.f32 %v1626_v8, %v1600_v57  ;;  %v1666_v63 = vadd.f32 %v1658_v54, %v1632_v15  ;;  %v2005_v58 = vmul.f32 %v8376_v48, %v8334_v11  ;;  %v8383_v8 = vld [vmem:[#allocation54_spill] sm:$0xff]  ;;  %v8384_v54 = vld [vmem:[#allocation59_spill] sm:$0xff]  ;;  %v8385_v60 = vld [vmem:[#allocation60_spill] sm:$0xff] }
 0x123   : > { %v5759_v51 = vadd.f32 %v8378_v19, %v838_v2  ;;  %v5762_v39 = vadd.f32 %v8379_v40, %v1358_v25  ;;  %v5765_v10 = vadd.f32 %v8380_v32, %v837_v62  ;;  %v5768_v31 = vadd.f32 %v8381_v3, %v1357_v56  ;;  %v8386_v57 = vld [vmem:[#allocation37_spill] sm:$0xff]  ;;  %v8387_v15 = vld [vmem:[#allocation43_spill] sm:$0xff]  ;;  %v8388_v25 = vld [vmem:[#allocation44_spill] sm:$0xff]  ;;  %v5785_v40 = vpop.permute.xlu1 %886 }
 0x124   : > { %8375 = vst [vmem:[#allocation18_spill] sm:$0xff] %v5752_v45  ;;  %v906_v28 = vmul.f32 %v8382_v38, %v5756_v9  ;;  %v1394_v22 = vmul.f32 %v8383_v8, %v5756_v9  ;;  %v905_v50 = vmul.f32 %v8384_v54, %v5756_v9  ;;  %v1393_v29 = vmul.f32 %v8385_v60, %v5756_v9  ;;  %v8389_v56 = vld [vmem:[#allocation97_spill] sm:$0xff] }
 0x125   : > { %v1668_v49 = vadd.f32 %v1660_v20, %v1634_v0  ;;  %v1700_v61 = vadd.f32 %v1692_v4, %v1666_v63  ;;  %v2007_v26 = vmul.f32 %v8376_v48, %v8336_v37  ;;  %v2013_v43 = vadd.f32 %v2005_v58, %v8337_v17  ;;  %8390 = vst [vmem:[#allocation23_spill] sm:$0xff] %v5785_v40  ;;  %v8391_v4 = vld [vmem:[#allocation29_spill] sm:$0xff] }
 0x126   : > { %v914_v47 = vadd.f32 %v906_v28, %v8386_v57  ;;  %v1402_v2 = vadd.f32 %v1394_v22, %v8387_v15  ;;  %v913_v62 = vadd.f32 %v905_v50, %v8388_v25  ;;  %v1401_v19 = vadd.f32 %v1393_v29, %v8389_v56 }
 0x127   : > { %v1702_v32 = vadd.f32 %v1694_v59, %v1668_v49  ;;  %v1852_v3 = vmax.f32 %v1700_v61, 0.0  ;;  %v2015_v20 = vadd.f32 %v2007_v26, %v8338_v30  ;;  %v2041_v0 = vmul.f32 %v8391_v4, %v8343_v55  ;;  %v8392_v59 = vld [vmem:[#allocation72_spill] sm:$0xff]  ;;  %v8393_v49 = vld [vmem:[#allocation55_spill] sm:$0xff] }
 0x128   : > { %v908_v63 = vmul.f32 %v8382_v38, %v5785_v40  ;;  %v1396_v48 = vmul.f32 %v8383_v8, %v5785_v40  ;;  %v907_v58 = vmul.f32 %v8384_v54, %v5785_v40  ;;  %v1395_v28 = vmul.f32 %v8385_v60, %v5785_v40  ;;  %v8395_v30 = vld [vmem:[#allocation56_spill] sm:$0xff] }
 0x129   : > { %v1854_v22 = vmax.f32 %v1702_v32, 0.0  ;;  %v2047_v50 = vadd.f32 %v8392_v59, %v2013_v43  ;;  %v2049_v29 = vadd.f32 %v2041_v0, %v2015_v20  ;;  %v2073_v61 = vmul.f32 %v8393_v49, %v5411_v24  ;;  %v5807_v32 = vpop.permute.xlu1 %854  ;;  %v8397_v43 = vld [vmem:[#allocation98_spill] sm:$0xff]  ;;  %v8398_v0 = vld [vmem:[#allocation99_spill] sm:$0xff]  ;;  %v8399_v24 = vld [vmem:[#allocation100_spill] sm:$0xff] }
 0x12a   : > { %v916_v26 = vadd.f32 %v908_v63, %v876_v53  ;;  %v1404_v57 = vadd.f32 %v1396_v48, %v1380_v16  ;;  %v915_v15 = vadd.f32 %v907_v58, %v875_v33  ;;  %v1403_v25 = vadd.f32 %v1395_v28, %v1379_v6  ;;  %8396 = vst [vmem:[#allocation38_spill] sm:$0xff] %v5807_v32  ;;  %v8400_v16 = vld [vmem:[#allocation101_spill] sm:$0xff] }
 0x12b   : > { %v5801_v56 = vpack.c.bf16 %v1854_v22, %v1852_v3  ;;  %v2075_v4 = vmul.f32 %v8393_v49, %v8352_v41  ;;  %v2081_v55 = vadd.f32 %v2073_v61, %v2047_v50  ;;  %v2107_v17 = vmul.f32 %v8395_v30, %v5378_v46  ;;  %v8414_v41 = vld [vmem:[#allocation46_spill] sm:$0xff] }
 0x12c   : > { %v956_v20 = vadd.f32 %v8397_v43, %v916_v26  ;;  %v1428_v59 = vadd.f32 %v8398_v0, %v1404_v57  ;;  %v955_v53 = vadd.f32 %v8399_v24, %v915_v15  ;;  %v1427_v33 = vadd.f32 %v8400_v16, %v1403_v25  ;;  %v8401_v26 = vld [vmem:[#allocation88_spill] sm:$0xff]  ;;  %v8402_v57 = vld [vmem:[#allocation63_spill] sm:$0xff]  ;;  %v8405_v43 = vld [vmem:[#allocation65_spill] sm:$0xff] }
 0x12d   : > { %8394 = vst [vmem:[#allocation24_spill] sm:$0xff] %v5801_v56  ;;  %v872_v6 = vmul.f32 %v8284_v12, %v5807_v32  ;;  %v1376_v3 = vmul.f32 %v8285_v27, %v5807_v32  ;;  %v871_v63 = vmul.f32 %v8286_v7, %v5807_v32  ;;  %v1375_v48 = vmul.f32 %v8292_v23, %v5807_v32  ;;  %v5835_v25 = vpop.permute.xlu1 %922  ;;  %v8407_v0 = vld [vmem:[#allocation75_spill] sm:$0xff]  ;;  %v8411_v16 = vld [vmem:[#allocation61_spill] sm:$0xff] }
 0x12e   : > { %v972_v58 = vmax.f32 %v956_v20, 0.0  ;;  %v1444_v28 = vmax.f32 %v1428_v59, 0.0  ;;  %v971_v22 = vmax.f32 %v955_v53, 0.0  ;;  %v1443_v50 = vmax.f32 %v1427_v33, 0.0  ;;  %8403 = vst [vmem:[#allocation42_spill] sm:$0xff] %v5835_v25  ;;  %v8406_v20 = vld [vmem:[#allocation81_spill] sm:$0xff] }
 0x12f   : > { %v880_v24 = vadd.f32 %v872_v6, %v5700_v36  ;;  %v5823_v49 = vadd.f32 %v1376_v3, %v5703_v52  ;;  %v5826_v12 = vadd.f32 %v871_v63, %v5706_v1  ;;  %v5829_v27 = vadd.f32 %v1375_v48, %v5709_v34  ;;  %v8404_v36 = vld [vmem:[#allocation89_spill] sm:$0xff]  ;;  %v5844_v59 = vld [vmem:[%s4701_s19 + $0x28] sm:$0x3f] }
 0x130   : > { %v2083_v7 = vadd.f32 %v2075_v4, %v2049_v29  ;;  %v2109_v23 = vmul.f32 %v8395_v30, %v5601_v13  ;;  %v2115_v61 = vadd.f32 %v2107_v17, %v2081_v55  ;;  %v1713_v15 = vmul.f32 %v8402_v57, %v8401_v26  ;;  %v8408_v29 = vld [vmem:[#allocation10_spill] sm:$0xff]  ;;  %v8409_v17 = vld [vmem:[#allocation57_spill] sm:$0xff] }
 0x131   : > { %v1715_v52 = vmul.f32 %v8402_v57, %v8404_v36  ;;  %v1737_v1 = vmul.f32 %v8406_v20, %v8405_v43  ;;  %v1739_v34 = vmul.f32 %v8406_v20, %v8407_v0  ;;  %v5848_v30 = vrot.slane %v5844_v59, %v8408_v29  ;;  %v8410_v4 = vld [vmem:[#allocation58_spill] sm:$0xff]  ;;  %v8415_v57 = vld [vmem:[#allocation13_spill] sm:$0xff]  ;;  %v5862_v45 = vpop.permute.xlu1 %890 }
 0x132   : > { %v946_v55 = vmul.f32 %v8409_v17, %v5835_v25  ;;  %v1418_v53 = vmul.f32 %v8410_v4, %v5835_v25  ;;  %v945_v33 = vmul.f32 %v8411_v16, %v5835_v25  ;;  %v8412_v6 = vld [vmem:[#allocation62_spill] sm:$0xff]  ;;  %v2117_v63 = vadd.f32 %v2109_v23, %v2083_v7  ;;  %8416 = vst [vmem:[#allocation19_spill] sm:$0xff] %v5862_v45 }
 0x133   : > { %v1417_v3 = vmul.f32 %v8412_v6, %v5835_v25  ;;  %v2267_v48 = vmax.f32 %v2115_v61, 0.0  ;;  %v8413_v13 = vld [vmem:[#allocation30_spill] sm:$0xff]  ;;  %v1723_v37 = vadd.f32 %v1715_v52, %v8414_v41  ;;  %v1761_v56 = vmul.f32 %v5848_v30, %v8415_v57 }
 0x134   : > { %v1721_v46 = vadd.f32 %v1713_v15, %v8413_v13  ;;  %v954_v11 = vadd.f32 %v946_v55, %v914_v47  ;;  %v1426_v32 = vadd.f32 %v1418_v53, %v1402_v2  ;;  %v953_v14 = vadd.f32 %v945_v33, %v913_v62 }
 0x135   : > { %v1425_v44 = vadd.f32 %v1417_v3, %v1401_v19  ;;  %v2269_v20 = vmax.f32 %v2117_v63, 0.0  ;;  %v1747_v5 = vadd.f32 %v1739_v34, %v1723_v37  ;;  %v910_v61 = vmul.f32 %v8382_v38, %v5862_v45  ;;  %v5876_v52 = vpop.permute.xlu1 %894  ;;  %v8418_v34 = vld [vmem:[#allocation107_spill] sm:$0xff] }
 0x136   : > { %v1745_v18 = vadd.f32 %v1737_v1, %v1721_v46  ;;  %v970_v35 = vmax.f32 %v954_v11, 0.0  ;;  %v1442_v42 = vmax.f32 %v1426_v32, 0.0  ;;  %v969_v7 = vmax.f32 %v953_v14, 0.0  ;;  %8417 = vst [vmem:[#allocation70_spill] sm:$0xff] %v5876_v52 }
 0x137   : > { %v1441_v23 = vmax.f32 %v1425_v44, 0.0  ;;  %v1398_v47 = vmul.f32 %v8383_v8, %v5862_v45  ;;  %v909_v2 = vmul.f32 %v8384_v54, %v5862_v45  ;;  %v1397_v46 = vmul.f32 %v8385_v60, %v5862_v45 }
 0x138   : > { %v982_v37 = vpack.c.bf16 %v972_v58, %v970_v35  ;;  %v1454_v62 = vpack.c.bf16 %v1444_v28, %v1442_v42  ;;  %v981_v19 = vpack.c.bf16 %v971_v22, %v969_v7  ;;  %v918_v11 = vadd.f32 %v910_v61, %v5759_v51  ;;  %v8424_v61 = vld [vmem:[#allocation16_spill] sm:$0xff] }
 0x139   : > { %v1453_v15 = vpack.c.bf16 %v1443_v50, %v1441_v23  ;;  %v1406_v44 = vadd.f32 %v1398_v47, %v5762_v39  ;;  %v917_v14 = vadd.f32 %v909_v2, %v5765_v10  ;;  %v1405_v32 = vadd.f32 %v1397_v46, %v5768_v31  ;;  %v8419_v39 = vld [vmem:[#allocation93_spill] sm:$0xff]  ;;  %v8420_v31 = vld [vmem:[#allocation104_spill] sm:$0xff] }
 0x13a   : > { %1062 = vmatprep.subr.bf16.mxu0 %v982_v37  ;;  %1461 = vmatprep.subr.bf16.mxu1 %v1454_v62  ;;  %v5878_v1 = vpack.c.bf16 %v2269_v20, %v2267_v48  ;;  %v1763_v35 = vmul.f32 %v5848_v30, %v8418_v34  ;;  %v1769_v42 = vadd.f32 %v1761_v56, %v1745_v18  ;;  %v8421_v50 = vld [vmem:[#allocation105_spill] sm:$0xff]  ;;  %v5897_v7 = vpop.permute.xlu1 %934  ;;  %v8426_v2 = vld [vmem:[#allocation76_spill] sm:$0xff] }
 0x13b   : > { %1063 = vmatpush1.bf16.msra.mxu0 %v981_v19  ;;  %1462 = vmatpush1.bf16.msra.mxu1 %v1453_v15  ;;  %v912_v51 = vmul.f32 %v8382_v38, %v5876_v52  ;;  %v958_v58 = vadd.f32 %v8419_v39, %v918_v11  ;;  %v1400_v10 = vmul.f32 %v8383_v8, %v5876_v52  ;;  %v8422_v38 = vld [vmem:[#allocation106_spill] sm:$0xff] }
 0x13c   : > { %v1430_v28 = vadd.f32 %v8420_v31, %v1406_v44  ;;  %v911_v22 = vmul.f32 %v8384_v54, %v5876_v52  ;;  %v957_v20 = vadd.f32 %v8421_v50, %v917_v14  ;;  %v1399_v18 = vmul.f32 %v8385_v60, %v5876_v52  ;;  %8423 = vst [vmem:[#allocation27_spill] sm:$0xff] %v5897_v7  ;;  %v8425_v60 = vld [vmem:[#allocation6_spill] sm:$0xff]  ;;  %v8427_v14 = vld [vmem:[#allocation5_spill] sm:$0xff]  ;;  %v8429_v50 = vld [vmem:[#allocation20_spill] sm:$0xff] }
 0x13d   : > { %v920_v56 = vadd.f32 %v912_v51, %v880_v24  ;;  %v974_v55 = vmax.f32 %v958_v58, 0.0  ;;  %v1408_v53 = vadd.f32 %v1400_v10, %v5823_v49  ;;  %v1429_v33 = vadd.f32 %v8422_v38, %v1405_v32  ;;  %v8428_v32 = vld [vmem:[#allocation64_spill] sm:$0xff] }
 0x13e   : > { %v1446_v3 = vmax.f32 %v1430_v28, 0.0  ;;  %v919_v63 = vadd.f32 %v911_v22, %v5826_v12  ;;  %v973_v8 = vmax.f32 %v957_v20, 0.0  ;;  %v1407_v48 = vadd.f32 %v1399_v18, %v5829_v27 }
 0x13f   : > { %v1445_v54 = vmax.f32 %v1429_v33, 0.0  ;;  %v1771_v23 = vadd.f32 %v1763_v35, %v1747_v5  ;;  %v5901_v47 = vrot.slane %v5844_v59, %v8424_v61  ;;  %v5905_v24 = vrot.slane %v5844_v59, %v8425_v60 }
 0x140   : > { %v952_v49 = vmul.f32 %v8409_v17, %v5897_v7  ;;  %v1424_v12 = vmul.f32 %v8410_v4, %v5897_v7  ;;  %v951_v27 = vmul.f32 %v8411_v16, %v5897_v7  ;;  %v1423_v5 = vmul.f32 %v8412_v6, %v5897_v7 }
 0x141   : > { %v1785_v46 = vmul.f32 %v5901_v47, %v8426_v2  ;;  %v1787_v37 = vmul.f32 %v5901_v47, %v5697_v21  ;;  %v1809_v62 = vmul.f32 %v5905_v24, %v5756_v9  ;;  %v1811_v17 = vmul.f32 %v5905_v24, %v5785_v40 }
 0x142   : > { %v960_v19 = vadd.f32 %v952_v49, %v920_v56  ;;  %v1432_v4 = vadd.f32 %v1424_v12, %v1408_v53  ;;  %v959_v15 = vadd.f32 %v951_v27, %v919_v63  ;;  %v1431_v11 = vadd.f32 %v1423_v5, %v1407_v48  ;;  %v5939_v48 = vld [vmem:[%s7866_s6] sm:$0xff]  }
 0x143   : > { %v1793_v16 = vadd.f32 %v1785_v46, %v1769_v42  ;;  %v1795_v44 = vadd.f32 %v1787_v37, %v1771_v23  ;;  %v5925_v6 = vrot.slane %v5844_v59, %v8427_v14  ;;  %v2128_v35 = vmul.f32 %v8428_v32, %v8401_v26  ;;  %8430 = vst [vmem:[#allocation31_spill] sm:$0xff] %v5939_v48  ;;  %v8432_v46 = vld [vmem:[#allocation108_spill] sm:$0xff]  ;;  %v8433_v37 = vld [vmem:[#allocation109_spill] sm:$0xff] }
 0x144   : > { %v976_v51 = vmax.f32 %v960_v19, 0.0  ;;  %v1448_v39 = vmax.f32 %v1432_v4, 0.0  ;;  %v975_v58 = vmax.f32 %v959_v15, 0.0  ;;  %v1447_v10 = vmax.f32 %v1431_v11, 0.0  ;;  %v4229_v4 = vld [vmem:[%s4701_s19 + $0x20] sm:$0x3f] }
 0x145   : > { %v1817_v31 = vadd.f32 %v1809_v62, %v1793_v16  ;;  %v1819_v28 = vadd.f32 %v1811_v17, %v1795_v44  ;;  %v1833_v22 = vmul.f32 %v5925_v6, %v5835_v25  ;;  %v1835_v42 = vmul.f32 %v5925_v6, %v8429_v50 }
 0x146   : > { %v984_v20 = vpack.c.bf16 %v976_v51, %v974_v55  ;;  %v1456_v18 = vpack.c.bf16 %v1448_v39, %v1446_v3  ;;  %v983_v59 = vpack.c.bf16 %v975_v58, %v973_v8  ;;  %v1455_v56 = vpack.c.bf16 %v1447_v10, %v1445_v54  ;;  %v4342_v55 = vld [vmem:[%s4701_s19 + $0x38] sm:$0x3f]  ;;  %v8431_v3 = vld [vmem:[#allocation7_spill] sm:$0xff]  ;;  %v8435_v10 = vld [vmem:[#allocation17_spill] sm:$0xff] }
 0x147   : > { %v1841_v53 = vadd.f32 %v1833_v22, %v1817_v31  ;;  %v1843_v38 = vadd.f32 %v1835_v42, %v1819_v28  ;;  %v2130_v33 = vmul.f32 %v8428_v32, %v8404_v36  ;;  %v2136_v63 = vadd.f32 %v2128_v35, %v8413_v13  ;;  %v8434_v58 = vld [vmem:[#allocation11_spill] sm:$0xff]  ;;  %v8436_v22 = vld [vmem:[#allocation8_spill] sm:$0xff] }
 0x148   : > { %1064 = vmatprep.subr.bf16.mxu0 %v984_v20  ;;  %1463 = vmatprep.subr.bf16.mxu1 %v1456_v18  ;;  %v5943_v8 = vrot.slane %v4342_v55, %v8431_v3  ;;  %v5946_v54 = vrot.slane %v4342_v55, %v8408_v29  ;;  %v5949_v23 = vrot.slane %v4342_v55, %v8424_v61  ;;  %v8437_v20 = vld [vmem:[#allocation66_spill] sm:$0xff] }
 0x149   : > { %1065 = vmatpush1.bf16.msra.mxu0 %v983_v59  ;;  %1464 = vmatpush1.bf16.msra.mxu1 %v1455_v56  ;;  %v1857_v49 = vmax.f32 %v1841_v53, 0.0  ;;  %v1859_v12 = vmax.f32 %v1843_v38, 0.0  ;;  %v2138_v27 = vadd.f32 %v2130_v33, %v8414_v41  ;;  %v5953_v5 = vrot.slane %v4342_v55, %v8425_v60  ;;  %v8438_v18 = vld [vmem:[#allocation18_spill] sm:$0xff] }
 0x14a   : > { %1872 = vmatprep.subr.bf16.mxu0 %v8432_v46  ;;  %2287 = vmatprep.subr.bf16.mxu1 %v8433_v37  ;;  %v2152_v62 = vmul.f32 %v5943_v8, %v8405_v43  ;;  %v2154_v17 = vmul.f32 %v5943_v8, %v8407_v0  ;;  %v2176_v19 = vmul.f32 %v5946_v54, %v8415_v57 }
 0x14b   : > { %v1869_v15 = vpack.c.bf16 %v1859_v12, %v1857_v49  ;;  %v2178_v11 = vmul.f32 %v5946_v54, %v8418_v34  ;;  %v2200_v16 = vmul.f32 %v5949_v23, %v8426_v2  ;;  %v2202_v44 = vmul.f32 %v5949_v23, %v5697_v21 }
 0x14c   : > { %4217 = vmatmul.mubr.msk.bf16.vlgmr.msra.gmra.mrb[0].mxu0 %vm1045_vm0, %v5939_v48  ;;  %4224 = vmatmul.mubr.msk.bf16.vlgmr.msra.gmra.mrb[0].mxu1 %vm1045_vm0, %v5939_v48  ;;  %v2160_v35 = vadd.f32 %v2152_v62, %v2136_v63  ;;  %v2162_v51 = vadd.f32 %v2154_v17, %v2138_v27  ;;  %v2224_v39 = vmul.f32 %v5953_v5, %v5756_v9  ;;  %v8439_v63 = vmov 0   ;;  %v6002_v27 = vld [vmem:[%s7866_s6 + $0x8] sm:$0xff]   ;;  %v8441_v62 = vld [vmem:[#allocation24_spill] sm:$0xff] }
 0x14d   : > { %1873 = vmatpush1.bf16.msra.mxu0 %v8434_v58  ;;  %2288 = vmatpush1.bf16.msra.mxu1 %v8435_v10  ;;  %v2226_v31 = vmul.f32 %v5953_v5, %v5785_v40  ;;  %v5981_v28 = vrot.slane %v4342_v55, %v8427_v14  ;;  %v5984_v42 = vrot.slane %v4229_v4, %v8436_v22 }
 0x14e   : > { %1874 = vmatprep.subr.bf16.mxu0 %v8437_v20  ;;  %2289 = vmatprep.subr.bf16.mxu1 %v8438_v18  ;;  %v2184_v59 = vadd.f32 %v2176_v19, %v2160_v35  ;;  %v2186_v56 = vadd.f32 %v2178_v11, %v2162_v51  ;;  %v5989_v53 = vrot.slane %v4229_v4, %v8431_v3 }
 0x14f   : > { %v2248_v38 = vmul.f32 %v5981_v28, %v5835_v25  ;;  %v2250_v33 = vmul.f32 %v5981_v28, %v8429_v50  ;;  %1100 = vmatprep.mubr.bf16.mxu0 %v8439_v63  ;;  %1499 = vmatprep.mubr.bf16.mxu1 %v8439_v63  ;;  %v1712_v55 = vmul.f32 %v5984_v42, %v8401_v26 }
 0x150   : > { %v2208_v49 = vadd.f32 %v2200_v16, %v2184_v59  ;;  %v2210_v12 = vadd.f32 %v2202_v44, %v2186_v56  ;;  %8440 = vst [vmem:[#allocation33_spill] sm:$0xff] %v6002_v27  ;;  %v1714_v46 = vmul.f32 %v5984_v42, %v8404_v36  ;;  %v1736_v37 = vmul.f32 %v5989_v53, %v8405_v43 }
 0x151   : > { %1875 = vmatpush1.bf16.msra.mxu0 %v8441_v62  ;;  %2290 = vmatpush1.bf16.msra.mxu1 %v5878_v1  ;;  %v1720_v17 = vadd.f32 %v1712_v55, %v8413_v13  ;;  %v1738_v19 = vmul.f32 %v5989_v53, %v8407_v0  ;;  %v6014_v11 = vrot.slane %v4229_v4, %v8408_v29 }
 0x152   : > { %1876 = vmatprep.subr.bf16.mxu0 %v1869_v15  ;;  %v2232_v16 = vadd.f32 %v2224_v39, %v2208_v49  ;;  %v2234_v44 = vadd.f32 %v2226_v31, %v2210_v12  ;;  %v1722_v35 = vadd.f32 %v1714_v46, %v8414_v41  ;;  %v6018_v51 = vrot.slane %v4229_v4, %v8424_v61  ;;  %v4236_v39 = vld [vmem:[%s4701_s19 + $0x30] sm:$0x3f] }
 0x153   : > { %v1744_v58 = vadd.f32 %v1736_v37, %v1720_v17  ;;  %v1760_v1 = vmul.f32 %v6014_v11, %v8415_v57  ;;  %v1762_v10 = vmul.f32 %v6014_v11, %v8418_v34  ;;  %v6025_v20 = vrot.slane %v4229_v4, %v8425_v60 }
 0x154   : > { %v2256_v18 = vadd.f32 %v2248_v38, %v2232_v16  ;;  %v2258_v59 = vadd.f32 %v2250_v33, %v2234_v44  ;;  %4218 = vmatmul.mubr.msk.bf16.gmra.mrb[4].mxu0 %vm1045_vm0, %v6002_v27  ;;  %4225 = vmatmul.mubr.msk.bf16.gmra.mrb[4].mxu1 %vm1045_vm0, %v6002_v27  ;;  %v1746_v15 = vadd.f32 %v1738_v19, %v1722_v35  ;;  %v8454_v27 = vld [vmem:[#allocation38_spill] sm:$0xff] }
 0x155   : > { %v1768_v31 = vadd.f32 %v1760_v1, %v1744_v58  ;;  %v1784_v56 = vmul.f32 %v6018_v51, %v8426_v2  ;;  %v1786_v55 = vmul.f32 %v6018_v51, %v5697_v21  ;;  %v1808_v49 = vmul.f32 %v6025_v20, %v5756_v9  ;;  %1110 = vmatprep.mubr.bf16.mxu0 %v8439_v63  ;;  %v6060_v1 = vld [vmem:[%s7866_s6 + $0x10] sm:$0xff]  }
 0x156   : > { %v2272_v38 = vmax.f32 %v2256_v18, 0.0  ;;  %v2274_v33 = vmax.f32 %v2258_v59, 0.0  ;;  %v1770_v12 = vadd.f32 %v1762_v10, %v1746_v15  ;;  %v1810_v46 = vmul.f32 %v6025_v20, %v5785_v40  ;;  %1509 = vmatprep.mubr.bf16.mxu1 %v8439_v63  ;;  %8442 = vst [vmem:[#allocation39_spill] sm:$0xff] %v6060_v1 }
 0x157   : > { %v1792_v37 = vadd.f32 %v1784_v56, %v1768_v31  ;;  %v6043_v62 = vrot.slane %v4229_v4, %v8427_v14  ;;  %v6046_v17 = vrot.slane %v4236_v39, %v8436_v22  ;;  %v6049_v19 = vrot.slane %v4236_v39, %v8431_v3 }
 0x158   : > { %v2284_v16 = vpack.c.bf16 %v2274_v33, %v2272_v38  ;;  %v1794_v44 = vadd.f32 %v1786_v55, %v1770_v12  ;;  %v6052_v35 = vrot.slane %v4236_v39, %v8408_v29  ;;  %v6055_v58 = vrot.slane %v4236_v39, %v8424_v61 }
 0x159   : > { %v1816_v4 = vadd.f32 %v1808_v49, %v1792_v37  ;;  %v1832_v10 = vmul.f32 %v6043_v62, %v5835_v25  ;;  %v1834_v18 = vmul.f32 %v6043_v62, %v8429_v50  ;;  %v2127_v59 = vmul.f32 %v6046_v17, %v8401_v26  ;;  %v8450_v26 = vld [vmem:[#allocation14_spill] sm:$0xff] }
 0x15a   : > { %2291 = vmatprep.subr.bf16.mxu1 %v2284_v16  ;;  %v1818_v15 = vadd.f32 %v1810_v46, %v1794_v44  ;;  %v2129_v31 = vmul.f32 %v6046_v17, %v8404_v36  ;;  %v2151_v56 = vmul.f32 %v6049_v19, %v8405_v43  ;;  %v2153_v55 = vmul.f32 %v6049_v19, %v8407_v0  ;;  %v8448_v43 = vld [vmem:[#allocation79_spill] sm:$0xff] }
 0x15b   : > { %v1840_v49 = vadd.f32 %v1832_v10, %v1816_v4  ;;  %v2135_v38 = vadd.f32 %v2127_v59, %v8413_v13  ;;  %v2175_v33 = vmul.f32 %v6052_v35, %v8415_v57  ;;  %v2177_v12 = vmul.f32 %v6052_v35, %v8418_v34  ;;  %v8445_v34 = vld [vmem:[#allocation102_spill] sm:$0xff]  ;;  %v8446_v57 = vld [vmem:[#allocation73_spill] sm:$0xff] }
 0x15c   : > { %v1842_v37 = vadd.f32 %v1834_v18, %v1818_v15  ;;  %v2137_v46 = vadd.f32 %v2129_v31, %v8414_v41  ;;  %v2199_v16 = vmul.f32 %v6055_v58, %v8426_v2  ;;  %v2201_v44 = vmul.f32 %v6055_v58, %v5697_v21  ;;  %4219 = vmatmul.mubr.msk.bf16.gmra.mrb[8].mxu0 %vm1045_vm0, %v6060_v1  ;;  %v8443_v31 = vld [vmem:[#allocation96_spill] sm:$0xff]  ;;  %v8444_v21 = vld [vmem:[#allocation63_spill] sm:$0xff] }
 0x15d   : > { %v1856_v4 = vmax.f32 %v1840_v49, 0.0  ;;  %v2159_v10 = vadd.f32 %v2151_v56, %v2135_v38  ;;  %v6087_v59 = vrot.slane %v4236_v39, %v8425_v60  ;;  %v6090_v13 = vrot.slane %v4236_v39, %v8427_v14  ;;  %4226 = vmatmul.mubr.msk.bf16.gmra.mrb[8].mxu1 %vm1045_vm0, %v6060_v1  ;;  %1120 = vmatprep.mubr.bf16.mxu0 %v8439_v63 }
 0x15e   : > { %v1858_v18 = vmax.f32 %v1842_v37, 0.0  ;;  %v2161_v15 = vadd.f32 %v2153_v55, %v2137_v46  ;;  %v1717_v2 = vmul.f32 %v8444_v21, %v8443_v31  ;;  %v1719_v49 = vmul.f32 %v8444_v21, %v8445_v34  ;;  %1519 = vmatprep.mubr.bf16.mxu1 %v8439_v63  ;;  %v6112_v21 = vld [vmem:[%s7866_s6 + $0x18] sm:$0xff]  }
 0x15f   : > { %v2183_v56 = vadd.f32 %v2175_v33, %v2159_v10  ;;  %v2223_v39 = vmul.f32 %v6087_v59, %v5756_v9  ;;  %v2225_v38 = vmul.f32 %v6087_v59, %v5785_v40  ;;  %v2247_v41 = vmul.f32 %v6090_v13, %v5835_v25  ;;  %v8447_v10 = vld [vmem:[#allocation92_spill] sm:$0xff]  ;;  %v8449_v40 = vld [vmem:[#allocation81_spill] sm:$0xff]  ;;  %v8453_v25 = vld [vmem:[#allocation34_spill] sm:$0xff] }
 0x160   : > { %v1868_v37 = vpack.c.bf16 %v1858_v18, %v1856_v4  ;;  %v2185_v55 = vadd.f32 %v2177_v12, %v2161_v15  ;;  %v2249_v46 = vmul.f32 %v6090_v13, %v8429_v50  ;;  %v1725_v0 = vadd.f32 %v1717_v2, %v8446_v57  ;;  %v8451_v18 = vld [vmem:[#allocation84_spill] sm:$0xff]  ;;  %v8452_v2 = vld [vmem:[#allocation26_spill] sm:$0xff] }
 0x161   : > { %v2207_v33 = vadd.f32 %v2199_v16, %v2183_v56  ;;  %v1727_v9 = vadd.f32 %v1719_v49, %v8447_v10  ;;  %v1741_v36 = vmul.f32 %v8449_v40, %v8448_v43  ;;  %v1743_v4 = vmul.f32 %v8449_v40, %v8450_v26 }
 0x162   : > { %1877 = vmatpush1.bf16.msra.mxu0 %v1868_v37  ;;  %v2209_v12 = vadd.f32 %v2201_v44, %v2185_v55  ;;  %v1765_v15 = vmul.f32 %v5848_v30, %v8451_v18  ;;  %v1767_v50 = vmul.f32 %v5848_v30, %v8452_v2  ;;  %v1789_v1 = vmul.f32 %v5901_v47, %v8453_v25  ;;  %v8455_v37 = vld [vmem:[#allocation103_spill] sm:$0xff] }
 0x163   : > { %v2231_v16 = vadd.f32 %v2223_v39, %v2207_v33  ;;  %v1749_v56 = vadd.f32 %v1741_v36, %v1725_v0  ;;  %v1751_v49 = vadd.f32 %v1743_v4, %v1727_v9  ;;  %v1791_v48 = vmul.f32 %v5901_v47, %v8454_v27 }
 0x164   : > { %v2233_v61 = vadd.f32 %v2225_v38, %v2209_v12  ;;  %v1813_v40 = vmul.f32 %v5905_v24, %v5862_v45  ;;  %v1815_v44 = vmul.f32 %v5905_v24, %v5876_v52  ;;  %v1837_v55 = vmul.f32 %v5925_v6, %v8455_v37  ;;  %4220 = vmatmul.mubr.msk.bf16.gmra.mrb[12].mxu0 %vm1045_vm0, %v6112_v21 }
 0x165   : > { %v2255_v30 = vadd.f32 %v2247_v41, %v2231_v16  ;;  %v1773_v39 = vadd.f32 %v1765_v15, %v1749_v56  ;;  %v1775_v36 = vadd.f32 %v1767_v50, %v1751_v49  ;;  %v1839_v9 = vmul.f32 %v5925_v6, %v5897_v7  ;;  %4227 = vmatmul.mubr.msk.bf16.gmra.mrb[12].mxu1 %vm1045_vm0, %v6112_v21 }
 0x166   : > { %v2257_v0 = vadd.f32 %v2249_v46, %v2233_v61  ;;  %v2132_v47 = vmul.f32 %v8428_v32, %v8443_v31  ;;  %v2134_v24 = vmul.f32 %v8428_v32, %v8445_v34  ;;  %v2156_v38 = vmul.f32 %v5943_v8, %v8448_v43  ;;  %1904 = vmatprep.mubr.bf16.mxu0 %v8439_v63 }
 0x167   : > { %v2271_v41 = vmax.f32 %v2255_v30, 0.0  ;;  %v1797_v50 = vadd.f32 %v1789_v1, %v1773_v39  ;;  %v1799_v33 = vadd.f32 %v1791_v48, %v1775_v36  ;;  %v2158_v6 = vmul.f32 %v5943_v8, %v8450_v26  ;;  %2319 = vmatprep.mubr.bf16.mxu1 %v8439_v63 }
 0x168   : > { %v2273_v61 = vmax.f32 %v2257_v0, 0.0  ;;  %v2140_v46 = vadd.f32 %v2132_v47, %v8446_v57  ;;  %v2142_v4 = vadd.f32 %v2134_v24, %v8447_v10  ;;  %v2180_v32 = vmul.f32 %v5946_v54, %v8451_v18 }
 0x169   : > { %v1821_v12 = vadd.f32 %v1813_v40, %v1797_v50  ;;  %v1823_v15 = vadd.f32 %v1815_v44, %v1799_v33  ;;  %v2182_v16 = vmul.f32 %v5946_v54, %v8452_v2  ;;  %v2204_v48 = vmul.f32 %v5949_v23, %v8453_v25 }
 0x16a   : > { %v2283_v1 = vpack.c.bf16 %v2273_v61, %v2271_v41  ;;  %v2164_v8 = vadd.f32 %v2156_v38, %v2140_v46  ;;  %v2166_v56 = vadd.f32 %v2158_v6, %v2142_v4  ;;  %v2206_v49 = vmul.f32 %v5949_v23, %v8454_v27 }
 0x16b   : > { %v1845_v30 = vadd.f32 %v1837_v55, %v1821_v12  ;;  %v1847_v39 = vadd.f32 %v1839_v9, %v1823_v15  ;;  %v2228_v36 = vmul.f32 %v5953_v5, %v5862_v45  ;;  %v2230_v40 = vmul.f32 %v5953_v5, %v5876_v52 }
 0x16c   : > { %2292 = vmatpush1.bf16.msra.mxu1 %v2283_v1  ;;  %v2188_v44 = vadd.f32 %v2180_v32, %v2164_v8  ;;  %v2190_v54 = vadd.f32 %v2182_v16, %v2166_v56  ;;  %v2252_v0 = vmul.f32 %v5981_v28, %v8455_v37  ;;  %v2254_v47 = vmul.f32 %v5981_v28, %v5897_v7 }
 0x16d   : > { %v1861_v24 = vmax.f32 %v1845_v30, 0.0  ;;  %v1863_v38 = vmax.f32 %v1847_v39, 0.0  ;;  %v1716_v23 = vmul.f32 %v5984_v42, %v8443_v31  ;;  %v1718_v55 = vmul.f32 %v5984_v42, %v8445_v34 }
 0x16e   : > { %v2212_v9 = vadd.f32 %v2204_v48, %v2188_v44  ;;  %v2214_v41 = vadd.f32 %v2206_v49, %v2190_v54  ;;  %v1740_v5 = vmul.f32 %v5989_v53, %v8448_v43  ;;  %v1742_v50 = vmul.f32 %v5989_v53, %v8450_v26 }
 0x16f   : > { %v1871_v33 = vpack.c.bf16 %v1863_v38, %v1861_v24  ;;  %v1724_v6 = vadd.f32 %v1716_v23, %v8446_v57  ;;  %v1726_v28 = vadd.f32 %v1718_v55, %v8447_v10  ;;  %v1764_v61 = vmul.f32 %v6014_v11, %v8451_v18 }
 0x170   : > { %v2236_v46 = vadd.f32 %v2228_v36, %v2212_v9  ;;  %v2238_v4 = vadd.f32 %v2230_v40, %v2214_v41  ;;  %v1766_v42 = vmul.f32 %v6014_v11, %v8452_v2  ;;  %v1788_v32 = vmul.f32 %v6018_v51, %v8453_v25 }
 0x171   : > { %1878 = vmatprep.subr.bf16.mxu0 %v1871_v33  ;;  %v1748_v12 = vadd.f32 %v1740_v5, %v1724_v6  ;;  %v1750_v15 = vadd.f32 %v1742_v50, %v1726_v28  ;;  %v1790_v53 = vmul.f32 %v6018_v51, %v8454_v27  ;;  %v1812_v16 = vmul.f32 %v6025_v20, %v5862_v45  ;;  %v6210_v5 = vld [vmem:[%s4596_s18 + $0x20] sm:$0xff] }
 0x172   : > { %v2260_v48 = vadd.f32 %v2252_v0, %v2236_v46  ;;  %v2262_v1 = vadd.f32 %v2254_v47, %v2238_v4  ;;  %v1814_v8 = vmul.f32 %v6025_v20, %v5876_v52  ;;  %v1836_v11 = vmul.f32 %v6043_v62, %v8455_v37 }
 0x173   : > { %v1772_v56 = vadd.f32 %v1764_v61, %v1748_v12  ;;  %v1774_v49 = vadd.f32 %v1766_v42, %v1750_v15  ;;  %v1838_v30 = vmul.f32 %v6043_v62, %v5897_v7  ;;  %v2131_v39 = vmul.f32 %v6046_v17, %v8443_v31 }
 0x174   : > { %v2276_v51 = vmax.f32 %v2260_v48, 0.0  ;;  %v2278_v36 = vmax.f32 %v2262_v1, 0.0  ;;  %v2133_v40 = vmul.f32 %v6046_v17, %v8445_v34  ;;  %v2155_v20 = vmul.f32 %v6049_v19, %v8448_v43 }
 0x175   : > { %v1796_v44 = vadd.f32 %v1788_v32, %v1772_v56  ;;  %v1798_v54 = vadd.f32 %v1790_v53, %v1774_v49  ;;  %v2139_v0 = vadd.f32 %v2131_v39, %v8446_v57  ;;  %v2157_v47 = vmul.f32 %v6049_v19, %v8450_v26  ;;  %v8456_v53 = vld [vmem:[#allocation9_spill] sm:$0xff]  ;;  %v6237_v56 = vld [vmem:[%s4596_s18 + $0x28] sm:$0xff] }
 0x176   : > { %v2286_v62 = vpack.c.bf16 %v2278_v36, %v2276_v51  ;;  %v2141_v24 = vadd.f32 %v2133_v40, %v8447_v10  ;;  %v2179_v38 = vmul.f32 %v6052_v35, %v8451_v18  ;;  %v2181_v23 = vmul.f32 %v6052_v35, %v8452_v2  ;;  %v8458_v40 = vld [vmem:[#allocation77_spill] sm:$0xff] }
 0x177   : > { %v1820_v17 = vadd.f32 %v1812_v16, %v1796_v44  ;;  %v1822_v55 = vadd.f32 %v1814_v8, %v1798_v54  ;;  %v2163_v9 = vadd.f32 %v2155_v20, %v2139_v0  ;;  %v2203_v41 = vmul.f32 %v6055_v58, %v8453_v25  ;;  %v8459_v44 = vld [vmem:[#allocation82_spill] sm:$0xff]  ;;  %v8460_v0 = vld [vmem:[#allocation36_spill] sm:$0xff] }
 0x178   : > { %2293 = vmatprep.subr.bf16.mxu1 %v2286_v62  ;;  %v2165_v50 = vadd.f32 %v2157_v47, %v2141_v24  ;;  %v2205_v19 = vmul.f32 %v6055_v58, %v8454_v27  ;;  %v2227_v33 = vmul.f32 %v6087_v59, %v5862_v45  ;;  %v2229_v6 = vmul.f32 %v6087_v59, %v5876_v52  ;;  %v8461_v24 = vld [vmem:[#allocation68_spill] sm:$0xff]  ;;  %v8481_v27 = vld [vmem:[#allocation67_spill] sm:$0xff] }
 0x179   : > { %v1844_v35 = vadd.f32 %v1836_v11, %v1820_v17  ;;  %v1846_v28 = vadd.f32 %v1838_v30, %v1822_v55  ;;  %v2187_v61 = vadd.f32 %v2179_v38, %v2163_v9  ;;  %v2251_v46 = vmul.f32 %v6090_v13, %v8455_v37  ;;  %v8463_v55 = vld [vmem:[#allocation87_spill] sm:$0xff] }
 0x17a   : > { %v2189_v4 = vadd.f32 %v2181_v23, %v2165_v50  ;;  %v2253_v42 = vmul.f32 %v6090_v13, %v5897_v7  ;;  %v2405_v58 = vrot.slane %v6210_v5, %v8425_v60  ;;  %v2439_v32 = vrot.slane %v6210_v5, %v8427_v14  ;;  %v8457_v13 = vld [vmem:[#allocation15_spill] sm:$0xff]  ;;  %v8462_v23 = vld [vmem:[#allocation85_spill] sm:$0xff] }
 0x17b   : > { %v1860_v12 = vmax.f32 %v1844_v35, 0.0  ;;  %v1862_v15 = vmax.f32 %v1846_v28, 0.0  ;;  %v2211_v59 = vadd.f32 %v2203_v41, %v2187_v61  ;;  %v2473_v16 = vrot.slane %v6210_v5, %v8456_v53  ;;  %v8464_v50 = vld [vmem:[#allocation35_spill] sm:$0xff]  ;;  %v8466_v35 = vld [vmem:[#allocation16_spill] sm:$0xff] }
 0x17c   : > { %v2213_v48 = vadd.f32 %v2205_v19, %v2189_v4  ;;  %v6229_v1 = vrot.slane %v2405_v58, %v8436_v22  ;;  %v6232_v8 = vrot.slane %v2439_v32, %v8431_v3  ;;  %v2507_v11 = vrot.slane %v6210_v5, %v8457_v13 }
 0x17d   : > { %v1870_v49 = vpack.c.bf16 %v1862_v15, %v1860_v12  ;;  %v2235_v30 = vadd.f32 %v2227_v33, %v2211_v59  ;;  %v6240_v39 = vrot.slane %v2473_v16, %v8408_v29  ;;  %v2820_v51 = vrot.slane %v6237_v56, %v8425_v60  ;;  %v8465_v33 = vld [vmem:[#allocation51_spill] sm:$0xff]  ;;  %v8467_v15 = vld [vmem:[#allocation12_spill] sm:$0xff] }
 0x17e   : > { %v2237_v36 = vadd.f32 %v2229_v6, %v2213_v48  ;;  %v2417_v20 = vmul.f32 %v6229_v1, %v8458_v40  ;;  %v2419_v54 = vmul.f32 %v6229_v1, %v8459_v44  ;;  %v2451_v47 = vmul.f32 %v6232_v8, %v8460_v0  ;;  %v8468_v16 = vld [vmem:[#allocation31_spill] sm:$0xff]  ;;  %v8469_v48 = vld [vmem:[#allocation49_spill] sm:$0xff] }
 0x17f   : > { %1879 = vmatpush1.bf16.msra.mxu0 %v1870_v49  ;;  %v2259_v62 = vadd.f32 %v2251_v46, %v2235_v30  ;;  %v2453_v38 = vmul.f32 %v6232_v8, %v8461_v24  ;;  %v2485_v17 = vmul.f32 %v6240_v39, %v8462_v23  ;;  %v2487_v9 = vmul.f32 %v6240_v39, %v8463_v55 }
 0x180   : > { %v2261_v41 = vadd.f32 %v2253_v42, %v2237_v36  ;;  %v2425_v19 = vadd.f32 %v2417_v20, %v8464_v50  ;;  %v2427_v6 = vadd.f32 %v2419_v54, %v8465_v33  ;;  %v6259_v28 = vrot.slane %v2507_v11, %v8466_v35 }
 0x181   : > { %v2275_v61 = vmax.f32 %v2259_v62, 0.0  ;;  %v6262_v46 = vrot.slane %v2820_v51, %v8436_v22  ;;  %v2854_v4 = vrot.slane %v6237_v56, %v8427_v14  ;;  %v2888_v58 = vrot.slane %v6237_v56, %v8456_v53 }
 0x182   : > { %v2277_v32 = vmax.f32 %v2261_v41, 0.0  ;;  %v2459_v12 = vadd.f32 %v2451_v47, %v2425_v19  ;;  %v2461_v42 = vadd.f32 %v2453_v38, %v2427_v6  ;;  %v2519_v59 = vmul.f32 %v6259_v28, %v8467_v15  ;;  %4231 = vmatmul.mubr.msk.bf16.vlgmr.msra.gmra.mrb[16].mxu0 %vm1045_vm0, %v8468_v16 }
 0x183   : > { %v2521_v11 = vmul.f32 %v6259_v28, %v8469_v48  ;;  %v2832_v49 = vmul.f32 %v6262_v46, %v8458_v40  ;;  %v2834_v30 = vmul.f32 %v6262_v46, %v8459_v44  ;;  %v6279_v51 = vrot.slane %v2854_v4, %v8431_v3  ;;  %1914 = vmatprep.mubr.bf16.mxu0 %v8439_v63 }
 0x184   : > { %v2285_v36 = vpack.c.bf16 %v2277_v32, %v2275_v61  ;;  %v2493_v20 = vadd.f32 %v2485_v17, %v2459_v12  ;;  %v2495_v54 = vadd.f32 %v2487_v9, %v2461_v42  ;;  %v6283_v47 = vrot.slane %v2888_v58, %v8408_v29 }
 0x185   : > { %v2840_v62 = vadd.f32 %v2832_v49, %v8464_v50  ;;  %v2842_v38 = vadd.f32 %v2834_v30, %v8465_v33  ;;  %v2866_v41 = vmul.f32 %v6279_v51, %v8460_v0  ;;  %v2868_v19 = vmul.f32 %v6279_v51, %v8461_v24 }
 0x186   : > { %2294 = vmatpush1.bf16.msra.mxu1 %v2285_v36  ;;  %v2527_v6 = vadd.f32 %v2519_v59, %v2493_v20  ;;  %v2529_v4 = vadd.f32 %v2521_v11, %v2495_v54  ;;  %v2900_v17 = vmul.f32 %v6283_v47, %v8462_v23  ;;  %v2902_v9 = vmul.f32 %v6283_v47, %v8463_v55 }
 0x187   : > { %v2874_v61 = vadd.f32 %v2866_v41, %v2840_v62  ;;  %v2876_v58 = vadd.f32 %v2868_v19, %v2842_v38  ;;  %v2922_v32 = vrot.slane %v6237_v56, %v8457_v13  ;;  %v2401_v12 = vrot.slane %v6210_v5, %v8436_v22 }
 0x188   : > { %v2679_v42 = vmax.f32 %v2527_v6, 0.0  ;;  %v2681_v49 = vmax.f32 %v2529_v4, 0.0  ;;  %v2435_v59 = vrot.slane %v6210_v5, %v8431_v3  ;;  %v2469_v11 = vrot.slane %v6210_v5, %v8408_v29 }
 0x189   : > { %v2908_v30 = vadd.f32 %v2900_v17, %v2874_v61  ;;  %v2910_v36 = vadd.f32 %v2902_v9, %v2876_v58  ;;  %v6304_v20 = vrot.slane %v2922_v32, %v8466_v35  ;;  %4238 = vmatmul.mubr.msk.bf16.vlgmr.msra.gmra.mrb[16].mxu1 %vm1045_vm0, %v8468_v16  ;;  %v6309_v54 = vrot.slane %v2401_v12, %v8436_v22  ;;  %v8470_v9 = vld [vmem:[#allocation33_spill] sm:$0xff] }
 0x18a   : > { %v2695_v62 = vpack.c.bf16 %v2681_v49, %v2679_v42  ;;  %v6312_v38 = vrot.slane %v2435_v59, %v8431_v3  ;;  %v6315_v41 = vrot.slane %v2469_v11, %v8408_v29  ;;  %v2503_v19 = vrot.slane %v6210_v5, %v8466_v35  ;;  %2329 = vmatprep.mubr.bf16.mxu1 %v8439_v63 }
 0x18b   : > { %v2934_v6 = vmul.f32 %v6304_v20, %v8467_v15  ;;  %v2936_v16 = vmul.f32 %v6304_v20, %v8469_v48  ;;  %v2416_v4 = vmul.f32 %v6309_v54, %v8458_v40  ;;  %v2418_v17 = vmul.f32 %v6309_v54, %v8459_v44  ;;  %4232 = vmatmul.mubr.msk.bf16.gmra.mrb[20].mxu0 %vm1045_vm0, %v8470_v9 }
 0x18c   : > { %2702 = vmatprep.subr.bf16.mxu0 %v2695_v62  ;;  %v2450_v5 = vmul.f32 %v6312_v38, %v8460_v0  ;;  %v2452_v61 = vmul.f32 %v6312_v38, %v8461_v24  ;;  %v2484_v58 = vmul.f32 %v6315_v41, %v8462_v23  ;;  %v2486_v32 = vmul.f32 %v6315_v41, %v8463_v55 }
 0x18d   : > { %v2942_v12 = vadd.f32 %v2934_v6, %v2908_v30  ;;  %v2944_v42 = vadd.f32 %v2936_v16, %v2910_v36  ;;  %v2424_v49 = vadd.f32 %v2416_v4, %v8464_v50  ;;  %v2426_v59 = vadd.f32 %v2418_v17, %v8465_v33  ;;  %1924 = vmatprep.mubr.bf16.mxu0 %v8439_v63 }
 0x18e   : > { %v6342_v11 = vrot.slane %v2503_v19, %v8466_v35  ;;  %v2816_v62 = vrot.slane %v6237_v56, %v8436_v22  ;;  %v2850_v13 = vrot.slane %v6237_v56, %v8431_v3  ;;  %v2884_v53 = vrot.slane %v6237_v56, %v8408_v29 }
 0x18f   : > { %v3094_v30 = vmax.f32 %v2942_v12, 0.0  ;;  %v3096_v36 = vmax.f32 %v2944_v42, 0.0  ;;  %v2458_v6 = vadd.f32 %v2450_v5, %v2424_v49  ;;  %v2460_v16 = vadd.f32 %v2452_v61, %v2426_v59 }
 0x190   : > { %v2518_v4 = vmul.f32 %v6342_v11, %v8467_v15  ;;  %v2520_v19 = vmul.f32 %v6342_v11, %v8469_v48  ;;  %v6355_v17 = vrot.slane %v2816_v62, %v8436_v22  ;;  %v6358_v7 = vrot.slane %v2850_v13, %v8431_v3 }
 0x191   : > { %v3110_v37 = vpack.c.bf16 %v3096_v36, %v3094_v30  ;;  %v2492_v52 = vadd.f32 %v2484_v58, %v2458_v6  ;;  %v2494_v45 = vadd.f32 %v2486_v32, %v2460_v16  ;;  %v6361_v12 = vrot.slane %v2884_v53, %v8408_v29  ;;  %4239 = vmatmul.mubr.msk.bf16.gmra.mrb[20].mxu1 %vm1045_vm0, %v8470_v9  ;;  %v8471_v30 = vld [vmem:[#allocation80_spill] sm:$0xff]  ;;  %v8472_v6 = vld [vmem:[#allocation39_spill] sm:$0xff] }
 0x192   : > { %v2831_v5 = vmul.f32 %v6355_v17, %v8458_v40  ;;  %v2833_v61 = vmul.f32 %v6355_v17, %v8459_v44  ;;  %v2865_v42 = vmul.f32 %v6358_v7, %v8460_v0  ;;  %v2867_v13 = vmul.f32 %v6358_v7, %v8461_v24  ;;  %2339 = vmatprep.mubr.bf16.mxu1 %v8439_v63  ;;  %v8478_v0 = vld [vmem:[#allocation50_spill] sm:$0xff] }
 0x193   : > { %3117 = vmatprep.subr.bf16.mxu1 %v3110_v37  ;;  %v2526_v53 = vadd.f32 %v2518_v4, %v2492_v52  ;;  %v2528_v58 = vadd.f32 %v2520_v19, %v2494_v45  ;;  %v2899_v9 = vmul.f32 %v6361_v12, %v8462_v23  ;;  %v2901_v32 = vmul.f32 %v6361_v12, %v8463_v55  ;;  %v8473_v37 = vld [vmem:[#allocation86_spill] sm:$0xff]  ;;  %v8474_v4 = vld [vmem:[#allocation52_spill] sm:$0xff]  ;;  %v8476_v23 = vld [vmem:[#allocation91_spill] sm:$0xff] }
 0x194   : > { %v2839_v49 = vadd.f32 %v2831_v5, %v8464_v50  ;;  %v2841_v59 = vadd.f32 %v2833_v61, %v8465_v33  ;;  %v2918_v62 = vrot.slane %v6237_v56, %v8466_v35  ;;  %v2421_v36 = vmul.f32 %v6229_v1, %v8471_v30  ;;  %4233 = vmatmul.mubr.msk.bf16.gmra.mrb[24].mxu0 %vm1045_vm0, %v8472_v6  ;;  %v8475_v55 = vld [vmem:[#allocation90_spill] sm:$0xff] }
 0x195   : > { %v2678_v45 = vmax.f32 %v2526_v53, 0.0  ;;  %v2680_v52 = vmax.f32 %v2528_v58, 0.0  ;;  %v2423_v16 = vmul.f32 %v6229_v1, %v8473_v37  ;;  %v2455_v19 = vmul.f32 %v6232_v8, %v8474_v4  ;;  %1934 = vmatprep.mubr.bf16.mxu0 %v8439_v63  ;;  %v8477_v53 = vld [vmem:[#allocation83_spill] sm:$0xff] }
 0x196   : > { %v2873_v5 = vadd.f32 %v2865_v42, %v2839_v49  ;;  %v2875_v61 = vadd.f32 %v2867_v13, %v2841_v59  ;;  %v6392_v56 = vrot.slane %v2918_v62, %v8466_v35  ;;  %v2429_v33 = vadd.f32 %v2421_v36, %v8475_v55  ;;  %v8479_v62 = vld [vmem:[#allocation94_spill] sm:$0xff] }
 0x197   : > { %v2694_v50 = vpack.c.bf16 %v2680_v52, %v2678_v45  ;;  %v2431_v24 = vadd.f32 %v2423_v16, %v8476_v23  ;;  %v2457_v58 = vmul.f32 %v6232_v8, %v8477_v53  ;;  %v2489_v1 = vmul.f32 %v6240_v39, %v8478_v0  ;;  %v8480_v45 = vld [vmem:[#allocation74_spill] sm:$0xff] }
 0x198   : > { %v2907_v44 = vadd.f32 %v2899_v9, %v2873_v5  ;;  %v2909_v40 = vadd.f32 %v2901_v32, %v2875_v61  ;;  %v2933_v42 = vmul.f32 %v6392_v56, %v8467_v15  ;;  %v2935_v13 = vmul.f32 %v6392_v56, %v8469_v48 }
 0x199   : > { %2703 = vmatpush1.bf16.msra.mxu0 %v2694_v50  ;;  %v2463_v49 = vadd.f32 %v2455_v19, %v2429_v33  ;;  %v2465_v59 = vadd.f32 %v2457_v58, %v2431_v24  ;;  %v2491_v36 = vmul.f32 %v6240_v39, %v8479_v62  ;;  %v2523_v8 = vmul.f32 %v6259_v28, %v8480_v45 }
 0x19a   : > { %v2941_v52 = vadd.f32 %v2933_v42, %v2907_v44  ;;  %v2943_v16 = vadd.f32 %v2935_v13, %v2909_v40  ;;  %v2525_v9 = vmul.f32 %v6259_v28, %v8481_v27  ;;  %v2836_v32 = vmul.f32 %v6262_v46, %v8471_v30  ;;  %4240 = vmatmul.mubr.msk.bf16.gmra.mrb[24].mxu1 %vm1045_vm0, %v8472_v6 }
 0x19b   : > { %v2497_v50 = vadd.f32 %v2489_v1, %v2463_v49  ;;  %v2499_v33 = vadd.f32 %v2491_v36, %v2465_v59  ;;  %v2838_v24 = vmul.f32 %v6262_v46, %v8473_v37  ;;  %v2870_v39 = vmul.f32 %v6279_v51, %v8474_v4  ;;  %2349 = vmatprep.mubr.bf16.mxu1 %v8439_v63 }
 0x19c   : > { %v3093_v40 = vmax.f32 %v2941_v52, 0.0  ;;  %v3095_v44 = vmax.f32 %v2943_v16, 0.0  ;;  %v2844_v28 = vadd.f32 %v2836_v32, %v8475_v55  ;;  %v2872_v19 = vmul.f32 %v6279_v51, %v8477_v53  ;;  %4234 = vmatmul.mubr.msk.bf16.gmra.mrb[28].mxu0 %vm1045_vm0, %v6112_v21 }
 0x19d   : > { %v2531_v6 = vadd.f32 %v2523_v8, %v2497_v50  ;;  %v2533_v5 = vadd.f32 %v2525_v9, %v2499_v33  ;;  %v2846_v61 = vadd.f32 %v2838_v24, %v8476_v23  ;;  %v2904_v46 = vmul.f32 %v6283_v47, %v8478_v0  ;;  %2734 = vmatprep.mubr.bf16.mxu0 %v8439_v63 }
 0x19e   : > { %v3109_v58 = vpack.c.bf16 %v3095_v44, %v3093_v40  ;;  %v2878_v1 = vadd.f32 %v2870_v39, %v2844_v28  ;;  %v2906_v42 = vmul.f32 %v6283_v47, %v8479_v62  ;;  %v2938_v51 = vmul.f32 %v6304_v20, %v8480_v45 }
 0x19f   : > { %v2683_v13 = vmax.f32 %v2531_v6, 0.0  ;;  %v2685_v49 = vmax.f32 %v2533_v5, 0.0  ;;  %v2880_v59 = vadd.f32 %v2872_v19, %v2846_v61  ;;  %v2940_v36 = vmul.f32 %v6304_v20, %v8481_v27 }
 0x1a0   : > { %3118 = vmatpush1.bf16.msra.mxu1 %v3109_v58  ;;  %v2912_v8 = vadd.f32 %v2904_v46, %v2878_v1  ;;  %v2420_v52 = vmul.f32 %v6309_v54, %v8471_v30  ;;  %v2422_v16 = vmul.f32 %v6309_v54, %v8473_v37  ;;  %v2454_v47 = vmul.f32 %v6312_v38, %v8474_v4 }
 0x1a1   : > { %v2697_v9 = vpack.c.bf16 %v2685_v49, %v2683_v13  ;;  %v2914_v32 = vadd.f32 %v2906_v42, %v2880_v59  ;;  %v2456_v50 = vmul.f32 %v6312_v38, %v8477_v53  ;;  %v2488_v33 = vmul.f32 %v6315_v41, %v8478_v0  ;;  %v4244_v13 = vld [vmem:[%s4701_s19 + $0x48] sm:$0x3f] }
 0x1a2   : > { %v2946_v20 = vadd.f32 %v2938_v51, %v2912_v8  ;;  %v2428_v24 = vadd.f32 %v2420_v52, %v8475_v55  ;;  %v2430_v39 = vadd.f32 %v2422_v16, %v8476_v23  ;;  %v2490_v40 = vmul.f32 %v6315_v41, %v8479_v62  ;;  %4241 = vmatmul.mubr.msk.bf16.gmra.mrb[28].mxu1 %vm1045_vm0, %v6112_v21 }
 0x1a3   : > { %2704 = vmatprep.subr.bf16.mxu0 %v2697_v9  ;;  %v2948_v54 = vadd.f32 %v2940_v36, %v2914_v32  ;;  %v2522_v44 = vmul.f32 %v6342_v11, %v8480_v45  ;;  %v2524_v38 = vmul.f32 %v6342_v11, %v8481_v27  ;;  %v2835_v28 = vmul.f32 %v6355_v17, %v8471_v30  ;;  %v4243_v30 = vld [vmem:[%s4701_s19 + $0x40] sm:$0x3f] }
 0x1a4   : > { %v3098_v19 = vmax.f32 %v2946_v20, 0.0  ;;  %v2462_v6 = vadd.f32 %v2454_v47, %v2428_v24  ;;  %v2464_v5 = vadd.f32 %v2456_v50, %v2430_v39  ;;  %v2837_v41 = vmul.f32 %v6355_v17, %v8473_v37  ;;  %3149 = vmatprep.mubr.bf16.mxu1 %v8439_v63 }
 0x1a5   : > { %v3100_v21 = vmax.f32 %v2948_v54, 0.0  ;;  %v2843_v61 = vadd.f32 %v2835_v28, %v8475_v55  ;;  %v2869_v46 = vmul.f32 %v6358_v7, %v8474_v4  ;;  %v2871_v11 = vmul.f32 %v6358_v7, %v8477_v53  ;;  %v8483_v54 = vld [vmem:[#allocation89_spill] sm:$0xff] }
 0x1a6   : > { %v2496_v58 = vadd.f32 %v2488_v33, %v2462_v6  ;;  %v2498_v1 = vadd.f32 %v2490_v40, %v2464_v5  ;;  %v2845_v42 = vadd.f32 %v2837_v41, %v8476_v23  ;;  %v2903_v51 = vmul.f32 %v6361_v12, %v8478_v0  ;;  %v8485_v5 = vld [vmem:[#allocation75_spill] sm:$0xff] }
 0x1a7   : > { %v3112_v17 = vpack.c.bf16 %v3100_v21, %v3098_v19  ;;  %v2877_v49 = vadd.f32 %v2869_v46, %v2843_v61  ;;  %v2905_v59 = vmul.f32 %v6361_v12, %v8479_v62  ;;  %v2937_v36 = vmul.f32 %v6392_v56, %v8480_v45  ;;  %v8486_v21 = vld [vmem:[#allocation13_spill] sm:$0xff]  ;;  %v4251_v46 = vld [vmem:[%s4701_s19 + $0x58] sm:$0x3f] }
 0x1a8   : > { %v2530_v8 = vadd.f32 %v2522_v44, %v2496_v58  ;;  %v2532_v52 = vadd.f32 %v2524_v38, %v2498_v1  ;;  %v2879_v16 = vadd.f32 %v2871_v11, %v2845_v42  ;;  %v2939_v7 = vmul.f32 %v6392_v56, %v8481_v27  ;;  %v8482_v56 = vld [vmem:[#allocation88_spill] sm:$0xff]  ;;  %v8484_v38 = vld [vmem:[#allocation65_spill] sm:$0xff]  ;;  %v8487_v58 = vld [vmem:[#allocation30_spill] sm:$0xff] }
 0x1a9   : > { %3119 = vmatprep.subr.bf16.mxu1 %v3112_v17  ;;  %v2911_v47 = vadd.f32 %v2903_v51, %v2877_v49  ;;  %v6475_v9 = vrot.slane %v4244_v13, %v8436_v22  ;;  %v6478_v32 = vrot.slane %v4244_v13, %v8431_v3  ;;  %v6481_v12 = vrot.slane %v4244_v13, %v8408_v29  ;;  %v8488_v42 = vld [vmem:[#allocation46_spill] sm:$0xff]  ;;  %v8489_v17 = vld [vmem:[#allocation107_spill] sm:$0xff] }
 0x1aa   : > { %v2682_v50 = vmax.f32 %v2530_v8, 0.0  ;;  %v2684_v33 = vmax.f32 %v2532_v52, 0.0  ;;  %v2913_v20 = vadd.f32 %v2905_v59, %v2879_v16  ;;  %v6484_v24 = vrot.slane %v4244_v13, %v8466_v35  ;;  %v8491_v52 = vld [vmem:[#allocation78_spill] sm:$0xff] }
 0x1ab   : > { %v2945_v39 = vadd.f32 %v2937_v36, %v2911_v47  ;;  %v2543_v40 = vmul.f32 %v6475_v9, %v8482_v56  ;;  %v2545_v44 = vmul.f32 %v6475_v9, %v8483_v54  ;;  %v2567_v28 = vmul.f32 %v6478_v32, %v8484_v38  ;;  %v8490_v36 = vld [vmem:[#allocation76_spill] sm:$0xff] }
 0x1ac   : > { %v2696_v19 = vpack.c.bf16 %v2684_v33, %v2682_v50  ;;  %v2947_v6 = vadd.f32 %v2939_v7, %v2913_v20  ;;  %v2569_v41 = vmul.f32 %v6478_v32, %v8485_v5  ;;  %v2591_v61 = vmul.f32 %v6481_v12, %v8486_v21 }
 0x1ad   : > { %v3097_v11 = vmax.f32 %v2945_v39, 0.0  ;;  %v2551_v1 = vadd.f32 %v2543_v40, %v8487_v58  ;;  %v2553_v51 = vadd.f32 %v2545_v44, %v8488_v42  ;;  %v2593_v49 = vmul.f32 %v6481_v12, %v8489_v17  ;;  %v8492_v40 = vld [vmem:[#allocation69_spill] sm:$0xff] }
 0x1ae   : > { %2705 = vmatpush1.bf16.msra.mxu0 %v2696_v19  ;;  %v3099_v59 = vmax.f32 %v2947_v6, 0.0  ;;  %v2615_v8 = vmul.f32 %v6484_v24, %v8490_v36  ;;  %v2617_v16 = vmul.f32 %v6484_v24, %v8491_v52  ;;  %v6506_v7 = vrot.slane %v4244_v13, %v8425_v60  ;;  %v8493_v19 = vld [vmem:[#allocation23_spill] sm:$0xff] }
 0x1af   : > { %v2575_v47 = vadd.f32 %v2567_v28, %v2551_v1  ;;  %v2577_v50 = vadd.f32 %v2569_v41, %v2553_v51  ;;  %v6509_v33 = vrot.slane %v4244_v13, %v8427_v14  ;;  %v6512_v20 = vrot.slane %v4251_v46, %v8436_v22  ;;  %v8494_v28 = vld [vmem:[#allocation42_spill] sm:$0xff]  ;;  %v8495_v13 = vld [vmem:[#allocation20_spill] sm:$0xff] }
 0x1b0   : > { %v3111_v39 = vpack.c.bf16 %v3099_v59, %v3097_v11  ;;  %v2639_v44 = vmul.f32 %v6506_v7, %v8492_v40  ;;  %v2641_v6 = vmul.f32 %v6506_v7, %v8493_v19  ;;  %v6519_v27 = vrot.slane %v4251_v46, %v8431_v3 }
 0x1b1   : > { %v2599_v45 = vadd.f32 %v2591_v61, %v2575_v47  ;;  %v2601_v62 = vadd.f32 %v2593_v49, %v2577_v50  ;;  %v2663_v41 = vmul.f32 %v6509_v33, %v8494_v28  ;;  %v2665_v1 = vmul.f32 %v6509_v33, %v8495_v13 }
 0x1b2   : > { %3120 = vmatpush1.bf16.msra.mxu1 %v3111_v39  ;;  %v2958_v11 = vmul.f32 %v6512_v20, %v8482_v56  ;;  %v2960_v51 = vmul.f32 %v6512_v20, %v8483_v54  ;;  %v2982_v59 = vmul.f32 %v6519_v27, %v8484_v38  ;;  %v2984_v61 = vmul.f32 %v6519_v27, %v8485_v5 }
 0x1b3   : > { %v2623_v49 = vadd.f32 %v2615_v8, %v2599_v45  ;;  %v2625_v47 = vadd.f32 %v2617_v16, %v2601_v62  ;;  %v6534_v50 = vrot.slane %v4251_v46, %v8408_v29  ;;  %v6537_v39 = vrot.slane %v4251_v46, %v8466_v35 }
 0x1b4   : > { %v2966_v0 = vadd.f32 %v2958_v11, %v8487_v58  ;;  %v2968_v53 = vadd.f32 %v2960_v51, %v8488_v42  ;;  %v6542_v4 = vrot.slane %v4251_v46, %v8425_v60  ;;  %v6545_v23 = vrot.slane %v4251_v46, %v8427_v14 }
 0x1b5   : > { %v2647_v55 = vadd.f32 %v2639_v44, %v2623_v49  ;;  %v2649_v45 = vadd.f32 %v2641_v6, %v2625_v47  ;;  %v3006_v62 = vmul.f32 %v6534_v50, %v8486_v21  ;;  %v3008_v8 = vmul.f32 %v6534_v50, %v8489_v17 }
 0x1b6   : > { %8496 = vst [vmem:[#allocation40_spill] sm:$0xff] %v6545_v23  ;;  %v2990_v16 = vadd.f32 %v2982_v59, %v2966_v0  ;;  %v2992_v37 = vadd.f32 %v2984_v61, %v2968_v53  ;;  %v3030_v11 = vmul.f32 %v6537_v39, %v8490_v36  ;;  %v3032_v51 = vmul.f32 %v6537_v39, %v8491_v52 }
 0x1b7   : > { %v2671_v63 = vadd.f32 %v2663_v41, %v2647_v55  ;;  %v2673_v46 = vadd.f32 %v2665_v1, %v2649_v45  ;;  %v3054_v44 = vmul.f32 %v6542_v4, %v8492_v40  ;;  %v3056_v6 = vmul.f32 %v6542_v4, %v8493_v19 }
 0x1b8   : > { %v3014_v49 = vadd.f32 %v3006_v62, %v2990_v16  ;;  %v3016_v47 = vadd.f32 %v3008_v8, %v2992_v37  ;;  %v3078_v0 = vmul.f32 %v6545_v23, %v8494_v28  ;;  %v3080_v53 = vmul.f32 %v6545_v23, %v8495_v13 }
 0x1b9   : > { %v2687_v59 = vmax.f32 %v2671_v63, 0.0  ;;  %v2689_v61 = vmax.f32 %v2673_v46, 0.0  ;;  %v6565_v55 = vrot.slane %v4243_v30, %v8436_v22  ;;  %v6568_v41 = vrot.slane %v4243_v30, %v8431_v3 }
 0x1ba   : > { %v3038_v1 = vadd.f32 %v3030_v11, %v3014_v49  ;;  %v3040_v45 = vadd.f32 %v3032_v51, %v3016_v47  ;;  %v6571_v62 = vrot.slane %v4243_v30, %v8408_v29  ;;  %v6574_v37 = vrot.slane %v4243_v30, %v8466_v35  ;;  %v4250_v49 = vld [vmem:[%s4701_s19 + $0x50] sm:$0x3f] }
 0x1bb   : > { %8497 = vst [vmem:[#allocation25_spill] sm:$0xff] %v6565_v55  ;;  %8498 = vst [vmem:[#allocation21_spill] sm:$0xff] %v6568_v41  ;;  %v2699_v8 = vpack.c.bf16 %v2689_v61, %v2687_v59  ;;  %v2542_v63 = vmul.f32 %v6565_v55, %v8482_v56  ;;  %v2544_v16 = vmul.f32 %v6565_v55, %v8483_v54 }
 0x1bc   : > { %8499 = vst [vmem:[#allocation32_spill] sm:$0xff] %v6571_v62  ;;  %v2566_v46 = vmul.f32 %v6568_v41, %v8484_v38  ;;  %v3062_v48 = vadd.f32 %v3054_v44, %v3038_v1  ;;  %v3064_v15 = vadd.f32 %v3056_v6, %v3040_v45  ;;  %v2568_v11 = vmul.f32 %v6568_v41, %v8485_v5 }
 0x1bd   : > { %v2590_v51 = vmul.f32 %v6571_v62, %v8486_v21  ;;  %2706 = vmatprep.subr.bf16.mxu0 %v2699_v8  ;;  %v2550_v47 = vadd.f32 %v2542_v63, %v8487_v58  ;;  %v2552_v59 = vadd.f32 %v2544_v16, %v8488_v42  ;;  %v2592_v61 = vmul.f32 %v6571_v62, %v8489_v17 }
 0x1be   : > { %v2614_v55 = vmul.f32 %v6574_v37, %v8490_v36  ;;  %v3086_v44 = vadd.f32 %v3078_v0, %v3062_v48  ;;  %v3088_v6 = vadd.f32 %v3080_v53, %v3064_v15  ;;  %v2616_v1 = vmul.f32 %v6574_v37, %v8491_v52 }
 0x1bf   : > { %v6596_v45 = vrot.slane %v4243_v30, %v8425_v60  ;;  %v2574_v41 = vadd.f32 %v2566_v46, %v2550_v47  ;;  %v2576_v8 = vadd.f32 %v2568_v11, %v2552_v59  ;;  %v6599_v63 = vrot.slane %v4243_v30, %v8427_v14 }
 0x1c0   : > { %v6602_v16 = vrot.slane %v4250_v49, %v8436_v22  ;;  %v3102_v62 = vmax.f32 %v3086_v44, 0.0  ;;  %v3104_v23 = vmax.f32 %v3088_v6, 0.0  ;;  %v6617_v44 = vrot.slane %v4250_v49, %v8431_v3 }
 0x1c1   : > { %v2638_v48 = vmul.f32 %v6596_v45, %v8492_v40  ;;  %v2640_v15 = vmul.f32 %v6596_v45, %v8493_v19  ;;  %v2598_v0 = vadd.f32 %v2590_v51, %v2574_v41  ;;  %v2600_v53 = vadd.f32 %v2592_v61, %v2576_v8 }
 0x1c2   : > { %v2662_v46 = vmul.f32 %v6599_v63, %v8494_v28  ;;  %v2664_v30 = vmul.f32 %v6599_v63, %v8495_v13  ;;  %v3114_v11 = vpack.c.bf16 %v3104_v23, %v3102_v62  ;;  %v2957_v47 = vmul.f32 %v6602_v16, %v8482_v56 }
 0x1c3   : > { %v2959_v59 = vmul.f32 %v6602_v16, %v8483_v54  ;;  %v2622_v6 = vadd.f32 %v2614_v55, %v2598_v0  ;;  %v2624_v22 = vadd.f32 %v2616_v1, %v2600_v53  ;;  %v6620_v41 = vrot.slane %v4250_v49, %v8408_v29 }
 0x1c4   : > { %v6623_v51 = vrot.slane %v4250_v49, %v8466_v35  ;;  %3121 = vmatprep.subr.bf16.mxu1 %v3114_v11  ;;  %v2965_v23 = vadd.f32 %v2957_v47, %v8487_v58  ;;  %v2981_v61 = vmul.f32 %v6617_v44, %v8484_v38  ;;  %v2983_v8 = vmul.f32 %v6617_v44, %v8485_v5 }
 0x1c5   : > { %v2967_v62 = vadd.f32 %v2959_v59, %v8488_v42  ;;  %v2646_v54 = vadd.f32 %v2638_v48, %v2622_v6  ;;  %v2648_v55 = vadd.f32 %v2640_v15, %v2624_v22  ;;  %v3005_v1 = vmul.f32 %v6620_v41, %v8486_v21 }
 0x1c6   : > { %v3007_v0 = vmul.f32 %v6620_v41, %v8489_v17  ;;  %v2989_v53 = vadd.f32 %v2981_v61, %v2965_v23  ;;  %v3029_v47 = vmul.f32 %v6623_v51, %v8490_v36  ;;  %v3031_v59 = vmul.f32 %v6623_v51, %v8491_v52 }
 0x1c7   : > { %v2991_v11 = vadd.f32 %v2983_v8, %v2967_v62  ;;  %v2670_v42 = vadd.f32 %v2662_v46, %v2646_v54  ;;  %v2672_v58 = vadd.f32 %v2664_v30, %v2648_v55  ;;  %v6640_v5 = vrot.slane %v4250_v49, %v8425_v60 }
 0x1c8   : > { %v6643_v22 = vrot.slane %v4250_v49, %v8427_v14  ;;  %v3013_v48 = vadd.f32 %v3005_v1, %v2989_v53  ;;  %v2547_v6 = vmul.f32 %v6475_v9, %v8443_v31  ;;  %v2549_v23 = vmul.f32 %v6475_v9, %v8445_v34 }
 0x1c9   : > { %v3015_v15 = vadd.f32 %v3007_v0, %v2991_v11  ;;  %v2686_v62 = vmax.f32 %v2670_v42, 0.0  ;;  %v2688_v61 = vmax.f32 %v2672_v58, 0.0  ;;  %v3053_v54 = vmul.f32 %v6640_v5, %v8492_v40 }
 0x1ca   : > { %v3055_v46 = vmul.f32 %v6640_v5, %v8493_v19  ;;  %v3037_v30 = vadd.f32 %v3029_v47, %v3013_v48  ;;  %v3077_v49 = vmul.f32 %v6643_v22, %v8494_v28  ;;  %v3079_v55 = vmul.f32 %v6643_v22, %v8495_v13 }
 0x1cb   : > { %v3039_v8 = vadd.f32 %v3031_v59, %v3015_v15  ;;  %v2698_v1 = vpack.c.bf16 %v2688_v61, %v2686_v62  ;;  %v2555_v0 = vadd.f32 %v2547_v6, %v8446_v57  ;;  %v2557_v9 = vadd.f32 %v2549_v23, %v8447_v10  ;;  %v8500_v6 = vld [vmem:[#allocation38_spill] sm:$0xff] }
 0x1cc   : > { %v2571_v58 = vmul.f32 %v6478_v32, %v8448_v43  ;;  %v3061_v42 = vadd.f32 %v3053_v54, %v3037_v30  ;;  %v2573_v11 = vmul.f32 %v6478_v32, %v8450_v26  ;;  %v2595_v47 = vmul.f32 %v6481_v12, %v8451_v18 }
 0x1cd   : > { %v3063_v53 = vadd.f32 %v3055_v46, %v3039_v8  ;;  %2707 = vmatpush1.bf16.msra.mxu0 %v2698_v1  ;;  %v2597_v48 = vmul.f32 %v6481_v12, %v8452_v2  ;;  %v2619_v15 = vmul.f32 %v6484_v24, %v8453_v25  ;;  %v2621_v23 = vmul.f32 %v6484_v24, %v8500_v6  ;;  %v8501_v46 = vld [vmem:[#allocation19_spill] sm:$0xff]  ;;  %v8502_v8 = vld [vmem:[#allocation70_spill] sm:$0xff] }
 0x1ce   : > { %v2579_v59 = vadd.f32 %v2571_v58, %v2555_v0  ;;  %v3085_v62 = vadd.f32 %v3077_v49, %v3061_v42  ;;  %v2581_v54 = vadd.f32 %v2573_v11, %v2557_v9  ;;  %v2643_v32 = vmul.f32 %v6506_v7, %v8501_v46  ;;  %v8503_v0 = vld [vmem:[#allocation103_spill] sm:$0xff] }
 0x1cf   : > { %v3087_v61 = vadd.f32 %v3079_v55, %v3063_v53  ;;  %v2645_v1 = vmul.f32 %v6506_v7, %v8502_v8  ;;  %v2667_v58 = vmul.f32 %v6509_v33, %v8503_v0  ;;  %v8504_v12 = vld [vmem:[#allocation27_spill] sm:$0xff]  ;;  %v2962_v24 = vmul.f32 %v6512_v20, %v8443_v31 }
 0x1d0   : > { %v2603_v30 = vadd.f32 %v2595_v47, %v2579_v59  ;;  %v2669_v13 = vmul.f32 %v6509_v33, %v8504_v12  ;;  %v3101_v28 = vmax.f32 %v3085_v62, 0.0  ;;  %v2605_v40 = vadd.f32 %v2597_v48, %v2581_v54 }
 0x1d1   : > { %v3103_v19 = vmax.f32 %v3087_v61, 0.0  ;;  %v2964_v55 = vmul.f32 %v6512_v20, %v8445_v34  ;;  %v2986_v9 = vmul.f32 %v6519_v27, %v8448_v43  ;;  %v2988_v7 = vmul.f32 %v6519_v27, %v8450_v26  ;;  %v8505_v61 = vld [vmem:[#allocation40_spill] sm:$0xff] }
 0x1d2   : > { %v2627_v49 = vadd.f32 %v2619_v15, %v2603_v30  ;;  %v2629_v53 = vadd.f32 %v2621_v23, %v2605_v40  ;;  %v2970_v33 = vadd.f32 %v2962_v24, %v8446_v57  ;;  %v3010_v11 = vmul.f32 %v6534_v50, %v8451_v18 }
 0x1d3   : > { %v3113_v42 = vpack.c.bf16 %v3103_v19, %v3101_v28  ;;  %v2972_v59 = vadd.f32 %v2964_v55, %v8447_v10  ;;  %v3012_v48 = vmul.f32 %v6534_v50, %v8452_v2  ;;  %v3034_v20 = vmul.f32 %v6537_v39, %v8453_v25  ;;  %v8507_v55 = vld [vmem:[#allocation21_spill] sm:$0xff] }
 0x1d4   : > { %v2651_v47 = vadd.f32 %v2643_v32, %v2627_v49  ;;  %v2653_v15 = vadd.f32 %v2645_v1, %v2629_v53  ;;  %v2994_v62 = vadd.f32 %v2986_v9, %v2970_v33  ;;  %v3036_v27 = vmul.f32 %v6537_v39, %v8500_v6  ;;  %v8506_v1 = vld [vmem:[#allocation25_spill] sm:$0xff] }
 0x1d5   : > { %3122 = vmatpush1.bf16.msra.mxu1 %v3113_v42  ;;  %v3058_v40 = vmul.f32 %v6542_v4, %v8501_v46  ;;  %v2996_v28 = vadd.f32 %v2988_v7, %v2972_v59  ;;  %v3060_v23 = vmul.f32 %v6542_v4, %v8502_v8  ;;  %v3082_v50 = vmul.f32 %v8505_v61, %v8503_v0 }
 0x1d6   : > { %v2675_v19 = vadd.f32 %v2667_v58, %v2651_v47  ;;  %v2677_v54 = vadd.f32 %v2669_v13, %v2653_v15  ;;  %v3018_v32 = vadd.f32 %v3010_v11, %v2994_v62  ;;  %v3084_v30 = vmul.f32 %v8505_v61, %v8504_v12  ;;  %v8508_v11 = vld [vmem:[#allocation32_spill] sm:$0xff] }
 0x1d7   : > { %v2546_v24 = vmul.f32 %v8506_v1, %v8443_v31  ;;  %v3020_v49 = vadd.f32 %v3012_v48, %v2996_v28  ;;  %v2548_v58 = vmul.f32 %v8506_v1, %v8445_v34  ;;  %v2570_v9 = vmul.f32 %v8507_v55, %v8448_v43 }
 0x1d8   : > { %v2691_v39 = vmax.f32 %v2675_v19, 0.0  ;;  %v2693_v4 = vmax.f32 %v2677_v54, 0.0  ;;  %v3042_v7 = vadd.f32 %v3034_v20, %v3018_v32  ;;  %v2572_v13 = vmul.f32 %v8507_v55, %v8450_v26  ;;  %v461_v19 = vld [vmem:[%s7867_s7] sm:$0xff] }
 0x1d9   : > { %v2554_v42 = vadd.f32 %v2546_v24, %v8446_v57  ;;  %v3044_v53 = vadd.f32 %v3036_v27, %v3020_v49  ;;  %v2556_v33 = vadd.f32 %v2548_v58, %v8447_v10  ;;  %v2594_v47 = vmul.f32 %v8508_v11, %v8451_v18  ;;  %v462_v27 = vld [vmem:[%s7867_s7 + $0x8] sm:$0xff]  ;;  %987 = vperm.xlu0 %4335, %v461_v19  }
 0x1da   : > { %v2596_v59 = vmul.f32 %v8508_v11, %v8452_v2  ;;  %v2701_v48 = vpack.c.bf16 %v2693_v4, %v2691_v39  ;;  %v3066_v15 = vadd.f32 %v3058_v40, %v3042_v7  ;;  %v2618_v20 = vmul.f32 %v6574_v37, %v8453_v25  ;;  %992 = vperm.xlu1 %4336, %v462_v27  }
 0x1db   : > { %v2578_v62 = vadd.f32 %v2570_v9, %v2554_v42  ;;  %v3068_v28 = vadd.f32 %v3060_v23, %v3044_v53  ;;  %v2580_v61 = vadd.f32 %v2572_v13, %v2556_v33  ;;  %v2620_v54 = vmul.f32 %v6574_v37, %v8500_v6  ;;  %v464_v23 = vld [vmem:[%s7867_s7 + $0x18] sm:$0xff] }
 0x1dc   : > { %v2642_v40 = vmul.f32 %v6596_v45, %v8501_v46  ;;  %2708 = vmatprep.subr.bf16.mxu0 %v2701_v48  ;;  %v3090_v32 = vadd.f32 %v3082_v50, %v3066_v15  ;;  %v2644_v24 = vmul.f32 %v6596_v45, %v8502_v8  ;;  %v2666_v39 = vmul.f32 %v6599_v63, %v8503_v0 }
 0x1dd   : > { %v2602_v1 = vadd.f32 %v2594_v47, %v2578_v62  ;;  %v3092_v49 = vadd.f32 %v3084_v30, %v3068_v28  ;;  %v2604_v58 = vadd.f32 %v2596_v59, %v2580_v61  ;;  %v2668_v37 = vmul.f32 %v6599_v63, %v8504_v12  ;;  %v463_v30 = vld [vmem:[%s7867_s7 + $0x10] sm:$0xff]  ;;  %1002 = vperm.xlu0 %4335, %v464_v23   ;;  %v465_v28 = vld [vmem:[%s7867_s7 + $0x20] sm:$0xff] }
 0x1de   : > { %v2961_v55 = vmul.f32 %v6602_v16, %v8443_v31  ;;  %v3106_v50 = vmax.f32 %v3090_v32, 0.0  ;;  %v2963_v45 = vmul.f32 %v6602_v16, %v8445_v34  ;;  %v2985_v4 = vmul.f32 %v6617_v44, %v8448_v43  ;;  %997 = vperm.xlu1 %4336, %v463_v30  }
 0x1df   : > { %v2626_v9 = vadd.f32 %v2618_v20, %v2602_v1  ;;  %v3108_v7 = vmax.f32 %v3092_v49, 0.0  ;;  %v2628_v42 = vadd.f32 %v2620_v54, %v2604_v58  ;;  %v2987_v13 = vmul.f32 %v6617_v44, %v8450_v26  ;;  %v466_v44 = vld [vmem:[%s7867_s7 + $0x28] sm:$0xff] }
 0x1e0   : > { %v2969_v63 = vadd.f32 %v2961_v55, %v8446_v57  ;;  %v2971_v33 = vadd.f32 %v2963_v45, %v8447_v10  ;;  %v3009_v16 = vmul.f32 %v6620_v41, %v8451_v18  ;;  %v3011_v11 = vmul.f32 %v6620_v41, %v8452_v2  ;;  %v6767_v41 = vld [vmem:[%s4596_s18 + $0x30] sm:$0xff]  ;;  %v6785_v55 = vld [vmem:[%s4596_s18 + $0x38] sm:$0xff] }
 0x1e1   : > { %v2650_v53 = vadd.f32 %v2642_v40, %v2626_v9  ;;  %v3116_v47 = vpack.c.bf16 %v3108_v7, %v3106_v50  ;;  %v2652_v59 = vadd.f32 %v2644_v24, %v2628_v42  ;;  %v3033_v15 = vmul.f32 %v6623_v51, %v8453_v25  ;;  %1012 = vperm.xlu0 %4335, %v466_v44   ;;  %v468_v50 = vld [vmem:[%s7867_s7 + $0x38] sm:$0xff] }
 0x1e2   : > { %v2993_v48 = vadd.f32 %v2985_v4, %v2969_v63  ;;  %v2995_v20 = vadd.f32 %v2987_v13, %v2971_v33  ;;  %v3035_v19 = vmul.f32 %v6623_v51, %v8500_v6  ;;  %v3057_v27 = vmul.f32 %v6640_v5, %v8501_v46  ;;  %1007 = vperm.xlu1 %4336, %v465_v28   ;;  %v8510_v9 = vld [vmem:[#allocation8_spill] sm:$0xff]  ;;  %v8511_v4 = vld [vmem:[#allocation15_spill] sm:$0xff]  ;;  %v8516_v28 = vld [vmem:[#allocation85_spill] sm:$0xff] }
 0x1e3   : > { %v2674_v62 = vadd.f32 %v2666_v39, %v2650_v53  ;;  %3123 = vmatprep.subr.bf16.mxu1 %v3116_v47  ;;  %v2676_v61 = vadd.f32 %v2668_v37, %v2652_v59  ;;  %v3059_v40 = vmul.f32 %v6640_v5, %v8502_v8  ;;  %v3081_v32 = vmul.f32 %v6643_v22, %v8503_v0  ;;  %v8509_v37 = vld [vmem:[#allocation9_spill] sm:$0xff]  ;;  %v467_v33 = vld [vmem:[%s7867_s7 + $0x30] sm:$0xff]  ;;  %v8513_v59 = vld [vmem:[#allocation82_spill] sm:$0xff] }
 0x1e4   : > { %v3017_v54 = vadd.f32 %v3009_v16, %v2993_v48  ;;  %v3019_v1 = vadd.f32 %v3011_v11, %v2995_v20  ;;  %v3083_v24 = vmul.f32 %v6643_v22, %v8504_v12  ;;  %v3235_v39 = vrot.slane %v6767_v41, %v8425_v60  ;;  %v8512_v11 = vld [vmem:[#allocation77_spill] sm:$0xff] }
 0x1e5   : > { %v2690_v51 = vmax.f32 %v2674_v62, 0.0  ;;  %v2692_v23 = vmax.f32 %v2676_v61, 0.0  ;;  %v3269_v58 = vrot.slane %v6767_v41, %v8427_v14  ;;  %v3303_v5 = vrot.slane %v6767_v41, %v8509_v37  ;;  %1022 = vperm.xlu0 %4335, %v468_v50   ;;  %v8514_v62 = vld [vmem:[#allocation36_spill] sm:$0xff]  ;;  %v8521_v50 = vld [vmem:[#allocation49_spill] sm:$0xff] }
 0x1e6   : > { %v3041_v49 = vadd.f32 %v3033_v15, %v3017_v54  ;;  %v3043_v22 = vadd.f32 %v3035_v19, %v3019_v1  ;;  %v6791_v45 = vrot.slane %v3235_v39, %v8510_v9  ;;  %v3337_v30 = vrot.slane %v6767_v41, %v8511_v4  ;;  %v8515_v19 = vld [vmem:[#allocation68_spill] sm:$0xff]  ;;  %v8518_v1 = vld [vmem:[#allocation51_spill] sm:$0xff]  ;;  %1017 = vperm.xlu1 %4336, %v467_v33   ;;  %v6835_v33 = vld [vmem:[%s7866_s6] sm:$0xff]  }
 0x1e7   : > { %v3650_v7 = vrot.slane %v6785_v55, %v8425_v60  ;;  %v2700_v42 = vpack.c.bf16 %v2692_v23, %v2690_v51  ;;  %v6798_v13 = vrot.slane %v3269_v58, %v8431_v3  ;;  %v6801_v53 = vrot.slane %v3303_v5, %v8408_v29  ;;  %v8519_v23 = vld [vmem:[#allocation87_spill] sm:$0xff]  ;;  %8522 = vst [vmem:[#allocation41_spill] sm:$0xff] %v6835_v33 }
 0x1e8   : > { %v3065_v63 = vadd.f32 %v3057_v27, %v3041_v49  ;;  %v3067_v16 = vadd.f32 %v3059_v40, %v3043_v22  ;;  %v3247_v47 = vmul.f32 %v6791_v45, %v8512_v11  ;;  %v3249_v48 = vmul.f32 %v6791_v45, %v8513_v59  ;;  %v8517_v40 = vld [vmem:[#allocation35_spill] sm:$0xff] }
 0x1e9   : > { %v6811_v15 = vrot.slane %v3337_v30, %v8466_v35  ;;  %2709 = vmatpush1.bf16.msra.mxu0 %v2700_v42  ;;  %v3281_v20 = vmul.f32 %v6798_v13, %v8514_v62  ;;  %v3283_v27 = vmul.f32 %v6798_v13, %v8515_v19  ;;  %v3315_v61 = vmul.f32 %v6801_v53, %v8516_v28 }
 0x1ea   : > { %v3089_v44 = vadd.f32 %v3081_v32, %v3065_v63  ;;  %v3091_v54 = vadd.f32 %v3083_v24, %v3067_v16  ;;  %v3255_v51 = vadd.f32 %v3247_v47, %v8517_v40  ;;  %v3257_v39 = vadd.f32 %v3249_v48, %v8518_v1  ;;  %v8520_v32 = vld [vmem:[#allocation12_spill] sm:$0xff] }
 0x1eb   : > { %v3317_v49 = vmul.f32 %v6801_v53, %v8519_v23  ;;  %v3349_v5 = vmul.f32 %v6811_v15, %v8520_v32  ;;  %v3351_v22 = vmul.f32 %v6811_v15, %v8521_v50  ;;  %v6828_v30 = vrot.slane %v3650_v7, %v8510_v9 }
 0x1ec   : > { %v3105_v58 = vmax.f32 %v3089_v44, 0.0  ;;  %v3107_v42 = vmax.f32 %v3091_v54, 0.0  ;;  %v3289_v24 = vadd.f32 %v3281_v20, %v3255_v51  ;;  %v3291_v63 = vadd.f32 %v3283_v27, %v3257_v39  ;;  %4245 = vmatmul.mubr.msk.bf16.vlgmr.msra.gmra.mrb[32].mxu0 %vm1045_vm0, %v6835_v33 }
 0x1ed   : > { %v3684_v16 = vrot.slane %v6785_v55, %v8427_v14  ;;  %v3662_v47 = vmul.f32 %v6828_v30, %v8512_v11  ;;  %v3664_v7 = vmul.f32 %v6828_v30, %v8513_v59  ;;  %v3718_v48 = vrot.slane %v6785_v55, %v8509_v37 }
 0x1ee   : > { %v3752_v44 = vrot.slane %v6785_v55, %v8511_v4  ;;  %v8523_v20 = vmov 0   ;;  %v3115_v27 = vpack.c.bf16 %v3107_v42, %v3105_v58  ;;  %v3323_v54 = vadd.f32 %v3315_v61, %v3289_v24 }
 0x1ef   : > { %2744 = vmatprep.mubr.bf16.mxu0 %v8523_v20  ;;  %v3325_v51 = vadd.f32 %v3317_v49, %v3291_v63  ;;  %v6849_v39 = vrot.slane %v3684_v16, %v8431_v3  ;;  %v3670_v12 = vadd.f32 %v3662_v47, %v8517_v40  ;;  %v3672_v0 = vadd.f32 %v3664_v7, %v8518_v1 }
 0x1f0   : > { %v6854_v8 = vrot.slane %v3718_v48, %v8408_v29  ;;  %v6857_v37 = vrot.slane %v3752_v44, %v8466_v35  ;;  %3124 = vmatpush1.bf16.msra.mxu1 %v3115_v27  ;;  %v3357_v4 = vadd.f32 %v3349_v5, %v3323_v54  ;;  %v3231_v7 = vrot.slane %v6767_v41, %v8510_v9 }
 0x1f1   : > { %v3359_v46 = vadd.f32 %v3351_v22, %v3325_v51  ;;  %v3696_v61 = vmul.f32 %v6849_v39, %v8514_v62  ;;  %v3698_v49 = vmul.f32 %v6849_v39, %v8515_v19  ;;  %v3265_v48 = vrot.slane %v6767_v41, %v8431_v3 }
 0x1f2   : > { %v3730_v58 = vmul.f32 %v6854_v8, %v8516_v28  ;;  %v3732_v42 = vmul.f32 %v6854_v8, %v8519_v23  ;;  %v3764_v24 = vmul.f32 %v6857_v37, %v8520_v32  ;;  %v3766_v63 = vmul.f32 %v6857_v37, %v8521_v50 }
 0x1f3   : > { %v3509_v5 = vmax.f32 %v3357_v4, 0.0  ;;  %v3511_v22 = vmax.f32 %v3359_v46, 0.0  ;;  %v3704_v16 = vadd.f32 %v3696_v61, %v3670_v12  ;;  %v3706_v47 = vadd.f32 %v3698_v49, %v3672_v0  ;;  %4252 = vmatmul.mubr.msk.bf16.vlgmr.msra.gmra.mrb[32].mxu1 %vm1045_vm0, %v6835_v33 }
 0x1f4   : > { %v3299_v44 = vrot.slane %v6767_v41, %v8408_v29  ;;  %v3333_v27 = vrot.slane %v6767_v41, %v8466_v35  ;;  %v3646_v0 = vrot.slane %v6785_v55, %v8510_v9  ;;  %3159 = vmatprep.mubr.bf16.mxu1 %v8523_v20  ;;  %v6885_v12 = vrot.slane %v3231_v7, %v8510_v9  ;;  %v6899_v41 = vld [vmem:[%s7866_s6 + $0x8] sm:$0xff]  }
 0x1f5   : > { %v3525_v54 = vpack.c.bf16 %v3511_v22, %v3509_v5  ;;  %v3738_v51 = vadd.f32 %v3730_v58, %v3704_v16  ;;  %v3740_v46 = vadd.f32 %v3732_v42, %v3706_v47  ;;  %v6888_v4 = vrot.slane %v3265_v48, %v8431_v3  ;;  %8524 = vst [vmem:[#allocation45_spill] sm:$0xff] %v6899_v41 }
 0x1f6   : > { %v6891_v61 = vrot.slane %v3299_v44, %v8408_v29  ;;  %v6894_v49 = vrot.slane %v3333_v27, %v8466_v35  ;;  %4246 = vmatmul.mubr.msk.bf16.gmra.mrb[36].mxu0 %vm1045_vm0, %v6899_v41  ;;  %v6904_v5 = vrot.slane %v3646_v0, %v8510_v9  ;;  %v3680_v22 = vrot.slane %v6785_v55, %v8431_v3 }
 0x1f7   : > { %3532 = vmatprep.subr.bf16.mxu0 %v3525_v54  ;;  %v3772_v58 = vadd.f32 %v3764_v24, %v3738_v51  ;;  %v3774_v42 = vadd.f32 %v3766_v63, %v3740_v46  ;;  %v3246_v16 = vmul.f32 %v6885_v12, %v8512_v11  ;;  %v3248_v47 = vmul.f32 %v6885_v12, %v8513_v59 }
 0x1f8   : > { %v3280_v7 = vmul.f32 %v6888_v4, %v8514_v62  ;;  %v3282_v48 = vmul.f32 %v6888_v4, %v8515_v19  ;;  %2754 = vmatprep.mubr.bf16.mxu0 %v8523_v20  ;;  %v3314_v44 = vmul.f32 %v6891_v61, %v8516_v28  ;;  %v3316_v27 = vmul.f32 %v6891_v61, %v8519_v23 }
 0x1f9   : > { %v3924_v24 = vmax.f32 %v3772_v58, 0.0  ;;  %v3926_v63 = vmax.f32 %v3774_v42, 0.0  ;;  %v3254_v54 = vadd.f32 %v3246_v16, %v8517_v40  ;;  %v3256_v51 = vadd.f32 %v3248_v47, %v8518_v1 }
 0x1fa   : > { %v3348_v46 = vmul.f32 %v6894_v49, %v8520_v32  ;;  %v3350_v0 = vmul.f32 %v6894_v49, %v8521_v50  ;;  %v3661_v58 = vmul.f32 %v6904_v5, %v8512_v11  ;;  %v3663_v42 = vmul.f32 %v6904_v5, %v8513_v59 }
 0x1fb   : > { %v3940_v33 = vpack.c.bf16 %v3926_v63, %v3924_v24  ;;  %v6932_v6 = vrot.slane %v3680_v22, %v8431_v3  ;;  %v3288_v25 = vadd.f32 %v3280_v7, %v3254_v54  ;;  %v3290_v16 = vadd.f32 %v3282_v48, %v3256_v51  ;;  %4253 = vmatmul.mubr.msk.bf16.gmra.mrb[36].mxu1 %vm1045_vm0, %v6899_v41  ;;  %v8525_v54 = vld [vmem:[#allocation80_spill] sm:$0xff]  ;;  %v8526_v51 = vld [vmem:[#allocation86_spill] sm:$0xff] }
 0x1fc   : > { %v3714_v47 = vrot.slane %v6785_v55, %v8408_v29  ;;  %v3748_v2 = vrot.slane %v6785_v55, %v8466_v35  ;;  %v3669_v11 = vadd.f32 %v3661_v58, %v8517_v40  ;;  %v3671_v24 = vadd.f32 %v3663_v42, %v8518_v1  ;;  %3169 = vmatprep.mubr.bf16.mxu1 %v8523_v20  ;;  %v8528_v42 = vld [vmem:[#allocation90_spill] sm:$0xff] }
 0x1fd   : > { %3947 = vmatprep.subr.bf16.mxu1 %v3940_v33  ;;  %v3695_v59 = vmul.f32 %v6932_v6, %v8514_v62  ;;  %v3697_v22 = vmul.f32 %v6932_v6, %v8515_v19  ;;  %v3322_v7 = vadd.f32 %v3314_v44, %v3288_v25  ;;  %v3324_v48 = vadd.f32 %v3316_v27, %v3290_v16  ;;  %v6960_v25 = vld [vmem:[%s7866_s6 + $0x10] sm:$0xff]   ;;  %v8533_v41 = vld [vmem:[#allocation94_spill] sm:$0xff] }
 0x1fe   : > { %v6947_v63 = vrot.slane %v3714_v47, %v8408_v29  ;;  %v6950_v55 = vrot.slane %v3748_v2, %v8466_v35  ;;  %v3251_v1 = vmul.f32 %v6791_v45, %v8525_v54  ;;  %v3253_v62 = vmul.f32 %v6791_v45, %v8526_v51  ;;  %8527 = vst [vmem:[#allocation71_spill] sm:$0xff] %v6960_v25  ;;  %v8529_v47 = vld [vmem:[#allocation91_spill] sm:$0xff] }
 0x1ff   : > { %v3703_v33 = vadd.f32 %v3695_v59, %v3669_v11  ;;  %v3705_v40 = vadd.f32 %v3697_v22, %v3671_v24  ;;  %4247 = vmatmul.mubr.msk.bf16.gmra.mrb[40].mxu0 %vm1045_vm0, %v6960_v25  ;;  %v3356_v2 = vadd.f32 %v3348_v46, %v3322_v7  ;;  %v3358_v19 = vadd.f32 %v3350_v0, %v3324_v48  ;;  %v8532_v48 = vld [vmem:[#allocation50_spill] sm:$0xff] }
 0x200   : > { %v3729_v44 = vmul.f32 %v6947_v63, %v8516_v28  ;;  %v3731_v27 = vmul.f32 %v6947_v63, %v8519_v23  ;;  %2764 = vmatprep.mubr.bf16.mxu0 %v8523_v20  ;;  %v3763_v45 = vmul.f32 %v6950_v55, %v8520_v32  ;;  %v3765_v58 = vmul.f32 %v6950_v55, %v8521_v50  ;;  %v8530_v28 = vld [vmem:[#allocation52_spill] sm:$0xff]  ;;  %v8531_v23 = vld [vmem:[#allocation83_spill] sm:$0xff] }
 0x201   : > { %v3259_v16 = vadd.f32 %v3251_v1, %v8528_v42  ;;  %v3261_v11 = vadd.f32 %v3253_v62, %v8529_v47  ;;  %v3508_v46 = vmax.f32 %v3356_v2, 0.0  ;;  %v3510_v0 = vmax.f32 %v3358_v19, 0.0  ;;  %v8534_v62 = vld [vmem:[#allocation74_spill] sm:$0xff]  ;;  %v8535_v19 = vld [vmem:[#allocation67_spill] sm:$0xff] }
 0x202   : > { %v3737_v24 = vadd.f32 %v3729_v44, %v3703_v33  ;;  %v3739_v59 = vadd.f32 %v3731_v27, %v3705_v40  ;;  %v3285_v22 = vmul.f32 %v6798_v13, %v8530_v28  ;;  %v3287_v7 = vmul.f32 %v6798_v13, %v8531_v23 }
 0x203   : > { %v3319_v32 = vmul.f32 %v6801_v53, %v8532_v48  ;;  %v3321_v50 = vmul.f32 %v6801_v53, %v8533_v41  ;;  %v3524_v18 = vpack.c.bf16 %v3510_v0, %v3508_v46  ;;  %v3353_v2 = vmul.f32 %v6811_v15, %v8534_v62  ;;  %4254 = vmatmul.mubr.msk.bf16.gmra.mrb[40].mxu1 %vm1045_vm0, %v6960_v25  ;;  %v7002_v0 = vld [vmem:[%s7866_s6 + $0x18] sm:$0xff]  }
 0x204   : > { %v3771_v1 = vadd.f32 %v3763_v45, %v3737_v24  ;;  %v3773_v26 = vadd.f32 %v3765_v58, %v3739_v59  ;;  %v3293_v33 = vadd.f32 %v3285_v22, %v3259_v16  ;;  %v3295_v40 = vadd.f32 %v3287_v7, %v3261_v11  ;;  %3179 = vmatprep.mubr.bf16.mxu1 %v8523_v20 }
 0x205   : > { %v3355_v13 = vmul.f32 %v6811_v15, %v8535_v19  ;;  %v3666_v44 = vmul.f32 %v6828_v30, %v8525_v54  ;;  %3533 = vmatpush1.bf16.msra.mxu0 %v3524_v18  ;;  %v3668_v45 = vmul.f32 %v6828_v30, %v8526_v51  ;;  %v3700_v58 = vmul.f32 %v6849_v39, %v8530_v28 }
 0x206   : > { %v3923_v53 = vmax.f32 %v3771_v1, 0.0  ;;  %v3925_v27 = vmax.f32 %v3773_v26, 0.0  ;;  %v3327_v46 = vadd.f32 %v3319_v32, %v3293_v33  ;;  %v3329_v16 = vadd.f32 %v3321_v50, %v3295_v40  ;;  %8536 = vst [vmem:[#allocation28_spill] sm:$0xff] %v7002_v0 }
 0x207   : > { %v3674_v11 = vadd.f32 %v3666_v44, %v8528_v42  ;;  %v3702_v15 = vmul.f32 %v6849_v39, %v8531_v23  ;;  %4248 = vmatmul.mubr.msk.bf16.gmra.mrb[44].mxu0 %vm1045_vm0, %v7002_v0  ;;  %v3676_v18 = vadd.f32 %v3668_v45, %v8529_v47  ;;  %v3734_v30 = vmul.f32 %v6854_v8, %v8532_v48 }
 0x208   : > { %v3939_v26 = vpack.c.bf16 %v3925_v27, %v3923_v53  ;;  %v3736_v24 = vmul.f32 %v6854_v8, %v8533_v41  ;;  %3564 = vmatprep.mubr.bf16.mxu0 %v8523_v20  ;;  %v3361_v39 = vadd.f32 %v3353_v2, %v3327_v46  ;;  %v3363_v59 = vadd.f32 %v3355_v13, %v3329_v16 }
 0x209   : > { %v3708_v22 = vadd.f32 %v3700_v58, %v3674_v11  ;;  %v3768_v7 = vmul.f32 %v6857_v37, %v8534_v62  ;;  %v3710_v32 = vadd.f32 %v3702_v15, %v3676_v18  ;;  %v3770_v50 = vmul.f32 %v6857_v37, %v8535_v19 }
 0x20a   : > { %3948 = vmatpush1.bf16.msra.mxu1 %v3939_v26  ;;  %v3250_v1 = vmul.f32 %v6885_v12, %v8525_v54  ;;  %v3252_v33 = vmul.f32 %v6885_v12, %v8526_v51  ;;  %v3513_v8 = vmax.f32 %v3361_v39, 0.0  ;;  %v3515_v40 = vmax.f32 %v3363_v59, 0.0 }
 0x20b   : > { %v3742_v44 = vadd.f32 %v3734_v30, %v3708_v22  ;;  %v3284_v2 = vmul.f32 %v6888_v4, %v8530_v28  ;;  %v3744_v13 = vadd.f32 %v3736_v24, %v3710_v32  ;;  %v3286_v37 = vmul.f32 %v6888_v4, %v8531_v23  ;;  %4255 = vmatmul.mubr.msk.bf16.gmra.mrb[44].mxu1 %vm1045_vm0, %v7002_v0 }
 0x20c   : > { %v3258_v53 = vadd.f32 %v3250_v1, %v8528_v42  ;;  %v3260_v27 = vadd.f32 %v3252_v33, %v8529_v47  ;;  %v3527_v45 = vpack.c.bf16 %v3515_v40, %v3513_v8  ;;  %v3318_v12 = vmul.f32 %v6891_v61, %v8532_v48  ;;  %3979 = vmatprep.mubr.bf16.mxu1 %v8523_v20 }
 0x20d   : > { %v3776_v58 = vadd.f32 %v3768_v7, %v3742_v44  ;;  %v3320_v46 = vmul.f32 %v6891_v61, %v8533_v41  ;;  %v3778_v16 = vadd.f32 %v3770_v50, %v3744_v13  ;;  %v3352_v4 = vmul.f32 %v6894_v49, %v8534_v62 }
 0x20e   : > { %v3292_v11 = vadd.f32 %v3284_v2, %v3258_v53  ;;  %v3294_v15 = vadd.f32 %v3286_v37, %v3260_v27  ;;  %3534 = vmatprep.subr.bf16.mxu0 %v3527_v45  ;;  %v3354_v18 = vmul.f32 %v6894_v49, %v8535_v19  ;;  %v3665_v30 = vmul.f32 %v6904_v5, %v8525_v54  ;;  %v4258_v54 = vld [vmem:[%s4701_s19 + $0x68] sm:$0x3f]  ;;  %v8538_v45 = vld [vmem:[#allocation75_spill] sm:$0xff] }
 0x20f   : > { %v3928_v26 = vmax.f32 %v3776_v58, 0.0  ;;  %v3667_v61 = vmul.f32 %v6904_v5, %v8526_v51  ;;  %v3930_v24 = vmax.f32 %v3778_v16, 0.0  ;;  %v3699_v22 = vmul.f32 %v6932_v6, %v8530_v28  ;;  %v8539_v16 = vld [vmem:[#allocation30_spill] sm:$0xff] }
 0x210   : > { %v3326_v39 = vadd.f32 %v3318_v12, %v3292_v11  ;;  %v3328_v59 = vadd.f32 %v3320_v46, %v3294_v15  ;;  %v3673_v7 = vadd.f32 %v3665_v30, %v8528_v42  ;;  %v3701_v50 = vmul.f32 %v6932_v6, %v8531_v23  ;;  %v4265_v46 = vld [vmem:[%s4701_s19 + $0x78] sm:$0x3f]  ;;  %v8540_v15 = vld [vmem:[#allocation46_spill] sm:$0xff] }
 0x211   : > { %v3675_v32 = vadd.f32 %v3667_v61, %v8529_v47  ;;  %v3733_v49 = vmul.f32 %v6947_v63, %v8532_v48  ;;  %v3942_v1 = vpack.c.bf16 %v3930_v24, %v3928_v26  ;;  %v3735_v51 = vmul.f32 %v6947_v63, %v8533_v41 }
 0x212   : > { %v3360_v33 = vadd.f32 %v3352_v4, %v3326_v39  ;;  %v3362_v5 = vadd.f32 %v3354_v18, %v3328_v59  ;;  %v3707_v8 = vadd.f32 %v3699_v22, %v3673_v7  ;;  %v3767_v42 = vmul.f32 %v6950_v55, %v8534_v62 }
 0x213   : > { %v3709_v40 = vadd.f32 %v3701_v50, %v3675_v32  ;;  %v3769_v47 = vmul.f32 %v6950_v55, %v8535_v19  ;;  %3949 = vmatprep.subr.bf16.mxu1 %v3942_v1  ;;  %v7057_v23 = vrot.slane %v4258_v54, %v8510_v9  ;;  %v7060_v48 = vrot.slane %v4258_v54, %v8431_v3  ;;  %v8537_v19 = vld [vmem:[#allocation89_spill] sm:$0xff] }
 0x214   : > { %v3512_v6 = vmax.f32 %v3360_v33, 0.0  ;;  %v3514_v28 = vmax.f32 %v3362_v5, 0.0  ;;  %v3741_v44 = vadd.f32 %v3733_v49, %v3707_v8  ;;  %v7063_v63 = vrot.slane %v4258_v54, %v8408_v29  ;;  %v8541_v49 = vld [vmem:[#allocation69_spill] sm:$0xff]  ;;  %v8542_v33 = vld [vmem:[#allocation23_spill] sm:$0xff] }
 0x215   : > { %v3743_v41 = vadd.f32 %v3735_v51, %v3709_v40  ;;  %v7066_v62 = vrot.slane %v4258_v54, %v8466_v35  ;;  %v3373_v55 = vmul.f32 %v7057_v23, %v8482_v56  ;;  %v3375_v13 = vmul.f32 %v7057_v23, %v8537_v19 }
 0x216   : > { %v3526_v2 = vpack.c.bf16 %v3514_v28, %v3512_v6  ;;  %v3397_v53 = vmul.f32 %v7060_v48, %v8484_v38  ;;  %v3775_v27 = vadd.f32 %v3767_v42, %v3741_v44  ;;  %v3399_v58 = vmul.f32 %v7060_v48, %v8538_v45  ;;  %v8543_v42 = vld [vmem:[#allocation42_spill] sm:$0xff] }
 0x217   : > { %v3777_v37 = vadd.f32 %v3769_v47, %v3743_v41  ;;  %v3421_v12 = vmul.f32 %v7063_v63, %v8486_v21  ;;  %v3381_v11 = vadd.f32 %v3373_v55, %v8539_v16  ;;  %v3383_v4 = vadd.f32 %v3375_v13, %v8540_v15 }
 0x218   : > { %3535 = vmatpush1.bf16.msra.mxu0 %v3526_v2  ;;  %v3423_v26 = vmul.f32 %v7063_v63, %v8489_v17  ;;  %v3445_v18 = vmul.f32 %v7066_v62, %v8490_v36  ;;  %v3927_v30 = vmax.f32 %v3775_v27, 0.0  ;;  %v3447_v24 = vmul.f32 %v7066_v62, %v8491_v52 }
 0x219   : > { %v3929_v61 = vmax.f32 %v3777_v37, 0.0  ;;  %v7088_v39 = vrot.slane %v4258_v54, %v8425_v60  ;;  %v3405_v59 = vadd.f32 %v3397_v53, %v3381_v11  ;;  %v3407_v22 = vadd.f32 %v3399_v58, %v3383_v4 }
 0x21a   : > { %v7091_v7 = vrot.slane %v4258_v54, %v8427_v14  ;;  %v7094_v32 = vrot.slane %v4265_v46, %v8510_v9  ;;  %v7101_v51 = vrot.slane %v4265_v46, %v8431_v3  ;;  %v8544_v54 = vld [vmem:[#allocation20_spill] sm:$0xff]  ;;  %v7116_v53 = vrot.slane %v4265_v46, %v8408_v29 }
 0x21b   : > { %v3941_v50 = vpack.c.bf16 %v3929_v61, %v3927_v30  ;;  %v3469_v1 = vmul.f32 %v7088_v39, %v8541_v49  ;;  %v3471_v5 = vmul.f32 %v7088_v39, %v8542_v33  ;;  %v3429_v8 = vadd.f32 %v3421_v12, %v3405_v59 }
 0x21c   : > { %v3431_v40 = vadd.f32 %v3423_v26, %v3407_v22  ;;  %v3493_v47 = vmul.f32 %v7091_v7, %v8543_v42  ;;  %v3495_v6 = vmul.f32 %v7091_v7, %v8544_v54  ;;  %v3788_v28 = vmul.f32 %v7094_v32, %v8482_v56 }
 0x21d   : > { %3950 = vmatpush1.bf16.msra.mxu1 %v3941_v50  ;;  %v3790_v44 = vmul.f32 %v7094_v32, %v8537_v19  ;;  %v3812_v41 = vmul.f32 %v7101_v51, %v8484_v38  ;;  %v3814_v2 = vmul.f32 %v7101_v51, %v8538_v45  ;;  %v3453_v55 = vadd.f32 %v3445_v18, %v3429_v8 }
 0x21e   : > { %v3455_v13 = vadd.f32 %v3447_v24, %v3431_v40  ;;  %v7119_v27 = vrot.slane %v4265_v46, %v8466_v35  ;;  %v3796_v37 = vadd.f32 %v3788_v28, %v8539_v16  ;;  %v7124_v12 = vrot.slane %v4265_v46, %v8425_v60 }
 0x21f   : > { %v3798_v58 = vadd.f32 %v3790_v44, %v8540_v15  ;;  %v7127_v11 = vrot.slane %v4265_v46, %v8427_v14  ;;  %v3477_v4 = vadd.f32 %v3469_v1, %v3453_v55  ;;  %v3836_v18 = vmul.f32 %v7116_v53, %v8486_v21  ;;  %v7133_v61 = vpop.f32.mrb[0].mxu0  ;;  %v7135_v24 = vpop.f32.mrb[0].mxu1  ;;  %v4257_v1 = vld [vmem:[%s4701_s19 + $0x60] sm:$0x3f] }
 0x220   : > { %v3479_v26 = vadd.f32 %v3471_v5, %v3455_v13  ;;  %v3838_v30 = vmul.f32 %v7116_v53, %v8489_v17  ;;  %8545 = vst [vmem:[#allocation47_spill] sm:$0xff] %v7133_v61  ;;  %8546 = vst [vmem:[#allocation48_spill] sm:$0xff] %v7135_v24  ;;  %v3820_v59 = vadd.f32 %v3812_v41, %v3796_v37  ;;  %v7142_v5 = vpop.f32.mrb[1].mxu0  ;;  %v7144_v8 = vpop.f32.mrb[1].mxu1 }
 0x221   : > { %v3822_v22 = vadd.f32 %v3814_v2, %v3798_v58  ;;  %v3860_v50 = vmul.f32 %v7119_v27, %v8490_v36  ;;  %v3862_v46 = vmul.f32 %v7119_v27, %v8491_v52  ;;  %8547 = vst [vmem:[#allocation95_spill] sm:$0xff] %v7142_v5  ;;  %8548 = vst [vmem:[#allocation22_spill] sm:$0xff] %v7144_v8  ;;  %v7150_v2 = vpop.f32.mrb[2].mxu0  ;;  %v7152_v55 = vpop.f32.mrb[2].mxu1 }
 0x222   : > { %v3501_v40 = vadd.f32 %v3493_v47, %v3477_v4  ;;  %v3503_v28 = vadd.f32 %v3495_v6, %v3479_v26  ;;  %v3884_v44 = vmul.f32 %v7124_v12, %v8541_v49  ;;  %v3886_v41 = vmul.f32 %v7124_v12, %v8542_v33  ;;  %8549 = vst [vmem:[#allocation53_spill] sm:$0xff] %v7150_v2  ;;  %v7158_v47 = vpop.f32.mrb[3].mxu0  ;;  %v7160_v6 = vpop.f32.mrb[3].mxu1 }
 0x223   : > { %8550 = vst [vmem:[#allocation54_spill] sm:$0xff] %v7152_v55  ;;  %v3844_v13 = vadd.f32 %v3836_v18, %v3820_v59  ;;  %v3846_v37 = vadd.f32 %v3838_v30, %v3822_v22  ;;  %v3908_v58 = vmul.f32 %v7127_v11, %v8543_v42  ;;  %v3910_v0 = vmul.f32 %v7127_v11, %v8544_v54 }
 0x224   : > { %8551 = vst [vmem:[#allocation59_spill] sm:$0xff] %v7158_v47  ;;  %8552 = vst [vmem:[#allocation60_spill] sm:$0xff] %v7160_v6  ;;  %v3517_v4 = vmax.f32 %v3501_v40, 0.0  ;;  %v3519_v26 = vmax.f32 %v3503_v28, 0.0  ;;  %v7163_v25 = vrot.slane %v4257_v1, %v8510_v9  ;;  %v7166_v55 = vrot.slane %v4257_v1, %v8431_v3 }
 0x225   : > { %v3868_v18 = vadd.f32 %v3860_v50, %v3844_v13  ;;  %v3870_v30 = vadd.f32 %v3862_v46, %v3846_v37  ;;  %v7169_v59 = vrot.slane %v4257_v1, %v8408_v29  ;;  %v7172_v22 = vrot.slane %v4257_v1, %v8466_v35  ;;  %v4264_v13 = vld [vmem:[%s4701_s19 + $0x70] sm:$0x3f]  ;;  %s7778_s19 = scalar_lea.vmem [#allocation4], %s4629_s27  ;;  %s4277_s27 = sshll.u32 (%p4456_p5), %s4199_s30, 4 }
 0x226   : > { %v3529_v47 = vpack.c.bf16 %v3519_v26, %v3517_v4  ;;  %v3372_v40 = vmul.f32 %v7163_v25, %v8482_v56  ;;  %v3374_v28 = vmul.f32 %v7163_v25, %v8537_v19  ;;  %v3396_v6 = vmul.f32 %v7166_v55, %v8484_v38  ;;  %s4077_s14 = scalar_lea.vmem (%p4456_p5), %s7868_s8, %s4277_s27 }
 0x227   : > { %8553 = vst [vmem:[#allocation37_spill] sm:$0xff] %v7169_v59  ;;  %v3892_v2 = vadd.f32 %v3884_v44, %v3868_v18  ;;  %v3894_v24 = vadd.f32 %v3886_v41, %v3870_v30  ;;  %v3398_v50 = vmul.f32 %v7166_v55, %v8538_v45  ;;  %v3420_v46 = vmul.f32 %v7169_v59, %v8486_v21  ;;  %v7191_v44 = vpop.f32.mrb[4].mxu0  ;;  %v7193_v41 = vpop.f32.mrb[4].mxu1 }
 0x228   : > { %3536 = vmatprep.subr.bf16.mxu0 %v3529_v47  ;;  %v3380_v37 = vadd.f32 %v3372_v40, %v8539_v16  ;;  %v3382_v4 = vadd.f32 %v3374_v28, %v8540_v15  ;;  %v3422_v26 = vmul.f32 %v7169_v59, %v8489_v17  ;;  %v3444_v61 = vmul.f32 %v7172_v22, %v8490_v36  ;;  %v7200_v40 = vpop.f32.mrb[5].mxu0  ;;  %v7202_v28 = vpop.f32.mrb[5].mxu1 }
 0x229   : > { %8554 = vst [vmem:[#allocation43_spill] sm:$0xff] %v7191_v44  ;;  %8555 = vst [vmem:[#allocation44_spill] sm:$0xff] %v7193_v41  ;;  %v3916_v18 = vadd.f32 %v3908_v58, %v3892_v2  ;;  %v3918_v30 = vadd.f32 %v3910_v0, %v3894_v24  ;;  %v3446_v8 = vmul.f32 %v7172_v22, %v8491_v52  ;;  %v7210_v2 = vpop.f32.mrb[6].mxu0  ;;  %v7212_v0 = vpop.f32.mrb[6].mxu1 }
 0x22a   : > { %v7198_v47 = vrot.slane %v4257_v1, %v8425_v60  ;;  %8556 = vst [vmem:[#allocation97_spill] sm:$0xff] %v7200_v40  ;;  %8557 = vst [vmem:[#allocation29_spill] sm:$0xff] %v7202_v28  ;;  %v3404_v5 = vadd.f32 %v3396_v6, %v3380_v37  ;;  %v3406_v20 = vadd.f32 %v3398_v50, %v3382_v4  ;;  %v7218_v6 = vpop.f32.mrb[7].mxu0  ;;  %v7220_v50 = vpop.f32.mrb[7].mxu1 }
 0x22b   : > { %v7205_v59 = vrot.slane %v4257_v1, %v8427_v14  ;;  %v7208_v44 = vrot.slane %v4264_v13, %v8510_v9  ;;  %8558 = vst [vmem:[#allocation72_spill] sm:$0xff] %v7212_v0  ;;  %v3932_v24 = vmax.f32 %v3916_v18, 0.0  ;;  %v3934_v58 = vmax.f32 %v3918_v30, 0.0  ;;  %8559 = vst [vmem:[#allocation55_spill] sm:$0xff] %v7218_v6 }
 0x22c   : > { %v3468_v41 = vmul.f32 %v7198_v47, %v8541_v49  ;;  %v3470_v28 = vmul.f32 %v7198_v47, %v8542_v33  ;;  %8560 = vst [vmem:[#allocation56_spill] sm:$0xff] %v7220_v50  ;;  %v3428_v1 = vadd.f32 %v3420_v46, %v3404_v5  ;;  %v3430_v37 = vadd.f32 %v3422_v26, %v3406_v20 }
 0x22d   : > { %v3492_v9 = vmul.f32 %v7205_v59, %v8543_v42  ;;  %v3494_v4 = vmul.f32 %v7205_v59, %v8544_v54  ;;  %v3944_v18 = vpack.c.bf16 %v3934_v58, %v3932_v24  ;;  %v3787_v30 = vmul.f32 %v7208_v44, %v8482_v56 }
 0x22e   : > { %v3789_v40 = vmul.f32 %v7208_v44, %v8537_v19  ;;  %v7231_v0 = vrot.slane %v4264_v13, %v8431_v3  ;;  %v3452_v6 = vadd.f32 %v3444_v61, %v3428_v1  ;;  %v3454_v50 = vadd.f32 %v3446_v8, %v3430_v37 }
 0x22f   : > { %v7234_v20 = vrot.slane %v4264_v13, %v8408_v29  ;;  %v7237_v5 = vrot.slane %v4264_v13, %v8466_v35  ;;  %3951 = vmatprep.subr.bf16.mxu1 %v3944_v18  ;;  %v3795_v46 = vadd.f32 %v3787_v30, %v8539_v16  ;;  %v7249_v8 = vpop.f32.mrb[8].mxu0  ;;  %v3379_v1 = vmul.f32 %v7057_v23, %v8445_v34 }
 0x230   : > { %v3797_v26 = vadd.f32 %v3789_v40, %v8540_v15  ;;  %v3811_v56 = vmul.f32 %v7231_v0, %v8484_v38  ;;  %v3813_v3 = vmul.f32 %v7231_v0, %v8538_v45  ;;  %v3476_v19 = vadd.f32 %v3468_v41, %v3452_v6  ;;  %8561 = vst [vmem:[#allocation98_spill] sm:$0xff] %v7249_v8  ;;  %v7255_v40 = vpop.f32.mrb[8].mxu1  ;;  %v7257_v45 = vpop.f32.mrb[9].mxu0 }
 0x231   : > { %v3478_v61 = vadd.f32 %v3470_v28, %v3454_v50  ;;  %v3835_v29 = vmul.f32 %v7234_v20, %v8486_v21  ;;  %v3837_v35 = vmul.f32 %v7234_v20, %v8489_v17  ;;  %v3859_v15 = vmul.f32 %v7237_v5, %v8490_v36  ;;  %8562 = vst [vmem:[#allocation99_spill] sm:$0xff] %v7255_v40  ;;  %v7265_v58 = vpop.f32.mrb[9].mxu1  ;;  %v7267_v6 = vpop.f32.mrb[10].mxu0 }
 0x232   : > { %v3819_v24 = vadd.f32 %v3811_v56, %v3795_v46  ;;  %v3821_v16 = vadd.f32 %v3813_v3, %v3797_v26  ;;  %v3861_v38 = vmul.f32 %v7237_v5, %v8491_v52  ;;  %v3500_v41 = vadd.f32 %v3492_v9, %v3476_v19  ;;  %v7273_v37 = vpop.f32.mrb[10].mxu1  ;;  %v7275_v9 = vpop.f32.mrb[11].mxu0 }
 0x233   : > { %v3502_v28 = vadd.f32 %v3494_v4, %v3478_v61  ;;  %v7260_v21 = vrot.slane %v4264_v13, %v8425_v60  ;;  %v7263_v17 = vrot.slane %v4264_v13, %v8427_v14  ;;  %v3377_v52 = vmul.f32 %v7057_v23, %v8443_v31  ;;  %v7281_v18 = vpop.f32.mrb[11].mxu1 }
 0x234   : > { %v3843_v36 = vadd.f32 %v3835_v29, %v3819_v24  ;;  %v3845_v50 = vadd.f32 %v3837_v35, %v3821_v16  ;;  %v3516_v60 = vmax.f32 %v3500_v41, 0.0  ;;  %v3387_v19 = vadd.f32 %v3379_v1, %v8447_v10  ;;  %v8563_v29 = vld [vmem:[#allocation14_spill] sm:$0xff]  ;;  %v8564_v24 = vld [vmem:[#allocation84_spill] sm:$0xff] }
 0x235   : > { %v3518_v4 = vmax.f32 %v3502_v28, 0.0  ;;  %v3883_v14 = vmul.f32 %v7260_v21, %v8541_v49  ;;  %v3885_v13 = vmul.f32 %v7260_v21, %v8542_v33  ;;  %v3907_v26 = vmul.f32 %v7263_v17, %v8543_v42  ;;  %v8567_v28 = vld [vmem:[#allocation38_spill] sm:$0xff] }
 0x236   : > { %v3867_v30 = vadd.f32 %v3859_v15, %v3843_v36  ;;  %v3869_v46 = vadd.f32 %v3861_v38, %v3845_v50  ;;  %v3909_v23 = vmul.f32 %v7263_v17, %v8544_v54  ;;  %v3385_v3 = vadd.f32 %v3377_v52, %v8446_v57  ;;  %v8565_v15 = vld [vmem:[#allocation26_spill] sm:$0xff] }
 0x237   : > { %v3528_v56 = vpack.c.bf16 %v3518_v4, %v3516_v60  ;;  %v3401_v49 = vmul.f32 %v7060_v48, %v8448_v43  ;;  %v3403_v35 = vmul.f32 %v7060_v48, %v8563_v29  ;;  %v3425_v16 = vmul.f32 %v7063_v63, %v8564_v24  ;;  %v8566_v38 = vld [vmem:[#allocation34_spill] sm:$0xff]  ;;  %v7301_v50 = vpop.f32.mrb[12].mxu0  ;;  %v8569_v48 = vld [vmem:[#allocation19_spill] sm:$0xff] }
 0x238   : > { %v3891_v61 = vadd.f32 %v3883_v14, %v3867_v30  ;;  %v3893_v33 = vadd.f32 %v3885_v13, %v3869_v46  ;;  %v3427_v54 = vmul.f32 %v7063_v63, %v8565_v15  ;;  %v3449_v41 = vmul.f32 %v7066_v62, %v8566_v38  ;;  %8568 = vst [vmem:[#allocation100_spill] sm:$0xff] %v7301_v50  ;;  %v7305_v14 = vpop.f32.mrb[12].mxu1  ;;  %v7307_v13 = vpop.f32.mrb[13].mxu0  ;;  %v8571_v63 = vld [vmem:[#allocation70_spill] sm:$0xff] }
 0x239   : > { %3537 = vmatpush1.bf16.msra.mxu0 %v3528_v56  ;;  %v3409_v42 = vadd.f32 %v3401_v49, %v3385_v3  ;;  %v3451_v36 = vmul.f32 %v7066_v62, %v8567_v28  ;;  %v3411_v60 = vadd.f32 %v3403_v35, %v3387_v19  ;;  %v3473_v4 = vmul.f32 %v7088_v39, %v8569_v48  ;;  %v8572_v56 = vld [vmem:[#allocation103_spill] sm:$0xff] }
 0x23a   : > { %v3915_v52 = vadd.f32 %v3907_v26, %v3891_v61  ;;  %v3917_v1 = vadd.f32 %v3909_v23, %v3893_v33  ;;  %8570 = vst [vmem:[#allocation101_spill] sm:$0xff] %v7305_v14  ;;  %v3475_v46 = vmul.f32 %v7088_v39, %v8571_v63  ;;  %v3497_v3 = vmul.f32 %v7091_v7, %v8572_v56  ;;  %v8573_v62 = vld [vmem:[#allocation27_spill] sm:$0xff]  ;;  %v7315_v26 = vpop.f32.mrb[13].mxu1  ;;  %v7317_v23 = vpop.f32.mrb[14].mxu0 }
 0x23b   : > { %v3433_v30 = vadd.f32 %v3425_v16, %v3409_v42  ;;  %v3499_v49 = vmul.f32 %v7091_v7, %v8573_v62  ;;  %8574 = vst [vmem:[#allocation10_spill] sm:$0xff] %v7315_v26  ;;  %v3435_v33 = vadd.f32 %v3427_v54, %v3411_v60  ;;  %v3792_v35 = vmul.f32 %v7094_v32, %v8443_v31  ;;  %v7321_v16 = vpop.f32.mrb[14].mxu1  ;;  %v7323_v42 = vpop.f32.mrb[15].mxu0 }
 0x23c   : > { %v3931_v19 = vmax.f32 %v3915_v52, 0.0  ;;  %v3933_v61 = vmax.f32 %v3917_v1, 0.0  ;;  %v3794_v14 = vmul.f32 %v7094_v32, %v8445_v34  ;;  %v3816_v7 = vmul.f32 %v7101_v51, %v8448_v43  ;;  %v7331_v52 = vpop.f32.mrb[15].mxu1 }
 0x23d   : > { %v3457_v39 = vadd.f32 %v3449_v41, %v3433_v30  ;;  %v3818_v50 = vmul.f32 %v7101_v51, %v8563_v29  ;;  %v3459_v1 = vadd.f32 %v3451_v36, %v3435_v33  ;;  %v3800_v60 = vadd.f32 %v3792_v35, %v8446_v57 }
 0x23e   : > { %v3943_v54 = vpack.c.bf16 %v3933_v61, %v3931_v19  ;;  %v3840_v40 = vmul.f32 %v7116_v53, %v8564_v24  ;;  %v3802_v41 = vadd.f32 %v3794_v14, %v8447_v10  ;;  %v3842_v32 = vmul.f32 %v7116_v53, %v8565_v15 }
 0x23f   : > { %v3481_v8 = vadd.f32 %v3473_v4, %v3457_v39  ;;  %v3864_v30 = vmul.f32 %v7119_v27, %v8566_v38  ;;  %v3483_v51 = vadd.f32 %v3475_v46, %v3459_v1  ;;  %v3824_v26 = vadd.f32 %v3816_v7, %v3800_v60 }
 0x240   : > { %3952 = vmatpush1.bf16.msra.mxu1 %v3943_v54  ;;  %v3866_v36 = vmul.f32 %v7119_v27, %v8567_v28  ;;  %v3888_v19 = vmul.f32 %v7124_v12, %v8569_v48  ;;  %v3826_v33 = vadd.f32 %v3818_v50, %v3802_v41  ;;  %v3890_v4 = vmul.f32 %v7124_v12, %v8571_v63 }
 0x241   : > { %v3505_v61 = vadd.f32 %v3497_v3, %v3481_v8  ;;  %v3912_v53 = vmul.f32 %v7127_v11, %v8572_v56  ;;  %v3507_v14 = vadd.f32 %v3499_v49, %v3483_v51  ;;  %v3848_v35 = vadd.f32 %v3840_v40, %v3824_v26  ;;  %v8575_v26 = vld [vmem:[#allocation37_spill] sm:$0xff] }
 0x242   : > { %v3914_v46 = vmul.f32 %v7127_v11, %v8573_v62  ;;  %v3376_v39 = vmul.f32 %v7163_v25, %v8443_v31  ;;  %v3850_v7 = vadd.f32 %v3842_v32, %v3826_v33  ;;  %v3378_v8 = vmul.f32 %v7163_v25, %v8445_v34 }
 0x243   : > { %v3521_v27 = vmax.f32 %v3505_v61, 0.0  ;;  %v3400_v50 = vmul.f32 %v7166_v55, %v8448_v43  ;;  %v3523_v12 = vmax.f32 %v3507_v14, 0.0  ;;  %v3872_v3 = vadd.f32 %v3864_v30, %v3848_v35 }
 0x244   : > { %v3384_v54 = vadd.f32 %v3376_v39, %v8446_v57  ;;  %v3402_v40 = vmul.f32 %v7166_v55, %v8563_v29  ;;  %v3874_v49 = vadd.f32 %v3866_v36, %v3850_v7  ;;  %v3386_v11 = vadd.f32 %v3378_v8, %v8447_v10 }
 0x245   : > { %v3424_v1 = vmul.f32 %v8575_v26, %v8564_v24  ;;  %v3426_v60 = vmul.f32 %v8575_v26, %v8565_v15  ;;  %v3531_v25 = vpack.c.bf16 %v3523_v12, %v3521_v27  ;;  %v3896_v41 = vadd.f32 %v3888_v19, %v3872_v3 }
 0x246   : > { %v3408_v32 = vadd.f32 %v3400_v50, %v3384_v54  ;;  %v3448_v30 = vmul.f32 %v7172_v22, %v8566_v38  ;;  %v3898_v51 = vadd.f32 %v3890_v4, %v3874_v49  ;;  %v3410_v61 = vadd.f32 %v3402_v40, %v3386_v11 }
 0x247   : > { %v3450_v55 = vmul.f32 %v7172_v22, %v8567_v28  ;;  %v3472_v36 = vmul.f32 %v7198_v47, %v8569_v48  ;;  %3538 = vmatprep.subr.bf16.mxu0 %v3531_v25  ;;  %v3920_v33 = vadd.f32 %v3912_v53, %v3896_v41  ;;  %v3474_v35 = vmul.f32 %v7198_v47, %v8571_v63 }
 0x248   : > { %v3432_v14 = vadd.f32 %v3424_v1, %v3408_v32  ;;  %v3496_v19 = vmul.f32 %v7205_v59, %v8572_v56  ;;  %v3922_v39 = vadd.f32 %v3914_v46, %v3898_v51  ;;  %v3434_v27 = vadd.f32 %v3426_v60, %v3410_v61 }
 0x249   : > { %v3498_v4 = vmul.f32 %v7205_v59, %v8573_v62  ;;  %v3791_v22 = vmul.f32 %v7208_v44, %v8443_v31  ;;  %v3936_v7 = vmax.f32 %v3920_v33, 0.0  ;;  %v3793_v53 = vmul.f32 %v7208_v44, %v8445_v34 }
 0x24a   : > { %v3456_v8 = vadd.f32 %v3448_v30, %v3432_v14  ;;  %v3815_v50 = vmul.f32 %v7231_v0, %v8448_v43  ;;  %v3938_v47 = vmax.f32 %v3922_v39, 0.0  ;;  %v3458_v12 = vadd.f32 %v3450_v55, %v3434_v27  ;;  %v8580_v27 = vld [vmem:[#allocation47_spill] sm:$0xff] }
 0x24b   : > { %v3799_v3 = vadd.f32 %v3791_v22, %v8446_v57  ;;  %v3817_v46 = vmul.f32 %v7231_v0, %v8563_v29  ;;  %v3801_v59 = vadd.f32 %v3793_v53, %v8447_v10  ;;  %v3839_v31 = vmul.f32 %v7234_v20, %v8564_v24  ;;  %v8581_v22 = vld [vmem:[#allocation48_spill] sm:$0xff] }
 0x24c   : > { %v3480_v54 = vadd.f32 %v3472_v36, %v3456_v8  ;;  %v3841_v40 = vmul.f32 %v7234_v20, %v8565_v15  ;;  %v3946_v34 = vpack.c.bf16 %v3938_v47, %v3936_v7  ;;  %v3482_v44 = vadd.f32 %v3474_v35, %v3458_v12 }
 0x24d   : > { %v3823_v49 = vadd.f32 %v3815_v50, %v3799_v3  ;;  %v3863_v43 = vmul.f32 %v7237_v5, %v8566_v38  ;;  %v3825_v57 = vadd.f32 %v3817_v46, %v3801_v59  ;;  %v3865_v0 = vmul.f32 %v7237_v5, %v8567_v28  ;;  %v8582_v46 = vld [vmem:[#allocation53_spill] sm:$0xff]  ;;  %v8583_v59 = vld [vmem:[#allocation54_spill] sm:$0xff] }
 0x24e   : > { %v3504_v11 = vadd.f32 %v3496_v19, %v3480_v54  ;;  %3953 = vmatprep.subr.bf16.mxu1 %v3946_v34  ;;  %v3506_v29 = vadd.f32 %v3498_v4, %v3482_v44  ;;  %v3887_v24 = vmul.f32 %v7260_v21, %v8569_v48  ;;  %v3889_v20 = vmul.f32 %v7260_v21, %v8571_v63  ;;  %v8576_v21 = vld [vmem:[#allocation41_spill] sm:$0xff]  ;;  %v8579_v19 = vld [vmem:[#allocation22_spill] sm:$0xff]  ;;  %v8585_v44 = vld [vmem:[#allocation59_spill] sm:$0xff] }
 0x24f   : > { %v3847_v10 = vadd.f32 %v3839_v31, %v3823_v49  ;;  %v3849_v26 = vadd.f32 %v3841_v40, %v3825_v57  ;;  %v3911_v38 = vmul.f32 %v7263_v17, %v8572_v56  ;;  %v3913_v5 = vmul.f32 %v7263_v17, %v8573_v62  ;;  %v8578_v62 = vld [vmem:[#allocation95_spill] sm:$0xff]  ;;  %v8584_v34 = vld [vmem:[#allocation45_spill] sm:$0xff] }
 0x250   : > { %v3520_v15 = vmax.f32 %v3504_v11, 0.0  ;;  %v3522_v1 = vmax.f32 %v3506_v29, 0.0  ;;  %v8577_v36 = vmov 0  }
 0x251   : > { %v3871_v60 = vadd.f32 %v3863_v43, %v3847_v10  ;;  %v3873_v25 = vadd.f32 %v3865_v0, %v3849_v26  ;;  %v8586_v43 = vld [vmem:[#allocation60_spill] sm:$0xff] }
 0x252   : > { %v3530_v28 = vpack.c.bf16 %v3522_v1, %v3520_v15 }
 0x253   : > { %v3895_v41 = vadd.f32 %v3887_v24, %v3871_v60  ;;  %v3897_v32 = vadd.f32 %v3889_v20, %v3873_v25 }
 0x254   : > { %3539 = vmatpush1.bf16.msra.mxu0 %v3530_v28  ;;  %v8587_v28 = vld [vmem:[#allocation72_spill] sm:$0xff] }
 0x255   : > { %v3919_v30 = vadd.f32 %v3911_v38, %v3895_v41  ;;  %v3921_v48 = vadd.f32 %v3913_v5, %v3897_v32  ;;  %v1906_v51 = vpop.f32.mrb[16].mxu0  ;;  %v8588_v32 = vld [vmem:[#allocation55_spill] sm:$0xff] }
 0x256   : > { %v1908_v63 = vpop.f32.mrb[17].mxu0 }
 0x257   : > { %v3935_v61 = vmax.f32 %v3919_v30, 0.0  ;;  %v3937_v55 = vmax.f32 %v3921_v48, 0.0  ;;  %4259 = vmatmul.mubr.msk.bf16.vlgmr.msra.gmra.mrb[48].mxu0 %vm1045_vm0, %v8576_v21  ;;  %v7406_v56 = vpop.f32.mrb[18].mxu0 }
 0x258   : > { %3574 = vmatprep.mubr.bf16.mxu0 %v8577_v36  ;;  %v7408_v14 = vpop.f32.mrb[19].mxu0  ;;  %v7410_v17 = vpop.permute.xlu0 %987 }
 0x259   : > { %v3945_v33 = vpack.c.bf16 %v3937_v55, %v3935_v61  ;;  %v1095_v35 = vadd.f32 %v8578_v62, %v7410_v17  ;;  %v1494_v39 = vadd.f32 %v8579_v19, %v7410_v17  ;;  %v1093_v4 = vadd.f32 %v8580_v27, %v7410_v17  ;;  %v7420_v8 = vpop.permute.xlu1 %992  ;;  %v8590_v55 = vld [vmem:[#allocation29_spill] sm:$0xff] }
 0x25a   : > { %v1492_v7 = vadd.f32 %v8581_v22, %v7410_v17  ;;  %v7423_v53 = vadd.f32 %v1906_v51, %v7410_v17  ;;  %v7428_v47 = vadd.f32 %v1908_v63, %v7410_v17  ;;  %v1097_v54 = vadd.f32 %v8582_v46, %v7420_v8 }
 0x25b   : > { %3954 = vmatpush1.bf16.msra.mxu1 %v3945_v33  ;;  %v1132_v12 = vmax.f32 %v1095_v35, 0.0  ;;  %v1531_v3 = vmax.f32 %v1494_v39, 0.0  ;;  %v1496_v31 = vadd.f32 %v8583_v59, %v7420_v8  ;;  %v1099_v49 = vadd.f32 %v8585_v44, %v7420_v8  ;;  %v8591_v39 = vld [vmem:[#allocation56_spill] sm:$0xff] }
 0x25c   : > { %v7425_v50 = vpop.f32.mrb[16].mxu1  ;;  %v1498_v11 = vadd.f32 %v8586_v43, %v7420_v8  ;;  %v7445_v57 = vpop.permute.xlu0 %1002  ;;  %v1131_v0 = vmax.f32 %v1093_v4, 0.0  ;;  %v1530_v29 = vmax.f32 %v1492_v7, 0.0  ;;  %v1133_v26 = vmax.f32 %v1097_v54, 0.0 }
 0x25d   : > { %v7436_v40 = vpop.f32.mrb[17].mxu1  ;;  %v7450_v24 = vmax.f32 %v1132_v12, %v1531_v3  ;;  %v1532_v20 = vmax.f32 %v1496_v31, 0.0  ;;  %v1107_v15 = vadd.f32 %v7210_v2, %v7445_v57  ;;  %v1134_v38 = vmax.f32 %v1099_v49, 0.0  ;;  %v7458_v5 = vpop.permute.xlu1 %997  ;;  %v8589_v2 = vld [vmem:[#allocation97_spill] sm:$0xff] }
 0x25e   : > { %4266 = vmatmul.mubr.msk.bf16.vlgmr.msra.gmra.mrb[48].mxu1 %vm1045_vm0, %v8576_v21  ;;  %v7447_v10 = vpop.f32.mrb[18].mxu1  ;;  %v7456_v60 = vpop.f32.mrb[20].mxu0  ;;  %v1533_v25 = vmax.f32 %v1498_v11, 0.0  ;;  %v1506_v41 = vadd.f32 %v8587_v28, %v7445_v57  ;;  %v1109_v30 = vadd.f32 %v8588_v32, %v7445_v57  ;;  %v1105_v61 = vadd.f32 %v8589_v2, %v7458_v5 }
 0x25f   : > { %3989 = vmatprep.mubr.bf16.mxu1 %v8577_v36  ;;  %4260 = vmatmul.mubr.msk.bf16.gmra.mrb[52].mxu0 %vm1045_vm0, %v8584_v34  ;;  %v7454_v1 = vpop.f32.mrb[19].mxu1  ;;  %v7464_v48 = vpop.f32.mrb[21].mxu0  ;;  %v7466_v51 = vmax.f32 %v1133_v26, %v1532_v20  ;;  %v1504_v21 = vadd.f32 %v8590_v55, %v7458_v5  ;;  %v1137_v63 = vmax.f32 %v1107_v15, 0.0  ;;  %v1508_v27 = vadd.f32 %v8591_v39, %v7445_v57 }
 0x260   : > { %3584 = vmatprep.mubr.bf16.mxu0 %v8577_v36  ;;  %v7472_v33 = vpop.f32.mrb[22].mxu0  ;;  %v7474_v62 = vmax.f32 %v1134_v38, %v1533_v25  ;;  %v1536_v35 = vmax.f32 %v1506_v41, 0.0  ;;  %v1138_v19 = vmax.f32 %v1109_v30, 0.0  ;;  %v1136_v22 = vmax.f32 %v1105_v61, 0.0  ;;  %v7480_v12 = vpop.permute.xlu0 %1012 }
 0x261   : > { %v7478_v4 = vpop.f32.mrb[23].mxu0  ;;  %v1535_v7 = vmax.f32 %v1504_v21, 0.0  ;;  %v1546_v3 = vmax.f32 %v1131_v0, %v1530_v29  ;;  %v1945_v46 = vmax.f32 %v7423_v53, 0.0  ;;  %v1537_v59 = vmax.f32 %v1508_v27, 0.0  ;;  %v7485_v31 = vpop.permute.xlu1 %1007  ;;  %v8593_v27 = vld [vmem:[#allocation10_spill] sm:$0xff] }
 0x262   : > { %v7483_v54 = vmax.f32 %v1137_v63, %v1536_v35  ;;  %v1117_v44 = vadd.f32 %v7267_v6, %v7480_v12  ;;  %v1516_v49 = vadd.f32 %v7273_v37, %v7480_v12  ;;  %v1115_v53 = vadd.f32 %v7257_v45, %v7485_v31  ;;  %v8592_v37 = vld [vmem:[#allocation71_spill] sm:$0xff] }
 0x263   : > { %v7495_v11 = vmax.f32 %v1136_v22, %v1535_v7  ;;  %v1514_v0 = vadd.f32 %v7265_v58, %v7485_v31  ;;  %v1119_v29 = vadd.f32 %v7275_v9, %v7480_v12  ;;  %v7508_v26 = vmax.f32 %v1138_v19, %v1537_v59 }
 0x264   : > { %v7491_v43 = vpop.f32.mrb[20].mxu1  ;;  %v1540_v20 = vmax.f32 %v1516_v49, 0.0  ;;  %v1518_v45 = vadd.f32 %v7281_v18, %v7480_v12  ;;  %v1140_v58 = vmax.f32 %v1115_v53, 0.0  ;;  %v7515_v25 = vpop.permute.xlu0 %1022  ;;  %v1961_v28 = vmax.f32 %v1546_v3, %v1945_v46 }
 0x265   : > { %v7503_v6 = vpop.f32.mrb[21].mxu1  ;;  %v1539_v9 = vmax.f32 %v1514_v0, 0.0  ;;  %v1142_v38 = vmax.f32 %v1119_v29, 0.0  ;;  %v1127_v2 = vadd.f32 %v7317_v23, %v7515_v25  ;;  %v1526_v18 = vadd.f32 %v7321_v16, %v7515_v25  ;;  %v7529_v21 = vpop.permute.xlu1 %1017 }
 0x266   : > { %4267 = vmatmul.mubr.msk.bf16.gmra.mrb[52].mxu1 %vm1045_vm0, %v8584_v34  ;;  %v1141_v34 = vmax.f32 %v1117_v44, 0.0  ;;  %v7512_v15 = vpop.f32.mrb[22].mxu1  ;;  %v1541_v30 = vmax.f32 %v1518_v45, 0.0  ;;  %v1129_v63 = vadd.f32 %v7323_v42, %v7515_v25  ;;  %v1528_v35 = vadd.f32 %v7331_v52, %v7515_v25 }
 0x267   : > { %3999 = vmatprep.mubr.bf16.mxu1 %v8577_v36  ;;  %4261 = vmatmul.mubr.msk.bf16.gmra.mrb[56].mxu0 %vm1045_vm0, %v8592_v37  ;;  %v7517_v41 = vpop.f32.mrb[23].mxu1  ;;  %v7525_v61 = vpop.f32.mrb[24].mxu0  ;;  %v7527_v55 = vmax.f32 %v1140_v58, %v1539_v9  ;;  %v2322_v19 = vadd.f32 %v7425_v50, %v7410_v17  ;;  %v1125_v16 = vadd.f32 %v7307_v13, %v7529_v21  ;;  %v1145_v7 = vmax.f32 %v1127_v2, 0.0 }
 0x268   : > { %3594 = vmatprep.mubr.bf16.mxu0 %v8577_v36  ;;  %v7519_v32 = vmax.f32 %v1141_v34, %v1540_v20  ;;  %v7537_v39 = vpop.f32.mrb[25].mxu0  ;;  %v7539_v23 = vmax.f32 %v1142_v38, %v1541_v30  ;;  %v1524_v22 = vadd.f32 %v8593_v27, %v7529_v21  ;;  %v1544_v42 = vmax.f32 %v1526_v18, 0.0 }
 0x269   : > { %v7545_v3 = vpop.f32.mrb[26].mxu0  ;;  %v1146_v46 = vmax.f32 %v1129_v63, 0.0  ;;  %v1545_v59 = vmax.f32 %v1528_v35, 0.0  ;;  %v2360_v52 = vmax.f32 %v2322_v19, 0.0  ;;  %v1144_v50 = vmax.f32 %v1125_v16, 0.0  ;;  %v8596_v19 = vld [vmem:[#allocation44_spill] sm:$0xff] }
 0x26a   : > { %v7547_v44 = vpop.f32.mrb[27].mxu0  ;;  %v1543_v49 = vmax.f32 %v1524_v22, 0.0  ;;  %v1946_v53 = vmax.f32 %v7428_v47, 0.0  ;;  %v2324_v0 = vadd.f32 %v7436_v40, %v7410_v17  ;;  %v7554_v13 = vmax.f32 %v1145_v7, %v1544_v42  ;;  %v8594_v47 = vld [vmem:[#allocation28_spill] sm:$0xff] }
 0x26b   : > { %v7556_v29 = vmax.f32 %v1146_v46, %v1545_v59  ;;  %v7558_v34 = vmax.f32 %v1961_v28, %v2360_v52  ;;  %v1911_v20 = vadd.f32 %v7406_v56, %v7420_v8  ;;  %v2326_v9 = vadd.f32 %v7447_v10, %v7420_v8 }
 0x26c   : > { %v7567_v40 = vmax.f32 %v1144_v50, %v1543_v49  ;;  %v2361_v58 = vmax.f32 %v2324_v0, 0.0  ;;  %v1913_v56 = vadd.f32 %v7408_v14, %v7420_v8  ;;  %v2328_v30 = vadd.f32 %v7454_v1, %v7420_v8 }
 0x26d   : > { %v7562_v45 = vpop.f32.mrb[24].mxu1  ;;  %v1947_v28 = vmax.f32 %v1911_v20, 0.0  ;;  %v1502_v10 = vadd.f32 %v8596_v19, %v7458_v5  ;;  %v1917_v16 = vadd.f32 %v7456_v60, %v7458_v5  ;;  %v2332_v50 = vadd.f32 %v7491_v43, %v7458_v5 }
 0x26e   : > { %4268 = vmatmul.mubr.msk.bf16.gmra.mrb[56].mxu1 %vm1045_vm0, %v8592_v37  ;;  %v1962_v37 = vmax.f32 %v7450_v24, %v1946_v53  ;;  %v2343_v38 = vpop.f32.mrb[25].mxu1  ;;  %v2362_v24 = vmax.f32 %v2326_v9, 0.0  ;;  %v1948_v22 = vmax.f32 %v1913_v56, 0.0  ;;  %v2363_v7 = vmax.f32 %v2328_v30, 0.0 }
 0x26f   : > { %4009 = vmatprep.mubr.bf16.mxu1 %v8577_v36  ;;  %4262 = vmatmul.mubr.msk.bf16.gmra.mrb[60].mxu0 %vm1045_vm0, %v8594_v47  ;;  %v8595_v36 = vld [vmem:[#allocation43_spill] sm:$0xff]  ;;  %v2345_v18 = vpop.f32.mrb[26].mxu1  ;;  %v7578_v63 = vpop.f32.mrb[28].mxu0  ;;  %v1963_v1 = vmax.f32 %v7466_v51, %v1947_v28  ;;  %v1534_v59 = vmax.f32 %v1502_v10, 0.0  ;;  %v1949_v52 = vmax.f32 %v1917_v16, 0.0  ;;  %v1919_v49 = vadd.f32 %v7464_v48, %v7458_v5 }
 0x270   : > { %v1103_v2 = vadd.f32 %v8595_v36, %v7458_v5  ;;  %v7580_v35 = vmax.f32 %v1962_v37, %v2361_v58  ;;  %v2347_v27 = vpop.f32.mrb[27].mxu1  ;;  %v7586_v14 = vpop.f32.mrb[29].mxu0  ;;  %v1964_v0 = vmax.f32 %v7474_v62, %v1948_v22  ;;  %v2334_v51 = vadd.f32 %v7503_v6, %v7458_v5  ;;  %v8598_v16 = vld [vmem:[#allocation99_spill] sm:$0xff] }
 0x271   : > { %v7589_v46 = vpop.f32.mrb[30].mxu0  ;;  %v7597_v60 = vmax.f32 %v1963_v1, %v2362_v24  ;;  %v1921_v20 = vadd.f32 %v7472_v33, %v7445_v57  ;;  %v2364_v58 = vmax.f32 %v2332_v50, 0.0  ;;  %v1950_v9 = vmax.f32 %v1919_v49, 0.0 }
 0x272   : > { %v1135_v42 = vmax.f32 %v1103_v2, 0.0  ;;  %v7595_v53 = vpop.f32.mrb[31].mxu0  ;;  %v2336_v43 = vadd.f32 %v7512_v15, %v7445_v57  ;;  %v7608_v48 = vmax.f32 %v1964_v0, %v2363_v7  ;;  %v2365_v28 = vmax.f32 %v2334_v51, 0.0 }
 0x273   : > { %v1951_v56 = vmax.f32 %v1921_v20, 0.0  ;;  %v1923_v62 = vadd.f32 %v7478_v4, %v7445_v57  ;;  %v1966_v33 = vmax.f32 %v7495_v11, %v1950_v9  ;;  %v2338_v2 = vadd.f32 %v7517_v41, %v7445_v57 }
 0x274   : > { %v1550_v37 = vmax.f32 %v1135_v42, %v1534_v59  ;;  %v2366_v36 = vmax.f32 %v2336_v43, 0.0  ;;  %v1512_v1 = vadd.f32 %v8598_v16, %v7485_v31  ;;  %v1927_v42 = vadd.f32 %v7525_v61, %v7485_v31 }
 0x275   : > { %v2351_v6 = vpop.f32.mrb[28].mxu1  ;;  %v1967_v15 = vmax.f32 %v7483_v54, %v1951_v56  ;;  %v1952_v19 = vmax.f32 %v1923_v62, 0.0  ;;  %v7622_v7 = vmax.f32 %v1966_v33, %v2365_v28  ;;  %v2367_v11 = vmax.f32 %v2338_v2, 0.0 }
 0x276   : > { %4269 = vmatmul.mubr.msk.bf16.gmra.mrb[60].mxu1 %vm1045_vm0, %v8594_v47  ;;  %v1965_v30 = vmax.f32 %v1550_v37, %v1949_v52  ;;  %v2353_v24 = vpop.f32.mrb[29].mxu1  ;;  %v8597_v47 = vld [vmem:[#allocation98_spill] sm:$0xff]  ;;  %v1538_v50 = vmax.f32 %v1512_v1, 0.0  ;;  %v1953_v49 = vmax.f32 %v1927_v42, 0.0  ;;  %v2342_v0 = vadd.f32 %v7562_v45, %v7485_v31 }
 0x277   : > { %v1113_v10 = vadd.f32 %v8597_v47, %v7485_v31  ;;  %v2355_v22 = vpop.f32.mrb[30].mxu1  ;;  %v7626_v59 = vmax.f32 %v1967_v15, %v2366_v36  ;;  %v1968_v54 = vmax.f32 %v7508_v26, %v1952_v19  ;;  %v1929_v51 = vadd.f32 %v7537_v39, %v7485_v31  ;;  %v8599_v36 = vld [vmem:[#allocation100_spill] sm:$0xff] }
 0x278   : > { %v7620_v4 = vmax.f32 %v1965_v30, %v2364_v58  ;;  %v2357_v41 = vpop.f32.mrb[31].mxu1  ;;  %v2344_v20 = vadd.f32 %v2343_v38, %v7485_v31  ;;  %v1931_v61 = vadd.f32 %v7545_v3, %v7480_v12  ;;  %v2346_v9 = vadd.f32 %v2345_v18, %v7480_v12  ;;  %v8600_v3 = vld [vmem:[#allocation101_spill] sm:$0xff] }
 0x279   : > { %v1139_v52 = vmax.f32 %v1113_v10, 0.0  ;;  %v7634_v37 = vmax.f32 %v1968_v54, %v2367_v11  ;;  %v2368_v26 = vmax.f32 %v2342_v0, 0.0  ;;  %v1954_v43 = vmax.f32 %v1929_v51, 0.0 }
 0x27a   : > { %v2369_v28 = vmax.f32 %v2344_v20, 0.0  ;;  %v1933_v56 = vadd.f32 %v7547_v44, %v7480_v12  ;;  %v1955_v62 = vmax.f32 %v1931_v61, 0.0  ;;  %v2370_v30 = vmax.f32 %v2346_v9, 0.0 }
 0x27b   : > { %v1554_v58 = vmax.f32 %v1139_v52, %v1538_v50  ;;  %v2348_v39 = vadd.f32 %v2347_v27, %v7480_v12  ;;  %v1970_v38 = vmax.f32 %v7527_v55, %v1954_v43  ;;  %v1123_v2 = vadd.f32 %v8599_v36, %v7529_v21 }
 0x27c   : > { %v1956_v33 = vmax.f32 %v1933_v56, 0.0  ;;  %v1522_v18 = vadd.f32 %v8600_v3, %v7529_v21  ;;  %v1971_v19 = vmax.f32 %v7519_v32, %v1955_v62  ;;  %v1937_v44 = vadd.f32 %v7578_v63, %v7529_v21 }
 0x27d   : > { %v1969_v45 = vmax.f32 %v1554_v58, %v1953_v49  ;;  %v2371_v47 = vmax.f32 %v2348_v39, 0.0  ;;  %v7652_v10 = vmax.f32 %v1970_v38, %v2369_v28  ;;  %v1143_v55 = vmax.f32 %v1123_v2, 0.0 }
 0x27e   : > { %v1972_v27 = vmax.f32 %v7539_v23, %v1956_v33  ;;  %v1542_v16 = vmax.f32 %v1522_v18, 0.0  ;;  %v7655_v1 = vmax.f32 %v1971_v19, %v2370_v30  ;;  %v1957_v11 = vmax.f32 %v1937_v44, 0.0 }
 0x27f   : > { %v7647_v15 = vmax.f32 %v1969_v45, %v2368_v26  ;;  %v2352_v42 = vadd.f32 %v2351_v6, %v7529_v21  ;;  %v1939_v54 = vadd.f32 %v7586_v14, %v7529_v21  ;;  %v2354_v50 = vadd.f32 %v2353_v24, %v7529_v21 }
 0x280   : > { %v7660_v52 = vmax.f32 %v1972_v27, %v2371_v47  ;;  %v1558_v32 = vmax.f32 %v1143_v55, %v1542_v16  ;;  %v1941_v63 = vadd.f32 %v7589_v46, %v7515_v25  ;;  %v2356_v0 = vadd.f32 %v2355_v22, %v7515_v25 }
 0x281   : > { %v2372_v49 = vmax.f32 %v2352_v42, 0.0  ;;  %v1958_v23 = vmax.f32 %v1939_v54, 0.0  ;;  %v1943_v51 = vadd.f32 %v7595_v53, %v7515_v25  ;;  %v2373_v6 = vmax.f32 %v2354_v50, 0.0 }
 0x282   : > { %v1973_v20 = vmax.f32 %v1558_v32, %v1957_v11  ;;  %v1959_v58 = vmax.f32 %v1941_v63, 0.0  ;;  %v2358_v14 = vadd.f32 %v2357_v41, %v7515_v25  ;;  %v2374_v46 = vmax.f32 %v2356_v0, 0.0 }
 0x283   : > { %v1974_v61 = vmax.f32 %v7567_v40, %v1958_v23  ;;  %v1960_v9 = vmax.f32 %v1943_v51, 0.0 }
 0x284   : > { %v7670_v26 = vmax.f32 %v1973_v20, %v2372_v49  ;;  %v1975_v24 = vmax.f32 %v7554_v13, %v1959_v58  ;;  %v2375_v28 = vmax.f32 %v2358_v14, 0.0 }
 0x285   : > { %v7673_v43 = vmax.f32 %v1974_v61, %v2373_v6  ;;  %v1976_v22 = vmax.f32 %v7556_v29, %v1960_v9 }
 0x286   : > { %v7676_v56 = vmax.f32 %v1975_v24, %v2374_v46 }
 0x287   : > { %v7678_v53 = vmax.f32 %v1976_v22, %v2375_v28 }
 0x2bf   : > { %v2736_v45 = vpop.f32.mrb[32].mxu0 }
 0x2c0   : > { %v2737_v41 = vadd.f32 %v2736_v45, %v7410_v17  ;;  %v2738_v62 = vpop.f32.mrb[33].mxu0 }
 0x2c1   : > { %v2739_v40 = vadd.f32 %v2738_v62, %v7410_v17  ;;  %v2740_v30 = vpop.f32.mrb[34].mxu0 }
 0x2c2   : > { %v2775_v39 = vmax.f32 %v2737_v41, 0.0  ;;  %v2741_v13 = vadd.f32 %v2740_v30, %v7420_v8  ;;  %v2742_v38 = vpop.f32.mrb[35].mxu0 }
 0x2c3   : > { %v2776_v33 = vmax.f32 %v2739_v40, 0.0  ;;  %v2743_v36 = vadd.f32 %v2742_v38, %v7420_v8 }
 0x2c4   : > { %v2791_v29 = vmax.f32 %v7558_v34, %v2775_v39  ;;  %v2777_v2 = vmax.f32 %v2741_v13, 0.0 }
 0x2c5   : > { %v2792_v3 = vmax.f32 %v7580_v35, %v2776_v33  ;;  %v2778_v18 = vmax.f32 %v2743_v36, 0.0 }
 0x2c6   : > { %v3151_v19 = vpop.f32.mrb[32].mxu1  ;;  %v2793_v47 = vmax.f32 %v7597_v60, %v2777_v2 }
 0x2c7   : > { %v3152_v44 = vadd.f32 %v3151_v19, %v7410_v17  ;;  %v3153_v27 = vpop.f32.mrb[33].mxu1  ;;  %v2794_v55 = vmax.f32 %v7608_v48, %v2778_v18 }
 0x2c8   : > { %v3154_v16 = vadd.f32 %v3153_v27, %v7410_v17  ;;  %v3155_v11 = vpop.f32.mrb[34].mxu1 }
 0x2c9   : > { %v2746_v42 = vpop.f32.mrb[36].mxu0  ;;  %v3190_v54 = vmax.f32 %v3152_v44, 0.0  ;;  %v3156_v32 = vadd.f32 %v3155_v11, %v7420_v8  ;;  %v3157_v34 = vpop.f32.mrb[35].mxu1 }
 0x2ca   : > { %v2747_v50 = vadd.f32 %v2746_v42, %v7458_v5  ;;  %v2748_v35 = vpop.f32.mrb[37].mxu0  ;;  %v3191_v63 = vmax.f32 %v3154_v16, 0.0  ;;  %v3158_v49 = vadd.f32 %v3157_v34, %v7420_v8 }
 0x2cb   : > { %v2749_v60 = vadd.f32 %v2748_v35, %v7458_v5  ;;  %v2750_v23 = vpop.f32.mrb[38].mxu0  ;;  %v7694_v0 = vmax.f32 %v2791_v29, %v3190_v54  ;;  %v3192_v48 = vmax.f32 %v3156_v32, 0.0 }
 0x2cc   : > { %v2779_v51 = vmax.f32 %v2747_v50, 0.0  ;;  %v2751_v20 = vadd.f32 %v2750_v23, %v7445_v57  ;;  %v2752_v6 = vpop.f32.mrb[39].mxu0  ;;  %v7697_v58 = vmax.f32 %v2792_v3, %v3191_v63  ;;  %v3193_v14 = vmax.f32 %v3158_v49, 0.0 }
 0x2cd   : > { %v2780_v61 = vmax.f32 %v2749_v60, 0.0  ;;  %v2753_v9 = vadd.f32 %v2752_v6, %v7445_v57  ;;  %v7700_v24 = vmax.f32 %v2793_v47, %v3192_v48 }
 0x2ce   : > { %v2795_v46 = vmax.f32 %v7620_v4, %v2779_v51  ;;  %v2781_v22 = vmax.f32 %v2751_v20, 0.0  ;;  %v7703_v28 = vmax.f32 %v2794_v55, %v3193_v14  ;;  %v3161_v45 = vpop.f32.mrb[36].mxu1 }
 0x2cf   : > { %v2796_v41 = vmax.f32 %v7622_v7, %v2780_v61  ;;  %v2782_v62 = vmax.f32 %v2753_v9, 0.0  ;;  %v3162_v40 = vadd.f32 %v3161_v45, %v7458_v5  ;;  %v3163_v30 = vpop.f32.mrb[37].mxu1 }
 0x2d0   : > { %v2797_v39 = vmax.f32 %v7626_v59, %v2781_v22  ;;  %v3164_v13 = vadd.f32 %v3163_v30, %v7458_v5  ;;  %v3165_v38 = vpop.f32.mrb[38].mxu1 }
 0x2d1   : > { %v2798_v33 = vmax.f32 %v7634_v37, %v2782_v62  ;;  %v3194_v36 = vmax.f32 %v3162_v40, 0.0  ;;  %v3166_v4 = vadd.f32 %v3165_v38, %v7445_v57  ;;  %v3167_v29 = vpop.f32.mrb[39].mxu1 }
 0x2d2   : > { %v2756_v2 = vpop.f32.mrb[40].mxu0  ;;  %v3195_v3 = vmax.f32 %v3164_v13, 0.0  ;;  %v3168_v18 = vadd.f32 %v3167_v29, %v7445_v57 }
 0x2d3   : > { %v2757_v7 = vadd.f32 %v2756_v2, %v7485_v31  ;;  %v2758_v19 = vpop.f32.mrb[41].mxu0  ;;  %v7713_v47 = vmax.f32 %v2795_v46, %v3194_v36  ;;  %v3196_v44 = vmax.f32 %v3166_v4, 0.0 }
 0x2d4   : > { %v2759_v59 = vadd.f32 %v2758_v19, %v7485_v31  ;;  %v2760_v27 = vpop.f32.mrb[42].mxu0  ;;  %v7716_v55 = vmax.f32 %v2796_v41, %v3195_v3  ;;  %v3197_v37 = vmax.f32 %v3168_v18, 0.0 }
 0x2d5   : > { %v2783_v16 = vmax.f32 %v2757_v7, 0.0  ;;  %v2761_v11 = vadd.f32 %v2760_v27, %v7480_v12  ;;  %v2762_v42 = vpop.f32.mrb[43].mxu0  ;;  %v7719_v54 = vmax.f32 %v2797_v39, %v3196_v44 }
 0x2d6   : > { %v2784_v32 = vmax.f32 %v2759_v59, 0.0  ;;  %v2763_v34 = vadd.f32 %v2762_v42, %v7480_v12  ;;  %v7722_v50 = vmax.f32 %v2798_v33, %v3197_v37  ;;  %v3171_v63 = vpop.f32.mrb[40].mxu1 }
 0x2d7   : > { %v2799_v35 = vmax.f32 %v7647_v15, %v2783_v16  ;;  %v2785_v49 = vmax.f32 %v2761_v11, 0.0  ;;  %v3172_v60 = vadd.f32 %v3171_v63, %v7485_v31  ;;  %v3173_v48 = vpop.f32.mrb[41].mxu1 }
 0x2d8   : > { %v2800_v23 = vmax.f32 %v7652_v10, %v2784_v32  ;;  %v2786_v51 = vmax.f32 %v2763_v34, 0.0  ;;  %v3174_v20 = vadd.f32 %v3173_v48, %v7485_v31  ;;  %v3175_v14 = vpop.f32.mrb[42].mxu1 }
 0x2d9   : > { %v2801_v6 = vmax.f32 %v7655_v1, %v2785_v49  ;;  %v3198_v61 = vmax.f32 %v3172_v60, 0.0  ;;  %v3176_v9 = vadd.f32 %v3175_v14, %v7480_v12  ;;  %v3177_v22 = vpop.f32.mrb[43].mxu1 }
 0x2da   : > { %v2802_v46 = vmax.f32 %v7660_v52, %v2786_v51  ;;  %v2766_v15 = vpop.f32.mrb[44].mxu0  ;;  %v3199_v45 = vmax.f32 %v3174_v20, 0.0  ;;  %v3178_v41 = vadd.f32 %v3177_v22, %v7480_v12 }
 0x2db   : > { %v2767_v62 = vadd.f32 %v2766_v15, %v7529_v21  ;;  %v2768_v10 = vpop.f32.mrb[45].mxu0  ;;  %v7733_v40 = vmax.f32 %v2799_v35, %v3198_v61  ;;  %v3200_v30 = vmax.f32 %v3176_v9, 0.0 }
 0x2dc   : > { %v2769_v39 = vadd.f32 %v2768_v10, %v7529_v21  ;;  %v2770_v1 = vpop.f32.mrb[46].mxu0  ;;  %v7736_v13 = vmax.f32 %v2800_v23, %v3199_v45  ;;  %v3201_v38 = vmax.f32 %v3178_v41, 0.0 }
 0x2dd   : > { %v2787_v33 = vmax.f32 %v2767_v62, 0.0  ;;  %v2771_v52 = vadd.f32 %v2770_v1, %v7515_v25  ;;  %v2772_v36 = vpop.f32.mrb[47].mxu0  ;;  %v7739_v4 = vmax.f32 %v2801_v6, %v3200_v30 }
 0x2de   : > { %v2788_v29 = vmax.f32 %v2769_v39, 0.0  ;;  %v2773_v2 = vadd.f32 %v2772_v36, %v7515_v25  ;;  %v7742_v3 = vmax.f32 %v2802_v46, %v3201_v38  ;;  %v3181_v7 = vpop.f32.mrb[44].mxu1 }
 0x2df   : > { %v2803_v18 = vmax.f32 %v7670_v26, %v2787_v33  ;;  %v2789_v19 = vmax.f32 %v2771_v52, 0.0  ;;  %v3182_v44 = vadd.f32 %v3181_v7, %v7529_v21  ;;  %v3183_v27 = vpop.f32.mrb[45].mxu1 }
 0x2e0   : > { %v2804_v59 = vmax.f32 %v7673_v43, %v2788_v29  ;;  %v2790_v37 = vmax.f32 %v2773_v2, 0.0  ;;  %v3184_v16 = vadd.f32 %v3183_v27, %v7529_v21  ;;  %v3185_v42 = vpop.f32.mrb[46].mxu1 }
 0x2e1   : > { %v2805_v11 = vmax.f32 %v7676_v56, %v2789_v19  ;;  %v3202_v32 = vmax.f32 %v3182_v44, 0.0  ;;  %v3186_v34 = vadd.f32 %v3185_v42, %v7515_v25  ;;  %v3187_v63 = vpop.f32.mrb[47].mxu1 }
 0x2e2   : > { %v2806_v35 = vmax.f32 %v7678_v53, %v2790_v37  ;;  %v3203_v26 = vmax.f32 %v3184_v16, 0.0  ;;  %v3188_v49 = vadd.f32 %v3187_v63, %v7515_v25 }
 0x2e3   : > { %v7752_v60 = vmax.f32 %v2803_v18, %v3202_v32  ;;  %v3204_v23 = vmax.f32 %v3186_v34, 0.0 }
 0x2e4   : > { %v7754_v43 = vmax.f32 %v2804_v59, %v3203_v26  ;;  %v3205_v48 = vmax.f32 %v3188_v49, 0.0 }
 0x2e5   : > { %v7756_v51 = vmax.f32 %v2805_v11, %v3204_v23 }
 0x2e6   : > { %v7758_v20 = vmax.f32 %v2806_v35, %v3205_v48 }
 0x32a   : > { %v3566_v56 = vpop.f32.mrb[48].mxu0 }
 0x32b   : > { %v3567_v6 = vadd.f32 %v3566_v56, %v7410_v17  ;;  %v3568_v14 = vpop.f32.mrb[49].mxu0 }
 0x32c   : > { %v3569_v53 = vadd.f32 %v3568_v14, %v7410_v17  ;;  %v3570_v61 = vpop.f32.mrb[50].mxu0 }
 0x32d   : > { %v3605_v9 = vmax.f32 %v3567_v6, 0.0  ;;  %v3571_v46 = vadd.f32 %v3570_v61, %v7420_v8  ;;  %v3572_v22 = vpop.f32.mrb[51].mxu0 }
 0x32e   : > { %v3606_v15 = vmax.f32 %v3569_v53, 0.0  ;;  %v3573_v45 = vadd.f32 %v3572_v22, %v7420_v8 }
 0x32f   : > { %v3621_v41 = vmax.f32 %v7694_v0, %v3605_v9  ;;  %v3607_v62 = vmax.f32 %v3571_v46, 0.0 }
 0x330   : > { %v3622_v10 = vmax.f32 %v7697_v58, %v3606_v15  ;;  %v3608_v30 = vmax.f32 %v3573_v45, 0.0 }
 0x331   : > { %v3981_v39 = vpop.f32.mrb[48].mxu1  ;;  %v3623_v1 = vmax.f32 %v7700_v24, %v3607_v62 }
 0x332   : > { %v3982_v38 = vadd.f32 %v3981_v39, %v7410_v17  ;;  %v3983_v33 = vpop.f32.mrb[49].mxu1  ;;  %v3624_v52 = vmax.f32 %v7703_v28, %v3608_v30  ;;  %v3576_v36 = vpop.f32.mrb[52].mxu0 }
 0x333   : > { %v3984_v29 = vadd.f32 %v3983_v33, %v7410_v17  ;;  %v3985_v2 = vpop.f32.mrb[50].mxu1  ;;  %v3577_v18 = vadd.f32 %v3576_v36, %v7458_v5  ;;  %v3578_v7 = vpop.f32.mrb[53].mxu0 }
 0x334   : > { %v4020_v0 = vmax.f32 %v3982_v38, 0.0  ;;  %v3986_v19 = vadd.f32 %v3985_v2, %v7420_v8  ;;  %v3987_v58 = vpop.f32.mrb[51].mxu1  ;;  %v3579_v44 = vadd.f32 %v3578_v7, %v7458_v5  ;;  %v3580_v24 = vpop.f32.mrb[54].mxu0 }
 0x335   : > { %v4021_v59 = vmax.f32 %v3984_v29, 0.0  ;;  %v3988_v27 = vadd.f32 %v3987_v58, %v7420_v8  ;;  %v3609_v37 = vmax.f32 %v3577_v18, 0.0  ;;  %v3581_v28 = vadd.f32 %v3580_v24, %v7445_v57  ;;  %v3582_v16 = vpop.f32.mrb[55].mxu0 }
 0x336   : > { %v4036_v17 = vmax.f32 %v3621_v41, %v4020_v0  ;;  %v4022_v11 = vmax.f32 %v3986_v19, 0.0  ;;  %v3610_v42 = vmax.f32 %v3579_v44, 0.0  ;;  %v3583_v32 = vadd.f32 %v3582_v16, %v7445_v57 }
 0x337   : > { %v4037_v34 = vmax.f32 %v3622_v10, %v4021_v59  ;;  %v4023_v35 = vmax.f32 %v3988_v27, 0.0  ;;  %v3625_v63 = vmax.f32 %v7713_v47, %v3609_v37  ;;  %v3611_v26 = vmax.f32 %v3581_v28, 0.0 }
 0x338   : > { %4052 = vst [vmem:[%s7778_s19] sm:$0xff] %v4036_v17  ;;  %v4038_v8 = vmax.f32 %v3623_v1, %v4022_v11  ;;  %v3626_v49 = vmax.f32 %v7716_v55, %v3610_v42  ;;  %v3612_v23 = vmax.f32 %v3583_v32, 0.0 }
 0x339   : > { %4053 = vst [vmem:[%s7778_s19 + $0x8] sm:$0xff] %v4037_v34  ;;  %v4039_v48 = vmax.f32 %v3624_v52, %v4023_v35  ;;  %v3991_v56 = vpop.f32.mrb[52].mxu1  ;;  %v3627_v6 = vmax.f32 %v7719_v54, %v3611_v26 }
 0x33a   : > { %4054 = vst [vmem:[%s7778_s19 + $0x10] sm:$0xff] %v4038_v8  ;;  %v3992_v47 = vadd.f32 %v3991_v56, %v7458_v5  ;;  %v3993_v14 = vpop.f32.mrb[53].mxu1  ;;  %v3628_v53 = vmax.f32 %v7722_v50, %v3612_v23  ;;  %v3586_v61 = vpop.f32.mrb[56].mxu0 }
 0x33b   : > { %4055 = vst [vmem:[%s7778_s19 + $0x18] sm:$0xff] %v4039_v48  ;;  %v3994_v9 = vadd.f32 %v3993_v14, %v7458_v5  ;;  %v3995_v46 = vpop.f32.mrb[54].mxu1  ;;  %v3587_v22 = vadd.f32 %v3586_v61, %v7485_v31  ;;  %v3588_v55 = vpop.f32.mrb[57].mxu0 }
 0x33c   : > { %v4024_v15 = vmax.f32 %v3992_v47, 0.0  ;;  %v3996_v45 = vadd.f32 %v3995_v46, %v7445_v57  ;;  %v3997_v41 = vpop.f32.mrb[55].mxu1  ;;  %v3589_v54 = vadd.f32 %v3588_v55, %v7485_v31  ;;  %v3590_v62 = vpop.f32.mrb[58].mxu0 }
 0x33d   : > { %v4025_v10 = vmax.f32 %v3994_v9, 0.0  ;;  %v3998_v30 = vadd.f32 %v3997_v41, %v7445_v57  ;;  %v3613_v50 = vmax.f32 %v3587_v22, 0.0  ;;  %v3591_v39 = vadd.f32 %v3590_v62, %v7480_v12  ;;  %v3592_v5 = vpop.f32.mrb[59].mxu0 }
 0x33e   : > { %v4040_v1 = vmax.f32 %v3625_v63, %v4024_v15  ;;  %v4026_v38 = vmax.f32 %v3996_v45, 0.0  ;;  %v3614_v33 = vmax.f32 %v3589_v54, 0.0  ;;  %v3593_v52 = vadd.f32 %v3592_v5, %v7480_v12 }
 0x33f   : > { %v4041_v36 = vmax.f32 %v3626_v49, %v4025_v10  ;;  %v4027_v29 = vmax.f32 %v3998_v30, 0.0  ;;  %v3629_v2 = vmax.f32 %v7733_v40, %v3613_v50  ;;  %v3615_v18 = vmax.f32 %v3591_v39, 0.0 }
 0x340   : > { %4056 = vst [vmem:[%s7778_s19 + $0x20] sm:$0xff] %v4040_v1  ;;  %v4042_v7 = vmax.f32 %v3627_v6, %v4026_v38  ;;  %v3630_v57 = vmax.f32 %v7736_v13, %v3614_v33  ;;  %v3616_v0 = vmax.f32 %v3593_v52, 0.0 }
 0x341   : > { %4057 = vst [vmem:[%s7778_s19 + $0x28] sm:$0xff] %v4041_v36  ;;  %v4043_v19 = vmax.f32 %v3628_v53, %v4027_v29  ;;  %v4001_v58 = vpop.f32.mrb[56].mxu1  ;;  %v3631_v44 = vmax.f32 %v7739_v4, %v3615_v18  ;;  %v4094_v1 = vld [vmem:[%s7778_s19 + $0x10] sm:$0xff] (%p4456_p5) }
 0x342   : > { %4058 = vst [vmem:[%s7778_s19 + $0x30] sm:$0xff] %v4042_v7  ;;  %v4002_v24 = vadd.f32 %v4001_v58, %v7485_v31  ;;  %v4003_v59 = vpop.f32.mrb[57].mxu1  ;;  %v3632_v27 = vmax.f32 %v7742_v3, %v3616_v0  ;;  %v3596_v37 = vpop.f32.mrb[60].mxu0  ;;  %v4096_v38 = vld [vmem:[%s7778_s19 + $0x18] sm:$0xff] (%p4456_p5)  ;;  %4095 = vst [vmem:[%s4077_s14 + $0x20] sm:$0xff] (%p4456_p5), %v4094_v1 }
 0x343   : > { %4059 = vst [vmem:[%s7778_s19 + $0x38] sm:$0xff] %v4043_v19  ;;  %v4004_v40 = vadd.f32 %v4003_v59, %v7485_v31  ;;  %v4005_v28 = vpop.f32.mrb[58].mxu1  ;;  %v3597_v16 = vadd.f32 %v3596_v37, %v7529_v21  ;;  %v3598_v13 = vpop.f32.mrb[61].mxu0  ;;  %4097 = vst [vmem:[%s4077_s14 + $0x28] sm:$0xff] (%p4456_p5), %v4096_v38 }
 0x344   : > { %v4028_v17 = vmax.f32 %v4002_v24, 0.0  ;;  %v4006_v11 = vadd.f32 %v4005_v28, %v7480_v12  ;;  %v4007_v42 = vpop.f32.mrb[59].mxu1  ;;  %v3599_v4 = vadd.f32 %v3598_v13, %v7529_v21  ;;  %v3600_v32 = vpop.f32.mrb[62].mxu0 }
 0x345   : > { %v4029_v34 = vmax.f32 %v4004_v40, 0.0  ;;  %v4008_v35 = vadd.f32 %v4007_v42, %v7480_v12  ;;  %v3617_v3 = vmax.f32 %v3597_v16, 0.0  ;;  %v3601_v63 = vadd.f32 %v3600_v32, %v7515_v25  ;;  %v3602_v31 = vpop.f32.mrb[63].mxu0 }
 0x346   : > { %v4044_v26 = vmax.f32 %v3629_v2, %v4028_v17  ;;  %v4030_v8 = vmax.f32 %v4006_v11, 0.0  ;;  %v3618_v49 = vmax.f32 %v3599_v4, 0.0  ;;  %v3603_v23 = vadd.f32 %v3602_v31, %v7515_v25 }
 0x347   : > { %v4045_v48 = vmax.f32 %v3630_v57, %v4029_v34  ;;  %v4031_v56 = vmax.f32 %v4008_v35, 0.0  ;;  %v3633_v6 = vmax.f32 %v7752_v60, %v3617_v3  ;;  %v3619_v47 = vmax.f32 %v3601_v63, 0.0  ;;  %v4098_v33 = vld [vmem:[%s7778_s19 + $0x20] sm:$0xff] (%p4456_p5) }
 0x348   : > { %4060 = vst [vmem:[%s7778_s19 + $0x40] sm:$0xff] %v4044_v26  ;;  %v4046_v14 = vmax.f32 %v3631_v44, %v4030_v8  ;;  %v3634_v12 = vmax.f32 %v7754_v43, %v3618_v49  ;;  %v3620_v53 = vmax.f32 %v3603_v23, 0.0  ;;  %v4100_v52 = vld [vmem:[%s7778_s19 + $0x28] sm:$0xff] (%p4456_p5)  ;;  %4099 = vst [vmem:[%s4077_s14 + $0x40] sm:$0xff] (%p4456_p5), %v4098_v33 }
 0x349   : > { %4061 = vst [vmem:[%s7778_s19 + $0x48] sm:$0xff] %v4045_v48  ;;  %v4047_v61 = vmax.f32 %v3632_v27, %v4031_v56  ;;  %v4011_v9 = vpop.f32.mrb[60].mxu1  ;;  %v3635_v46 = vmax.f32 %v7756_v51, %v3619_v47  ;;  %4101 = vst [vmem:[%s4077_s14 + $0x48] sm:$0xff] (%p4456_p5), %v4100_v52  ;;  %v4102_v36 = vld [vmem:[%s7778_s19 + $0x30] sm:$0xff] (%p4456_p5) }
 0x34a   : > { %4062 = vst [vmem:[%s7778_s19 + $0x50] sm:$0xff] %v4046_v14  ;;  %v4012_v22 = vadd.f32 %v4011_v9, %v7529_v21  ;;  %v4013_v55 = vpop.f32.mrb[61].mxu1  ;;  %v3636_v15 = vmax.f32 %v7758_v20, %v3620_v53  ;;  %v4104_v29 = vld [vmem:[%s7778_s19 + $0x38] sm:$0xff] (%p4456_p5)  ;;  %4103 = vst [vmem:[%s4077_s14 + $0x60] sm:$0xff] (%p4456_p5), %v4102_v36 }
 0x34b   : > { %4063 = vst [vmem:[%s7778_s19 + $0x58] sm:$0xff] %v4047_v61  ;;  %v4014_v60 = vadd.f32 %v4013_v55, %v7529_v21  ;;  %v4015_v43 = vpop.f32.mrb[62].mxu1  ;;  %v4092_v21 = vld [vmem:[%s7778_s19 + $0x8] sm:$0xff] (%p4456_p5)  ;;  %4105 = vst [vmem:[%s4077_s14 + $0x68] sm:$0xff] (%p4456_p5), %v4104_v29 }
 0x34c   : > { %v4032_v45 = vmax.f32 %v4012_v22, 0.0  ;;  %v4016_v41 = vadd.f32 %v4015_v43, %v7515_v25  ;;  %v4017_v54 = vpop.f32.mrb[63].mxu1  ;;  %4093 = vst [vmem:[%s4077_s14 + $0x8] sm:$0xff] (%p4456_p5), %v4092_v21 }
 0x34d   : > { %v4033_v62 = vmax.f32 %v4014_v60, 0.0  ;;  %v4018_v51 = vadd.f32 %v4017_v54, %v7515_v25  ;;  %4074 = sbr.rel (!%p4456_p5) target bundleno = 860 (0x35c), region = 117  ;;  %v4090_v25 = vld [vmem:[%s7778_s19] sm:$0xff] (%p4456_p5) }
 0x34e   : > { %v4048_v10 = vmax.f32 %v3633_v6, %v4032_v45  ;;  %v4034_v30 = vmax.f32 %v4016_v41, 0.0  ;;  %4091 = vst [vmem:[%s4077_s14] sm:$0xff] (%p4456_p5), %v4090_v25 }
 0x34f   : > { %v4049_v50 = vmax.f32 %v3634_v12, %v4033_v62  ;;  %v4035_v39 = vmax.f32 %v4018_v51, 0.0  ;;  %v4106_v2 = vld [vmem:[%s7778_s19 + $0x40] sm:$0xff] (%p4456_p5) }
 0x350   : > { %4064 = vst [vmem:[%s7778_s19 + $0x60] sm:$0xff] %v4048_v10  ;;  %v4050_v5 = vmax.f32 %v3635_v46, %v4034_v30  ;;  %4107 = vst [vmem:[%s4077_s14 + $0x80] sm:$0xff] (%p4456_p5), %v4106_v2  ;;  %v4108_v18 = vld [vmem:[%s7778_s19 + $0x48] sm:$0xff] (%p4456_p5) }
 0x351   : > { %4065 = vst [vmem:[%s7778_s19 + $0x68] sm:$0xff] %v4049_v50  ;;  %v4051_v20 = vmax.f32 %v3636_v15, %v4035_v39  ;;  %v4110_v7 = vld [vmem:[%s7778_s19 + $0x50] sm:$0xff] (%p4456_p5)  ;;  %4109 = vst [vmem:[%s4077_s14 + $0x88] sm:$0xff] (%p4456_p5), %v4108_v18 }
 0x352   : > { %4066 = vst [vmem:[%s7778_s19 + $0x70] sm:$0xff] %v4050_v5  ;;  %v4112_v57 = vld [vmem:[%s7778_s19 + $0x58] sm:$0xff] (%p4456_p5)  ;;  %4111 = vst [vmem:[%s4077_s14 + $0xa0] sm:$0xff] (%p4456_p5), %v4110_v7 }
 0x353   : > { %4067 = vst [vmem:[%s7778_s19 + $0x78] sm:$0xff] %v4051_v20  ;;  %4113 = vst [vmem:[%s4077_s14 + $0xa8] sm:$0xff] (%p4456_p5), %v4112_v57 }
 0x357   : > { %v4114_v0 = vld [vmem:[%s7778_s19 + $0x60] sm:$0xff] }
 0x358   : > { %v4116_v19 = vld [vmem:[%s7778_s19 + $0x68] sm:$0xff]  ;;  %4115 = vst [vmem:[%s4077_s14 + $0xc0] sm:$0xff] %v4114_v0 }
 0x359   : > { %v4118_v58 = vld [vmem:[%s7778_s19 + $0x70] sm:$0xff]  ;;  %4117 = vst [vmem:[%s4077_s14 + $0xc8] sm:$0xff] %v4116_v19 }
 0x35a   : > { %4119 = vst [vmem:[%s4077_s14 + $0xe0] sm:$0xff] %v4118_v58  ;;  %v4120_v44 = vld [vmem:[%s7778_s19 + $0x78] sm:$0xff] }
 0x35b   : > { %4121 = vst [vmem:[%s4077_s14 + $0xe8] sm:$0xff] %v4120_v44 }
 0x35c PF: > { %p15_p10 = scmp.ge.s32.totalorder %s4439_s9, 4   ;;  %s8601_s27 = smov %s4365_s28 }
 0x35d   : > { %s8602_s28 = smov %s4450_s12  ;;  %s8603_s29 = smov %s4439_s9 }
 0x35e   :  { %17 = sbr.rel (!%p15_p10) target bundleno = 2 (0x2), region = 193 }

</bundles_post_ra>
